<compile_context>
chip_gen: v6e
topology: v6e:2x2x1
jax: 0.10.0
libtpu: 0.0.40
codegen_flags: <defaults>
</compile_context>

<pallas_src>
import functools

import jax
import jax.numpy as jnp
from jax.experimental import pallas as pl
from jax.experimental.pallas import tpu as pltpu

LN_EPS = 1e-5  # nn.LayerNorm default

# Indices into the packed small-vector operand (order must match _pack_vectors call in wrapper).
(A1_BQ, A1_BKV, A1_BO, A1_G, A1_B,
 A2_BQ, A2_BKV, A2_BO, A2_G, A2_B,
 FF_B1, FF_B2, FF_G, FF_B) = range(14)


# ---------------------------------------------------------------------------
# In-kernel helpers
# ---------------------------------------------------------------------------
def _layer_norm(y, gamma, beta):
    mean = jnp.mean(y, axis=-1, keepdims=True)
    c = y - mean
    var = jnp.mean(c * c, axis=-1, keepdims=True)
    return c * jax.lax.rsqrt(var + LN_EPS) * gamma + beta


def _attention(xq_bf16, kv_ref, wq, bq, wo, bo, ctx_ref, num_heads, dk, dkp):
    """Multi-head attention of a (TQ, D) bf16 query tile against a cached bf16 K|V slab.

    kv_ref: VMEM (Sk, 2*H*dkp) bf16  -- [K | V], head h at lane offset h*dkp (pad cols are zero).
    ctx_ref: VMEM (TQ, H*dkp) bf16   -- per-head context written at 128-aligned lane offsets.
    """
    hdkp = num_heads * dkp
    scale = 1.0 / (float(dk) ** 0.5)   # PyTorch: softmax(QK^T / sqrt(dim_q)), dim_q = dk

    # Fused, lane-dense Q projection (one matmul for all heads).
    q = jnp.dot(xq_bf16, wq, preferred_element_type=jnp.float32) + bq        # (TQ, H*dkp) f32

    for h in range(num_heads):          # static, small; per-head scores are inherently dkp-wide
        lo = h * dkp                    # 128-aligned lane offset
        qh = q[:, lo:lo + dkp].astype(jnp.bfloat16)                          # (TQ, dkp)
        kh = kv_ref[:, lo:lo + dkp]                                          # (Sk, dkp) bf16
        vh = kv_ref[:, hdkp + lo:hdkp + lo + dkp]                            # (Sk, dkp) bf16
        # q @ k^T expressed as dot_general contracting the last dims (no explicit transpose).
        s = jax.lax.dot_general(qh, kh, (((1,), (1,)), ((), ())),
                                preferred_element_type=jnp.float32) * scale  # (TQ, Sk) f32
        m = jnp.max(s, axis=-1, keepdims=True)
        p = jnp.exp(s - m)                                                   # unnormalized probs
        r = jnp.sum(p, axis=-1, keepdims=True)                               # (TQ, 1)
        ctx = jnp.dot(p.astype(jnp.bfloat16), vh,
                      preferred_element_type=jnp.float32)                    # (TQ, dkp) f32
        # Deferred softmax normalization: scale (TQ, dkp) context, not the (TQ, Sk) prob matrix.
        ctx_ref[:, lo:lo + dkp] = (ctx * pl.reciprocal(r)).astype(jnp.bfloat16)

    # Single lane-dense output projection (H*dkp -> D); padded rows of wo are zero.
    return jnp.dot(ctx_ref[...], wo, preferred_element_type=jnp.float32) + bo


# ---------------------------------------------------------------------------
# Fused decoder-layer kernel: self-attn + cross-attn + feed-forward, each with
# residual add + LayerNorm, for one (batch, query-tile) grid point.
# ---------------------------------------------------------------------------
def decoder_layer_kernel(tgt_ref, mem_ref, vec_ref,
                         a1_wq, a1_wkv, a1_wo,
                         a2_wq, a2_wkv, a2_wo,
                         ff_w1, ff_w2,
                         out_ref,
                         kv1_ref, kv2_ref, ctx_ref,
                         *, num_heads, dk, dkp, tq, vec_slices):
    q_idx = pl.program_id(1)

    def vec(i):
        off, n = vec_slices[i]              # static, 128-aligned offsets
        return vec_ref[:, off:off + n]      # (1, n) f32

    # TODO(synk): Dropout omitted (identity, eval-mode semantics); no attention masks in the spec.

    # ---- K/V projections: computed once per batch (first q tile), cached in VMEM scratch ----
    @pl.when(q_idx == 0)
    def _():
        kv1 = jnp.dot(tgt_ref[0], a1_wkv[...], preferred_element_type=jnp.float32) + vec(A1_BKV)
        kv1_ref[...] = kv1.astype(jnp.bfloat16)
        kv2 = jnp.dot(mem_ref[0], a2_wkv[...], preferred_element_type=jnp.float32) + vec(A2_BKV)
        kv2_ref[...] = kv2.astype(jnp.bfloat16)

    # Query tile sliced from the resident full-tgt block (no duplicate input stream).
    q_start = pl.multiple_of(q_idx * tq, tq)
    xq = tgt_ref[0, pl.ds(q_start, tq), :]          # (TQ, D) bf16
    xq_f32 = xq.astype(jnp.float32)

    # ---- Sublayer 1: self-attention + residual + LayerNorm ----
    attn1 = _attention(xq, kv1_ref, a1_wq[...], vec(A1_BQ), a1_wo[...], vec(A1_BO),
                       ctx_ref, num_heads, dk, dkp)
    y1 = _layer_norm(xq_f32 + attn1, vec(A1_G), vec(A1_B))

    # ---- Sublayer 2: cross-attention + residual + LayerNorm ----
    attn2 = _attention(y1.astype(jnp.bfloat16), kv2_ref, a2_wq[...], vec(A2_BQ), a2_wo[...],
                       vec(A2_BO), ctx_ref, num_heads, dk, dkp)
    y2 = _layer_norm(y1 + attn2, vec(A2_G), vec(A2_B))

    # ---- Sublayer 3: feed-forward (Linear -> ReLU -> Linear) + residual + LayerNorm ----
    h = jnp.dot(y2.astype(jnp.bfloat16), ff_w1[...], preferred_element_type=jnp.float32) + vec(FF_B1)
    h = jnp.maximum(h, 0.0).astype(jnp.bfloat16)    # bf16 hidden halves VMEM / store pressure
    ffo = jnp.dot(h, ff_w2[...], preferred_element_type=jnp.float32) + vec(FF_B2)
    out_ref[0] = _layer_norm(y2 + ffo, vec(FF_G), vec(FF_B)).astype(out_ref.dtype)


# ---------------------------------------------------------------------------
# Layout plumbing (host side): pad per-head dim to 128 lanes, fuse K|V, pack small vectors.
# ---------------------------------------------------------------------------
def _pad_head_cols(w, num_heads, dk, dkp):
    # (D, H*dk) -> (D, H*dkp); head h occupies cols [h*dkp, h*dkp + dk), pad cols are zero.
    d = w.shape[0]
    w = w.reshape(d, num_heads, dk)
    w = jnp.pad(w, ((0, 0), (0, 0), (0, dkp - dk)))
    return w.reshape(d, num_heads * dkp)


def _pad_head_rows(w, num_heads, dk, dkp):
    # (H*dk, D) -> (H*dkp, D); pad rows are zero.
    d = w.shape[1]
    w = w.reshape(num_heads, dk, d)
    w = jnp.pad(w, ((0, 0), (0, dkp - dk), (0, 0)))
    return w.reshape(num_heads * dkp, d)


def _pad_head_vec(v, num_heads, dk, dkp):
    v = v.reshape(num_heads, dk)
    v = jnp.pad(v, ((0, 0), (0, dkp - dk)))
    return v.reshape(num_heads * dkp)


def _pack_vectors(vectors, align=128):
    """Pack 1-D f32 vectors into one (1, X) array with 128-aligned static offsets."""
    parts, slices, pos = [], [], 0
    for v in vectors:
        v = v.reshape(-1).astype(jnp.float32)
        n = v.shape[0]
        npad = -(-n // align) * align
        parts.append(jnp.pad(v, (0, npad - n)))
        slices.append((pos, n))
        pos += npad
    return jnp.concatenate(parts).reshape(1, pos), tuple(slices)


# ---------------------------------------------------------------------------
# Wrapper
# ---------------------------------------------------------------------------
def transformer_decoder_layer(tgt, memory, params, *, num_heads, q_tile=256):
    B, Sq, D = tgt.shape
    Sm = memory.shape[1]
    a1, a2, ff = params["attn1"], params["attn2"], params["ff"]
    hdk = a1["wq"].shape[1]
    dk = hdk // num_heads
    dkp = ((dk + 127) // 128) * 128          # lane-aligned per-head width
    hdkp = num_heads * dkp

    TQ = min(q_tile, Sq)
    assert Sq % TQ == 0, "Sq must be divisible by the query tile"
    grid = (B, Sq // TQ)

    def prep_attn(p):
        wq = _pad_head_cols(p["wq"], num_heads, dk, dkp).astype(jnp.bfloat16)
        wkv = jnp.concatenate([_pad_head_cols(p["wk"], num_heads, dk, dkp),
                               _pad_head_cols(p["wv"], num_heads, dk, dkp)],
                              axis=1).astype(jnp.bfloat16)
        wo = _pad_head_rows(p["wo"], num_heads, dk, dkp).astype(jnp.bfloat16)
        bq = _pad_head_vec(p["bq"], num_heads, dk, dkp)
        bkv = jnp.concatenate([_pad_head_vec(p["bk"], num_heads, dk, dkp),
                               _pad_head_vec(p["bv"], num_heads, dk, dkp)])
        return wq, wkv, wo, bq, bkv

    a1_wq, a1_wkv, a1_wo, a1_bq, a1_bkv = prep_attn(a1)
    a2_wq, a2_wkv, a2_wo, a2_bq, a2_bkv = prep_attn(a2)
    ff_w1 = ff["w1"].astype(jnp.bfloat16)
    ff_w2 = ff["w2"].astype(jnp.bfloat16)

    # Order must match the A1_*/A2_*/FF_* index constants.
    vecs, vec_slices = _pack_vectors([
        a1_bq, a1_bkv, a1["bo"], a1["gamma"], a1["beta"],
        a2_bq, a2_bkv, a2["bo"], a2["gamma"], a2["beta"],
        ff["b1"], ff["b2"], ff["gamma"], ff["beta"]])

    big = (a1_wq, a1_wkv, a1_wo, a2_wq, a2_wkv, a2_wo, ff_w1, ff_w2)

    kernel = functools.partial(decoder_layer_kernel, num_heads=num_heads, dk=dk,
                               dkp=dkp, tq=TQ, vec_slices=vec_slices)

    tgt_bf = tgt.astype(jnp.bfloat16)
    mem_bf = memory.astype(jnp.bfloat16)

    def build(single_buffer_invariants):
        # Grid-invariant operands (block index never changes) only need one VMEM buffer.
        def inv_spec(shape, imap):
            if single_buffer_invariants:
                return pl.BlockSpec(shape, imap, pipeline_mode=pl.Buffered(1))
            return pl.BlockSpec(shape, imap)

        in_specs = [pl.BlockSpec((1, Sq, D), lambda b, q: (b, 0, 0)),   # full tgt (self-attn K/V + q tiles)
                    pl.BlockSpec((1, Sm, D), lambda b, q: (b, 0, 0)),   # memory (cross-attn K/V)
                    inv_spec(vecs.shape, lambda b, q: (0, 0))]          # packed biases / LN params
        in_specs += [inv_spec(w.shape, lambda b, q: (0, 0)) for w in big]

        return pl.pallas_call(
            kernel,
            out_shape=jax.ShapeDtypeStruct((B, Sq, D), jnp.bfloat16),
            grid=grid,
            in_specs=in_specs,
            out_specs=pl.BlockSpec((1, TQ, D), lambda b, q: (b, q, 0)),
            scratch_shapes=[pltpu.VMEM((Sq, 2 * hdkp), jnp.bfloat16),   # self-attn K|V cache
                            pltpu.VMEM((Sm, 2 * hdkp), jnp.bfloat16),   # cross-attn K|V cache
                            pltpu.VMEM((TQ, hdkp), jnp.bfloat16)],      # per-tile head-context slab
            compiler_params=pltpu.CompilerParams(
                dimension_semantics=("parallel", "arbitrary"),          # batch -> megacore/2-TC
                vmem_limit_bytes=64 * 1024 * 1024),
        )

    args = (tgt_bf, mem_bf, vecs) + big
    try:
        return build(True)(*args)
    except Exception:
        # TODO(synk): pipeline_mode=pl.Buffered(1) not supported on this jax build; fall back
        # to default double-buffering of the invariant operands.
        return build(False)(*args)


# ---------------------------------------------------------------------------
# Deterministic parameter init (PyTorch-Linear-style uniform; weights value-quantized to bf16
# so kernel (bf16) and reference (f32) use identical weight values).
# ---------------------------------------------------------------------------
def _uniform(key, shape, fan_in):
    lim = 1.0 / (fan_in ** 0.5)
    return jax.random.uniform(key, shape, jnp.float32, -lim, lim)


def _qbf16(x):
    return x.astype(jnp.bfloat16).astype(jnp.float32)


def init_mha_params(key, num_heads, dim_model, dk):
    hdk = num_heads * dk
    ks = jax.random.split(key, 8)
    return {
        "wq": _qbf16(_uniform(ks[0], (dim_model, hdk), dim_model)),
        "bq": _uniform(ks[1], (hdk,), dim_model),
        "wk": _qbf16(_uniform(ks[2], (dim_model, hdk), dim_model)),
        "bk": _uniform(ks[3], (hdk,), dim_model),
        "wv": _qbf16(_uniform(ks[4], (dim_model, hdk), dim_model)),
        "bv": _uniform(ks[5], (hdk,), dim_model),
        "wo": _qbf16(_uniform(ks[6], (hdk, dim_model), hdk)),
        "bo": _uniform(ks[7], (dim_model,), hdk),
        "gamma": jnp.ones((dim_model,), jnp.float32),
        "beta": jnp.zeros((dim_model,), jnp.float32),
    }


def init_ff_params(key, dim_model, dim_ff):
    ks = jax.random.split(key, 4)
    return {
        "w1": _qbf16(_uniform(ks[0], (dim_model, dim_ff), dim_model)),
        "b1": _uniform(ks[1], (dim_ff,), dim_model),
        "w2": _qbf16(_uniform(ks[2], (dim_ff, dim_model), dim_ff)),
        "b2": _uniform(ks[3], (dim_model,), dim_ff),
        "gamma": jnp.ones((dim_model,), jnp.float32),
        "beta": jnp.zeros((dim_model,), jnp.float32),
    }


# ---------------------------------------------------------------------------
# Pure-JAX f32 reference (same weight values, full-precision math)
# ---------------------------------------------------------------------------
def _ln_ref(y, gamma, beta):
    mean = jnp.mean(y, axis=-1, keepdims=True)
    var = jnp.mean((y - mean) ** 2, axis=-1, keepdims=True)
    return (y - mean) / jnp.sqrt(var + LN_EPS) * gamma + beta


def _mha_ref(xq, xkv, p, num_heads):
    hdk = p["wq"].shape[1]
    dk = hdk // num_heads
    q = xq @ p["wq"] + p["bq"]
    k = xkv @ p["wk"] + p["bk"]
    v = xkv @ p["wv"] + p["bv"]
    B, Sq, _ = q.shape
    Sk = k.shape[1]
    qh = q.reshape(B, Sq, num_heads, dk)
    kh = k.reshape(B, Sk, num_heads, dk)
    vh = v.reshape(B, Sk, num_heads, dk)
    s = jnp.einsum("bqhd,bkhd->bhqk", qh, kh) / (dk ** 0.5)
    a = jax.nn.softmax(s, axis=-1)
    o = jnp.einsum("bhqk,bkhd->bqhd", a, vh).reshape(B, Sq, hdk)
    attn = o @ p["wo"] + p["bo"]
    return _ln_ref(xq + attn, p["gamma"], p["beta"])


def _ff_ref(x, p):
    h = jnp.maximum(x @ p["w1"] + p["b1"], 0.0)
    ffo = h @ p["w2"] + p["b2"]
    return _ln_ref(x + ffo, p["gamma"], p["beta"])


def reference(tgt, memory, params, num_heads):
    tgt = _mha_ref(tgt, tgt, params["attn1"], num_heads)
    tgt = _mha_ref(tgt, memory, params["attn2"], num_heads)
    return _ff_ref(tgt, params["ff"])


# ---------------------------------------------------------------------------
if __name__ == "__main__":
    # Small, decoder-consistent shapes.
    B, S_TGT, S_MEM = 2, 16, 16
    DIM_MODEL, NUM_HEADS, DIM_FF = 32, 4, 64
    DK = max(DIM_MODEL // NUM_HEADS, 1)

    root = jax.random.PRNGKey(0)
    k_tgt, k_mem, k_a1, k_a2, k_ff = jax.random.split(root, 5)

    tgt = jax.random.normal(k_tgt, (B, S_TGT, DIM_MODEL), jnp.float32)
    memory = jax.random.normal(k_mem, (B, S_MEM, DIM_MODEL), jnp.float32)

    params = {
        "attn1": init_mha_params(k_a1, NUM_HEADS, DIM_MODEL, DK),
        "attn2": init_mha_params(k_a2, NUM_HEADS, DIM_MODEL, DK),
        "ff": init_ff_params(k_ff, DIM_MODEL, DIM_FF),
    }

    # q_tile=8 -> 2 query tiles per batch, exercising the cached-KV reuse + q-tile slicing path.
    out = transformer_decoder_layer(tgt, memory, params, num_heads=NUM_HEADS, q_tile=8)
    out = jax.block_until_ready(out)

    # Reference consumes the same bf16-rounded inputs the kernel streams.
    tgt_q = tgt.astype(jnp.bfloat16).astype(jnp.float32)
    mem_q = memory.astype(jnp.bfloat16).astype(jnp.float32)
    ref = jax.block_until_ready(reference(tgt_q, mem_q, params, NUM_HEADS))

    assert out.shape == (B, S_TGT, DIM_MODEL)
    assert out.dtype == jnp.bfloat16
    # bf16 matmuls / bf16 intermediates vs. f32 reference -> loosened tolerance.
    assert jnp.allclose(out.astype(jnp.float32), ref, atol=5e-2, rtol=5e-2), \
        "Pallas output mismatch vs JAX reference"

    print("KERNEL_OK")
</pallas_src>

<mosaic_0001>
module attributes {stable_mosaic.version = 11 : i64} {
  func.func @decoder_layer_kernel(%arg0: i32, %arg1: i32, %arg2: memref<1x16x32xbf16, #tpu.memory_space<vmem>>, %arg3: memref<1x16x32xbf16, #tpu.memory_space<vmem>>, %arg4: memref<1x4352xf32, #tpu.memory_space<vmem>>, %arg5: memref<32x512xbf16, #tpu.memory_space<vmem>>, %arg6: memref<32x1024xbf16, #tpu.memory_space<vmem>>, %arg7: memref<512x32xbf16, #tpu.memory_space<vmem>>, %arg8: memref<32x512xbf16, #tpu.memory_space<vmem>>, %arg9: memref<32x1024xbf16, #tpu.memory_space<vmem>>, %arg10: memref<512x32xbf16, #tpu.memory_space<vmem>>, %arg11: memref<32x64xbf16, #tpu.memory_space<vmem>>, %arg12: memref<64x32xbf16, #tpu.memory_space<vmem>>, %arg13: memref<1x8x32xbf16, #tpu.memory_space<vmem>>, %arg14: memref<16x1024xbf16, #tpu.memory_space<vmem>>, %arg15: memref<16x1024xbf16, #tpu.memory_space<vmem>>, %arg16: memref<8x512xbf16, #tpu.memory_space<vmem>>) attributes {dimension_semantics = [#tpu.dimension_semantics<parallel>, #tpu.dimension_semantics<arbitrary>], iteration_bounds = array<i64: 2, 2>, scalar_prefetch = 0 : i64, scratch_operands = 3 : i64, tpu.core_type = #tpu.core_type<tc>, window_params = [{transform_indices = @transform_0, window_bounds = array<i64: 1, 16, 32>}, {transform_indices = @transform_1, window_bounds = array<i64: 1, 16, 32>}, {pipeline_mode = #tpu.pipeline_mode<synchronous>, transform_indices = @transform_2, window_bounds = array<i64: 1, 4352>}, {pipeline_mode = #tpu.pipeline_mode<synchronous>, transform_indices = @transform_3, window_bounds = array<i64: 32, 512>}, {pipeline_mode = #tpu.pipeline_mode<synchronous>, transform_indices = @transform_4, window_bounds = array<i64: 32, 1024>}, {pipeline_mode = #tpu.pipeline_mode<synchronous>, transform_indices = @transform_5, window_bounds = array<i64: 512, 32>}, {pipeline_mode = #tpu.pipeline_mode<synchronous>, transform_indices = @transform_6, window_bounds = array<i64: 32, 512>}, {pipeline_mode = #tpu.pipeline_mode<synchronous>, transform_indices = @transform_7, window_bounds = array<i64: 32, 1024>}, {pipeline_mode = #tpu.pipeline_mode<synchronous>, transform_indices = @transform_8, window_bounds = array<i64: 512, 32>}, {pipeline_mode = #tpu.pipeline_mode<synchronous>, transform_indices = @transform_9, window_bounds = array<i64: 32, 64>}, {pipeline_mode = #tpu.pipeline_mode<synchronous>, transform_indices = @transform_10, window_bounds = array<i64: 64, 32>}, {transform_indices = @transform_11, window_bounds = array<i64: 1, 8, 32>}]} {
    %c0_i32 = arith.constant 0 : i32
    %0 = arith.cmpi eq, %arg1, %c0_i32 : i32
    %1 = arith.extui %0 : i1 to i32
    %c0_i32_0 = arith.constant 0 : i32
    %2 = arith.cmpi ne, %1, %c0_i32_0 : i32
    scf.if %2 {
      %c0_136 = arith.constant 0 : index
      %c0_137 = arith.constant 0 : index
      %c0_138 = arith.constant 0 : index
      %287 = vector.load %arg2[%c0_136, %c0_137, %c0_138] : memref<1x16x32xbf16, #tpu.memory_space<vmem>>, vector<1x16x32xbf16>
      %288 = vector.shape_cast %287 : vector<1x16x32xbf16> to vector<16x32xbf16>
      %c0_139 = arith.constant 0 : index
      %c0_140 = arith.constant 0 : index
      %289 = vector.load %arg6[%c0_139, %c0_140] : memref<32x1024xbf16, #tpu.memory_space<vmem>>, vector<32x1024xbf16>
      %cst_141 = arith.constant dense<0.000000e+00> : vector<16x1024xf32>
      %290 = tpu.matmul %288, %289, %cst_141 {dimension_numbers = #tpu.dot_dimension_numbers<[1], [0], [0], [1], [0, 0, 1, 1], [], []>} : vector<16x32xbf16>, vector<32x1024xbf16>, vector<16x1024xf32> -> vector<16x1024xf32>
      %c0_142 = arith.constant 0 : index
      %c512_143 = arith.constant 512 : index
      %291 = vector.load %arg4[%c0_142, %c512_143] : memref<1x4352xf32, #tpu.memory_space<vmem>>, vector<1x1024xf32>
      %292 = vector.broadcast %291 : vector<1x1024xf32> to vector<16x1024xf32>
      %293 = arith.addf %290, %292 : vector<16x1024xf32>
      %294 = arith.truncf %293 : vector<16x1024xf32> to vector<16x1024xbf16>
      %c0_144 = arith.constant 0 : index
      %c0_145 = arith.constant 0 : index
      %295 = vector.load %arg14[%c0_144, %c0_145] : memref<16x1024xbf16, #tpu.memory_space<vmem>>, vector<16x1024xbf16>
      tpu.vector_store %arg14[%c0_144, %c0_145], %294 {strides = array<i32>} : memref<16x1024xbf16, #tpu.memory_space<vmem>>, vector<16x1024xbf16>,
      %c0_146 = arith.constant 0 : index
      %c0_147 = arith.constant 0 : index
      %c0_148 = arith.constant 0 : index
      %296 = vector.load %arg3[%c0_146, %c0_147, %c0_148] : memref<1x16x32xbf16, #tpu.memory_space<vmem>>, vector<1x16x32xbf16>
      %297 = vector.shape_cast %296 : vector<1x16x32xbf16> to vector<16x32xbf16>
      %c0_149 = arith.constant 0 : index
      %c0_150 = arith.constant 0 : index
      %298 = vector.load %arg9[%c0_149, %c0_150] : memref<32x1024xbf16, #tpu.memory_space<vmem>>, vector<32x1024xbf16>
      %cst_151 = arith.constant dense<0.000000e+00> : vector<16x1024xf32>
      %299 = tpu.matmul %297, %298, %cst_151 {dimension_numbers = #tpu.dot_dimension_numbers<[1], [0], [0], [1], [0, 0, 1, 1], [], []>} : vector<16x32xbf16>, vector<32x1024xbf16>, vector<16x1024xf32> -> vector<16x1024xf32>
      %c0_152 = arith.constant 0 : index
      %c2432 = arith.constant 2432 : index
      %300 = vector.load %arg4[%c0_152, %c2432] : memref<1x4352xf32, #tpu.memory_space<vmem>>, vector<1x1024xf32>
      %301 = vector.broadcast %300 : vector<1x1024xf32> to vector<16x1024xf32>
      %302 = arith.addf %299, %301 : vector<16x1024xf32>
      %303 = arith.truncf %302 : vector<16x1024xf32> to vector<16x1024xbf16>
      %c0_153 = arith.constant 0 : index
      %c0_154 = arith.constant 0 : index
      %304 = vector.load %arg15[%c0_153, %c0_154] : memref<16x1024xbf16, #tpu.memory_space<vmem>>, vector<16x1024xbf16>
      tpu.vector_store %arg15[%c0_153, %c0_154], %303 {strides = array<i32>} : memref<16x1024xbf16, #tpu.memory_space<vmem>>, vector<16x1024xbf16>,
    } else {
    }
    %c8_i32 = arith.constant 8 : i32
    %3 = arith.muli %arg1, %c8_i32 : i32
    %4 = tpu.assume_multiple %3, 8 : i32
    %c0 = arith.constant 0 : index
    %5 = arith.index_cast %4 : i32 to index
    %c0_1 = arith.constant 0 : index
    %6 = vector.load %arg2[%c0, %5, %c0_1] : memref<1x16x32xbf16, #tpu.memory_space<vmem>>, vector<1x8x32xbf16>
    %7 = vector.shape_cast %6 : vector<1x8x32xbf16> to vector<8x32xbf16>
    %8 = arith.extf %7 : vector<8x32xbf16> to vector<8x32xf32>
    %c0_2 = arith.constant 0 : index
    %c0_3 = arith.constant 0 : index
    %9 = vector.load %arg5[%c0_2, %c0_3] : memref<32x512xbf16, #tpu.memory_space<vmem>>, vector<32x512xbf16>
    %c0_4 = arith.constant 0 : index
    %c0_5 = arith.constant 0 : index
    %10 = vector.load %arg4[%c0_4, %c0_5] : memref<1x4352xf32, #tpu.memory_space<vmem>>, vector<1x512xf32>
    %c0_6 = arith.constant 0 : index
    %c0_7 = arith.constant 0 : index
    %11 = vector.load %arg7[%c0_6, %c0_7] : memref<512x32xbf16, #tpu.memory_space<vmem>>, vector<512x32xbf16>
    %c0_8 = arith.constant 0 : index
    %c1536 = arith.constant 1536 : index
    %12 = vector.load %arg4[%c0_8, %c1536] : memref<1x4352xf32, #tpu.memory_space<vmem>>, vector<1x32xf32>
    %cst = arith.constant dense<0.000000e+00> : vector<8x512xf32>
    %13 = tpu.matmul %7, %9, %cst {dimension_numbers = #tpu.dot_dimension_numbers<[1], [0], [0], [1], [0, 0, 1, 1], [], []>} : vector<8x32xbf16>, vector<32x512xbf16>, vector<8x512xf32> -> vector<8x512xf32>
    %14 = vector.broadcast %10 : vector<1x512xf32> to vector<8x512xf32>
    %15 = arith.addf %13, %14 : vector<8x512xf32>
    %16 = vector.extract_strided_slice %15 {offsets = [0, 0], sizes = [8, 128], strides = [1, 1]} : vector<8x512xf32> to vector<8x128xf32>
    %17 = arith.truncf %16 : vector<8x128xf32> to vector<8x128xbf16>
    %c0_9 = arith.constant 0 : index
    %c0_10 = arith.constant 0 : index
    %18 = vector.load %arg14[%c0_9, %c0_10] : memref<16x1024xbf16, #tpu.memory_space<vmem>>, vector<16x128xbf16>
    %c0_11 = arith.constant 0 : index
    %c512 = arith.constant 512 : index
    %19 = vector.load %arg14[%c0_11, %c512] : memref<16x1024xbf16, #tpu.memory_space<vmem>>, vector<16x128xbf16>
    %cst_12 = arith.constant dense<0.000000e+00> : vector<8x16xf32>
    %20 = tpu.matmul %17, %18, %cst_12 {dimension_numbers = #tpu.dot_dimension_numbers<[1], [1], [0], [0], [0, 0, 1, 0], [], []>} : vector<8x128xbf16>, vector<16x128xbf16>, vector<8x16xf32> -> vector<8x16xf32>
    %cst_13 = arith.constant 0.353553385 : f32
    %21 = vector.broadcast %cst_13 : f32 to vector<8x16xf32>
    %22 = arith.mulf %20, %21 : vector<8x16xf32>
    %cst_14 = arith.constant dense<0xFF800000> : vector<8xf32>
    %23 = vector.multi_reduction <maximumf>, %22, %cst_14 [1] : vector<8x16xf32> to vector<8xf32>
    %24 = vector.shape_cast %23 : vector<8xf32> to vector<8x1xf32>
    %25 = vector.broadcast %24 : vector<8x1xf32> to vector<8x16xf32>
    %26 = arith.subf %22, %25 : vector<8x16xf32>
    %27 = math.exp %26 : vector<8x16xf32>
    %cst_15 = arith.constant dense<0.000000e+00> : vector<8xf32>
    %28 = vector.multi_reduction <add>, %27, %cst_15 [1] : vector<8x16xf32> to vector<8xf32>
    %29 = vector.shape_cast %28 : vector<8xf32> to vector<8x1xf32>
    %30 = arith.truncf %27 : vector<8x16xf32> to vector<8x16xbf16>
    %cst_16 = arith.constant dense<0.000000e+00> : vector<8x128xf32>
    %31 = tpu.matmul %30, %19, %cst_16 {dimension_numbers = #tpu.dot_dimension_numbers<[1], [0], [0], [1], [0, 0, 1, 1], [], []>} : vector<8x16xbf16>, vector<16x128xbf16>, vector<8x128xf32> -> vector<8x128xf32>
    %32 = tpu.reciprocal %29 : vector<8x1xf32> -> vector<8x1xf32>
    %33 = vector.broadcast %32 : vector<8x1xf32> to vector<8x128xf32>
    %34 = arith.mulf %31, %33 : vector<8x128xf32>
    %35 = arith.truncf %34 : vector<8x128xf32> to vector<8x128xbf16>
    %c0_17 = arith.constant 0 : index
    %c0_18 = arith.constant 0 : index
    %36 = vector.load %arg16[%c0_17, %c0_18] : memref<8x512xbf16, #tpu.memory_space<vmem>>, vector<8x128xbf16>
    tpu.vector_store %arg16[%c0_17, %c0_18], %35 {strides = array<i32>} : memref<8x512xbf16, #tpu.memory_space<vmem>>, vector<8x128xbf16>,
    %37 = vector.extract_strided_slice %15 {offsets = [0, 128], sizes = [8, 128], strides = [1, 1]} : vector<8x512xf32> to vector<8x128xf32>
    %38 = arith.truncf %37 : vector<8x128xf32> to vector<8x128xbf16>
    %c0_19 = arith.constant 0 : index
    %c128 = arith.constant 128 : index
    %39 = vector.load %arg14[%c0_19, %c128] : memref<16x1024xbf16, #tpu.memory_space<vmem>>, vector<16x128xbf16>
    %c0_20 = arith.constant 0 : index
    %c640 = arith.constant 640 : index
    %40 = vector.load %arg14[%c0_20, %c640] : memref<16x1024xbf16, #tpu.memory_space<vmem>>, vector<16x128xbf16>
    %cst_21 = arith.constant dense<0.000000e+00> : vector<8x16xf32>
    %41 = tpu.matmul %38, %39, %cst_21 {dimension_numbers = #tpu.dot_dimension_numbers<[1], [1], [0], [0], [0, 0, 1, 0], [], []>} : vector<8x128xbf16>, vector<16x128xbf16>, vector<8x16xf32> -> vector<8x16xf32>
    %cst_22 = arith.constant 0.353553385 : f32
    %42 = vector.broadcast %cst_22 : f32 to vector<8x16xf32>
    %43 = arith.mulf %41, %42 : vector<8x16xf32>
    %cst_23 = arith.constant dense<0xFF800000> : vector<8xf32>
    %44 = vector.multi_reduction <maximumf>, %43, %cst_23 [1] : vector<8x16xf32> to vector<8xf32>
    %45 = vector.shape_cast %44 : vector<8xf32> to vector<8x1xf32>
    %46 = vector.broadcast %45 : vector<8x1xf32> to vector<8x16xf32>
    %47 = arith.subf %43, %46 : vector<8x16xf32>
    %48 = math.exp %47 : vector<8x16xf32>
    %cst_24 = arith.constant dense<0.000000e+00> : vector<8xf32>
    %49 = vector.multi_reduction <add>, %48, %cst_24 [1] : vector<8x16xf32> to vector<8xf32>
    %50 = vector.shape_cast %49 : vector<8xf32> to vector<8x1xf32>
    %51 = arith.truncf %48 : vector<8x16xf32> to vector<8x16xbf16>
    %cst_25 = arith.constant dense<0.000000e+00> : vector<8x128xf32>
    %52 = tpu.matmul %51, %40, %cst_25 {dimension_numbers = #tpu.dot_dimension_numbers<[1], [0], [0], [1], [0, 0, 1, 1], [], []>} : vector<8x16xbf16>, vector<16x128xbf16>, vector<8x128xf32> -> vector<8x128xf32>
    %53 = tpu.reciprocal %50 : vector<8x1xf32> -> vector<8x1xf32>
    %54 = vector.broadcast %53 : vector<8x1xf32> to vector<8x128xf32>
    %55 = arith.mulf %52, %54 : vector<8x128xf32>
    %56 = arith.truncf %55 : vector<8x128xf32> to vector<8x128xbf16>
    %c0_26 = arith.constant 0 : index
    %c128_27 = arith.constant 128 : index
    %57 = vector.load %arg16[%c0_26, %c128_27] : memref<8x512xbf16, #tpu.memory_space<vmem>>, vector<8x128xbf16>
    tpu.vector_store %arg16[%c0_26, %c128_27], %56 {strides = array<i32>} : memref<8x512xbf16, #tpu.memory_space<vmem>>, vector<8x128xbf16>,
    %58 = vector.extract_strided_slice %15 {offsets = [0, 256], sizes = [8, 128], strides = [1, 1]} : vector<8x512xf32> to vector<8x128xf32>
    %59 = arith.truncf %58 : vector<8x128xf32> to vector<8x128xbf16>
    %c0_28 = arith.constant 0 : index
    %c256 = arith.constant 256 : index
    %60 = vector.load %arg14[%c0_28, %c256] : memref<16x1024xbf16, #tpu.memory_space<vmem>>, vector<16x128xbf16>
    %c0_29 = arith.constant 0 : index
    %c768 = arith.constant 768 : index
    %61 = vector.load %arg14[%c0_29, %c768] : memref<16x1024xbf16, #tpu.memory_space<vmem>>, vector<16x128xbf16>
    %cst_30 = arith.constant dense<0.000000e+00> : vector<8x16xf32>
    %62 = tpu.matmul %59, %60, %cst_30 {dimension_numbers = #tpu.dot_dimension_numbers<[1], [1], [0], [0], [0, 0, 1, 0], [], []>} : vector<8x128xbf16>, vector<16x128xbf16>, vector<8x16xf32> -> vector<8x16xf32>
    %cst_31 = arith.constant 0.353553385 : f32
    %63 = vector.broadcast %cst_31 : f32 to vector<8x16xf32>
    %64 = arith.mulf %62, %63 : vector<8x16xf32>
    %cst_32 = arith.constant dense<0xFF800000> : vector<8xf32>
    %65 = vector.multi_reduction <maximumf>, %64, %cst_32 [1] : vector<8x16xf32> to vector<8xf32>
    %66 = vector.shape_cast %65 : vector<8xf32> to vector<8x1xf32>
    %67 = vector.broadcast %66 : vector<8x1xf32> to vector<8x16xf32>
    %68 = arith.subf %64, %67 : vector<8x16xf32>
    %69 = math.exp %68 : vector<8x16xf32>
    %cst_33 = arith.constant dense<0.000000e+00> : vector<8xf32>
    %70 = vector.multi_reduction <add>, %69, %cst_33 [1] : vector<8x16xf32> to vector<8xf32>
    %71 = vector.shape_cast %70 : vector<8xf32> to vector<8x1xf32>
    %72 = arith.truncf %69 : vector<8x16xf32> to vector<8x16xbf16>
    %cst_34 = arith.constant dense<0.000000e+00> : vector<8x128xf32>
    %73 = tpu.matmul %72, %61, %cst_34 {dimension_numbers = #tpu.dot_dimension_numbers<[1], [0], [0], [1], [0, 0, 1, 1], [], []>} : vector<8x16xbf16>, vector<16x128xbf16>, vector<8x128xf32> -> vector<8x128xf32>
    %74 = tpu.reciprocal %71 : vector<8x1xf32> -> vector<8x1xf32>
    %75 = vector.broadcast %74 : vector<8x1xf32> to vector<8x128xf32>
    %76 = arith.mulf %73, %75 : vector<8x128xf32>
    %77 = arith.truncf %76 : vector<8x128xf32> to vector<8x128xbf16>
    %c0_35 = arith.constant 0 : index
    %c256_36 = arith.constant 256 : index
    %78 = vector.load %arg16[%c0_35, %c256_36] : memref<8x512xbf16, #tpu.memory_space<vmem>>, vector<8x128xbf16>
    tpu.vector_store %arg16[%c0_35, %c256_36], %77 {strides = array<i32>} : memref<8x512xbf16, #tpu.memory_space<vmem>>, vector<8x128xbf16>,
    %79 = vector.extract_strided_slice %15 {offsets = [0, 384], sizes = [8, 128], strides = [1, 1]} : vector<8x512xf32> to vector<8x128xf32>
    %80 = arith.truncf %79 : vector<8x128xf32> to vector<8x128xbf16>
    %c0_37 = arith.constant 0 : index
    %c384 = arith.constant 384 : index
    %81 = vector.load %arg14[%c0_37, %c384] : memref<16x1024xbf16, #tpu.memory_space<vmem>>, vector<16x128xbf16>
    %c0_38 = arith.constant 0 : index
    %c896 = arith.constant 896 : index
    %82 = vector.load %arg14[%c0_38, %c896] : memref<16x1024xbf16, #tpu.memory_space<vmem>>, vector<16x128xbf16>
    %cst_39 = arith.constant dense<0.000000e+00> : vector<8x16xf32>
    %83 = tpu.matmul %80, %81, %cst_39 {dimension_numbers = #tpu.dot_dimension_numbers<[1], [1], [0], [0], [0, 0, 1, 0], [], []>} : vector<8x128xbf16>, vector<16x128xbf16>, vector<8x16xf32> -> vector<8x16xf32>
    %cst_40 = arith.constant 0.353553385 : f32
    %84 = vector.broadcast %cst_40 : f32 to vector<8x16xf32>
    %85 = arith.mulf %83, %84 : vector<8x16xf32>
    %cst_41 = arith.constant dense<0xFF800000> : vector<8xf32>
    %86 = vector.multi_reduction <maximumf>, %85, %cst_41 [1] : vector<8x16xf32> to vector<8xf32>
    %87 = vector.shape_cast %86 : vector<8xf32> to vector<8x1xf32>
    %88 = vector.broadcast %87 : vector<8x1xf32> to vector<8x16xf32>
    %89 = arith.subf %85, %88 : vector<8x16xf32>
    %90 = math.exp %89 : vector<8x16xf32>
    %cst_42 = arith.constant dense<0.000000e+00> : vector<8xf32>
    %91 = vector.multi_reduction <add>, %90, %cst_42 [1] : vector<8x16xf32> to vector<8xf32>
    %92 = vector.shape_cast %91 : vector<8xf32> to vector<8x1xf32>
    %93 = arith.truncf %90 : vector<8x16xf32> to vector<8x16xbf16>
    %cst_43 = arith.constant dense<0.000000e+00> : vector<8x128xf32>
    %94 = tpu.matmul %93, %82, %cst_43 {dimension_numbers = #tpu.dot_dimension_numbers<[1], [0], [0], [1], [0, 0, 1, 1], [], []>} : vector<8x16xbf16>, vector<16x128xbf16>, vector<8x128xf32> -> vector<8x128xf32>
    %95 = tpu.reciprocal %92 : vector<8x1xf32> -> vector<8x1xf32>
    %96 = vector.broadcast %95 : vector<8x1xf32> to vector<8x128xf32>
    %97 = arith.mulf %94, %96 : vector<8x128xf32>
    %98 = arith.truncf %97 : vector<8x128xf32> to vector<8x128xbf16>
    %c0_44 = arith.constant 0 : index
    %c384_45 = arith.constant 384 : index
    %99 = vector.load %arg16[%c0_44, %c384_45] : memref<8x512xbf16, #tpu.memory_space<vmem>>, vector<8x128xbf16>
    tpu.vector_store %arg16[%c0_44, %c384_45], %98 {strides = array<i32>} : memref<8x512xbf16, #tpu.memory_space<vmem>>, vector<8x128xbf16>,
    %c0_46 = arith.constant 0 : index
    %c0_47 = arith.constant 0 : index
    %100 = vector.load %arg16[%c0_46, %c0_47] : memref<8x512xbf16, #tpu.memory_space<vmem>>, vector<8x512xbf16>
    %cst_48 = arith.constant dense<0.000000e+00> : vector<8x32xf32>
    %101 = tpu.matmul %100, %11, %cst_48 {dimension_numbers = #tpu.dot_dimension_numbers<[1], [0], [0], [1], [0, 0, 1, 1], [], []>} : vector<8x512xbf16>, vector<512x32xbf16>, vector<8x32xf32> -> vector<8x32xf32>
    %102 = vector.broadcast %12 : vector<1x32xf32> to vector<8x32xf32>
    %103 = arith.addf %101, %102 : vector<8x32xf32>
    %104 = arith.addf %8, %103 : vector<8x32xf32>
    %c0_49 = arith.constant 0 : index
    %c1664 = arith.constant 1664 : index
    %105 = vector.load %arg4[%c0_49, %c1664] : memref<1x4352xf32, #tpu.memory_space<vmem>>, vector<1x32xf32>
    %c0_50 = arith.constant 0 : index
    %c1792 = arith.constant 1792 : index
    %106 = vector.load %arg4[%c0_50, %c1792] : memref<1x4352xf32, #tpu.memory_space<vmem>>, vector<1x32xf32>
    %cst_51 = arith.constant dense<0.000000e+00> : vector<8xf32>
    %107 = vector.multi_reduction <add>, %104, %cst_51 [1] : vector<8x32xf32> to vector<8xf32>
    %108 = vector.shape_cast %107 : vector<8xf32> to vector<8x1xf32>
    %cst_52 = arith.constant 3.200000e+01 : f32
    %109 = vector.broadcast %cst_52 : f32 to vector<8x1xf32>
    %110 = arith.divf %108, %109 : vector<8x1xf32>
    %111 = vector.broadcast %110 : vector<8x1xf32> to vector<8x32xf32>
    %112 = arith.subf %104, %111 : vector<8x32xf32>
    %113 = arith.mulf %112, %112 : vector<8x32xf32>
    %cst_53 = arith.constant dense<0.000000e+00> : vector<8xf32>
    %114 = vector.multi_reduction <add>, %113, %cst_53 [1] : vector<8x32xf32> to vector<8xf32>
    %115 = vector.shape_cast %114 : vector<8xf32> to vector<8x1xf32>
    %cst_54 = arith.constant 3.200000e+01 : f32
    %116 = vector.broadcast %cst_54 : f32 to vector<8x1xf32>
    %117 = arith.divf %115, %116 : vector<8x1xf32>
    %cst_55 = arith.constant 9.99999974E-6 : f32
    %118 = vector.broadcast %cst_55 : f32 to vector<8x1xf32>
    %119 = arith.addf %117, %118 : vector<8x1xf32>
    %120 = math.rsqrt %119 : vector<8x1xf32>
    %121 = vector.broadcast %120 : vector<8x1xf32> to vector<8x32xf32>
    %122 = arith.mulf %112, %121 : vector<8x32xf32>
    %123 = vector.broadcast %105 : vector<1x32xf32> to vector<8x32xf32>
    %124 = arith.mulf %122, %123 : vector<8x32xf32>
    %125 = vector.broadcast %106 : vector<1x32xf32> to vector<8x32xf32>
    %126 = arith.addf %124, %125 : vector<8x32xf32>
    %127 = arith.truncf %126 : vector<8x32xf32> to vector<8x32xbf16>
    %c0_56 = arith.constant 0 : index
    %c0_57 = arith.constant 0 : index
    %128 = vector.load %arg8[%c0_56, %c0_57] : memref<32x512xbf16, #tpu.memory_space<vmem>>, vector<32x512xbf16>
    %c0_58 = arith.constant 0 : index
    %c1920 = arith.constant 1920 : index
    %129 = vector.load %arg4[%c0_58, %c1920] : memref<1x4352xf32, #tpu.memory_space<vmem>>, vector<1x512xf32>
    %c0_59 = arith.constant 0 : index
    %c0_60 = arith.constant 0 : index
    %130 = vector.load %arg10[%c0_59, %c0_60] : memref<512x32xbf16, #tpu.memory_space<vmem>>, vector<512x32xbf16>
    %c0_61 = arith.constant 0 : index
    %c3456 = arith.constant 3456 : index
    %131 = vector.load %arg4[%c0_61, %c3456] : memref<1x4352xf32, #tpu.memory_space<vmem>>, vector<1x32xf32>
    %cst_62 = arith.constant dense<0.000000e+00> : vector<8x512xf32>
    %132 = tpu.matmul %127, %128, %cst_62 {dimension_numbers = #tpu.dot_dimension_numbers<[1], [0], [0], [1], [0, 0, 1, 1], [], []>} : vector<8x32xbf16>, vector<32x512xbf16>, vector<8x512xf32> -> vector<8x512xf32>
    %133 = vector.broadcast %129 : vector<1x512xf32> to vector<8x512xf32>
    %134 = arith.addf %132, %133 : vector<8x512xf32>
    %135 = vector.extract_strided_slice %134 {offsets = [0, 0], sizes = [8, 128], strides = [1, 1]} : vector<8x512xf32> to vector<8x128xf32>
    %136 = arith.truncf %135 : vector<8x128xf32> to vector<8x128xbf16>
    %c0_63 = arith.constant 0 : index
    %c0_64 = arith.constant 0 : index
    %137 = vector.load %arg15[%c0_63, %c0_64] : memref<16x1024xbf16, #tpu.memory_space<vmem>>, vector<16x128xbf16>
    %c0_65 = arith.constant 0 : index
    %c512_66 = arith.constant 512 : index
    %138 = vector.load %arg15[%c0_65, %c512_66] : memref<16x1024xbf16, #tpu.memory_space<vmem>>, vector<16x128xbf16>
    %cst_67 = arith.constant dense<0.000000e+00> : vector<8x16xf32>
    %139 = tpu.matmul %136, %137, %cst_67 {dimension_numbers = #tpu.dot_dimension_numbers<[1], [1], [0], [0], [0, 0, 1, 0], [], []>} : vector<8x128xbf16>, vector<16x128xbf16>, vector<8x16xf32> -> vector<8x16xf32>
    %cst_68 = arith.constant 0.353553385 : f32
    %140 = vector.broadcast %cst_68 : f32 to vector<8x16xf32>
    %141 = arith.mulf %139, %140 : vector<8x16xf32>
    %cst_69 = arith.constant dense<0xFF800000> : vector<8xf32>
    %142 = vector.multi_reduction <maximumf>, %141, %cst_69 [1] : vector<8x16xf32> to vector<8xf32>
    %143 = vector.shape_cast %142 : vector<8xf32> to vector<8x1xf32>
    %144 = vector.broadcast %143 : vector<8x1xf32> to vector<8x16xf32>
    %145 = arith.subf %141, %144 : vector<8x16xf32>
    %146 = math.exp %145 : vector<8x16xf32>
    %cst_70 = arith.constant dense<0.000000e+00> : vector<8xf32>
    %147 = vector.multi_reduction <add>, %146, %cst_70 [1] : vector<8x16xf32> to vector<8xf32>
    %148 = vector.shape_cast %147 : vector<8xf32> to vector<8x1xf32>
    %149 = arith.truncf %146 : vector<8x16xf32> to vector<8x16xbf16>
    %cst_71 = arith.constant dense<0.000000e+00> : vector<8x128xf32>
    %150 = tpu.matmul %149, %138, %cst_71 {dimension_numbers = #tpu.dot_dimension_numbers<[1], [0], [0], [1], [0, 0, 1, 1], [], []>} : vector<8x16xbf16>, vector<16x128xbf16>, vector<8x128xf32> -> vector<8x128xf32>
    %151 = tpu.reciprocal %148 : vector<8x1xf32> -> vector<8x1xf32>
    %152 = vector.broadcast %151 : vector<8x1xf32> to vector<8x128xf32>
    %153 = arith.mulf %150, %152 : vector<8x128xf32>
    %154 = arith.truncf %153 : vector<8x128xf32> to vector<8x128xbf16>
    %c0_72 = arith.constant 0 : index
    %c0_73 = arith.constant 0 : index
    %155 = vector.load %arg16[%c0_72, %c0_73] : memref<8x512xbf16, #tpu.memory_space<vmem>>, vector<8x128xbf16>
    tpu.vector_store %arg16[%c0_72, %c0_73], %154 {strides = array<i32>} : memref<8x512xbf16, #tpu.memory_space<vmem>>, vector<8x128xbf16>,
    %156 = vector.extract_strided_slice %134 {offsets = [0, 128], sizes = [8, 128], strides = [1, 1]} : vector<8x512xf32> to vector<8x128xf32>
    %157 = arith.truncf %156 : vector<8x128xf32> to vector<8x128xbf16>
    %c0_74 = arith.constant 0 : index
    %c128_75 = arith.constant 128 : index
    %158 = vector.load %arg15[%c0_74, %c128_75] : memref<16x1024xbf16, #tpu.memory_space<vmem>>, vector<16x128xbf16>
    %c0_76 = arith.constant 0 : index
    %c640_77 = arith.constant 640 : index
    %159 = vector.load %arg15[%c0_76, %c640_77] : memref<16x1024xbf16, #tpu.memory_space<vmem>>, vector<16x128xbf16>
    %cst_78 = arith.constant dense<0.000000e+00> : vector<8x16xf32>
    %160 = tpu.matmul %157, %158, %cst_78 {dimension_numbers = #tpu.dot_dimension_numbers<[1], [1], [0], [0], [0, 0, 1, 0], [], []>} : vector<8x128xbf16>, vector<16x128xbf16>, vector<8x16xf32> -> vector<8x16xf32>
    %cst_79 = arith.constant 0.353553385 : f32
    %161 = vector.broadcast %cst_79 : f32 to vector<8x16xf32>
    %162 = arith.mulf %160, %161 : vector<8x16xf32>
    %cst_80 = arith.constant dense<0xFF800000> : vector<8xf32>
    %163 = vector.multi_reduction <maximumf>, %162, %cst_80 [1] : vector<8x16xf32> to vector<8xf32>
    %164 = vector.shape_cast %163 : vector<8xf32> to vector<8x1xf32>
    %165 = vector.broadcast %164 : vector<8x1xf32> to vector<8x16xf32>
    %166 = arith.subf %162, %165 : vector<8x16xf32>
    %167 = math.exp %166 : vector<8x16xf32>
    %cst_81 = arith.constant dense<0.000000e+00> : vector<8xf32>
    %168 = vector.multi_reduction <add>, %167, %cst_81 [1] : vector<8x16xf32> to vector<8xf32>
    %169 = vector.shape_cast %168 : vector<8xf32> to vector<8x1xf32>
    %170 = arith.truncf %167 : vector<8x16xf32> to vector<8x16xbf16>
    %cst_82 = arith.constant dense<0.000000e+00> : vector<8x128xf32>
    %171 = tpu.matmul %170, %159, %cst_82 {dimension_numbers = #tpu.dot_dimension_numbers<[1], [0], [0], [1], [0, 0, 1, 1], [], []>} : vector<8x16xbf16>, vector<16x128xbf16>, vector<8x128xf32> -> vector<8x128xf32>
    %172 = tpu.reciprocal %169 : vector<8x1xf32> -> vector<8x1xf32>
    %173 = vector.broadcast %172 : vector<8x1xf32> to vector<8x128xf32>
    %174 = arith.mulf %171, %173 : vector<8x128xf32>
    %175 = arith.truncf %174 : vector<8x128xf32> to vector<8x128xbf16>
    %c0_83 = arith.constant 0 : index
    %c128_84 = arith.constant 128 : index
    %176 = vector.load %arg16[%c0_83, %c128_84] : memref<8x512xbf16, #tpu.memory_space<vmem>>, vector<8x128xbf16>
    tpu.vector_store %arg16[%c0_83, %c128_84], %175 {strides = array<i32>} : memref<8x512xbf16, #tpu.memory_space<vmem>>, vector<8x128xbf16>,
    %177 = vector.extract_strided_slice %134 {offsets = [0, 256], sizes = [8, 128], strides = [1, 1]} : vector<8x512xf32> to vector<8x128xf32>
    %178 = arith.truncf %177 : vector<8x128xf32> to vector<8x128xbf16>
    %c0_85 = arith.constant 0 : index
    %c256_86 = arith.constant 256 : index
    %179 = vector.load %arg15[%c0_85, %c256_86] : memref<16x1024xbf16, #tpu.memory_space<vmem>>, vector<16x128xbf16>
    %c0_87 = arith.constant 0 : index
    %c768_88 = arith.constant 768 : index
    %180 = vector.load %arg15[%c0_87, %c768_88] : memref<16x1024xbf16, #tpu.memory_space<vmem>>, vector<16x128xbf16>
    %cst_89 = arith.constant dense<0.000000e+00> : vector<8x16xf32>
    %181 = tpu.matmul %178, %179, %cst_89 {dimension_numbers = #tpu.dot_dimension_numbers<[1], [1], [0], [0], [0, 0, 1, 0], [], []>} : vector<8x128xbf16>, vector<16x128xbf16>, vector<8x16xf32> -> vector<8x16xf32>
    %cst_90 = arith.constant 0.353553385 : f32
    %182 = vector.broadcast %cst_90 : f32 to vector<8x16xf32>
    %183 = arith.mulf %181, %182 : vector<8x16xf32>
    %cst_91 = arith.constant dense<0xFF800000> : vector<8xf32>
    %184 = vector.multi_reduction <maximumf>, %183, %cst_91 [1] : vector<8x16xf32> to vector<8xf32>
    %185 = vector.shape_cast %184 : vector<8xf32> to vector<8x1xf32>
    %186 = vector.broadcast %185 : vector<8x1xf32> to vector<8x16xf32>
    %187 = arith.subf %183, %186 : vector<8x16xf32>
    %188 = math.exp %187 : vector<8x16xf32>
    %cst_92 = arith.constant dense<0.000000e+00> : vector<8xf32>
    %189 = vector.multi_reduction <add>, %188, %cst_92 [1] : vector<8x16xf32> to vector<8xf32>
    %190 = vector.shape_cast %189 : vector<8xf32> to vector<8x1xf32>
    %191 = arith.truncf %188 : vector<8x16xf32> to vector<8x16xbf16>
    %cst_93 = arith.constant dense<0.000000e+00> : vector<8x128xf32>
    %192 = tpu.matmul %191, %180, %cst_93 {dimension_numbers = #tpu.dot_dimension_numbers<[1], [0], [0], [1], [0, 0, 1, 1], [], []>} : vector<8x16xbf16>, vector<16x128xbf16>, vector<8x128xf32> -> vector<8x128xf32>
    %193 = tpu.reciprocal %190 : vector<8x1xf32> -> vector<8x1xf32>
    %194 = vector.broadcast %193 : vector<8x1xf32> to vector<8x128xf32>
    %195 = arith.mulf %192, %194 : vector<8x128xf32>
    %196 = arith.truncf %195 : vector<8x128xf32> to vector<8x128xbf16>
    %c0_94 = arith.constant 0 : index
    %c256_95 = arith.constant 256 : index
    %197 = vector.load %arg16[%c0_94, %c256_95] : memref<8x512xbf16, #tpu.memory_space<vmem>>, vector<8x128xbf16>
    tpu.vector_store %arg16[%c0_94, %c256_95], %196 {strides = array<i32>} : memref<8x512xbf16, #tpu.memory_space<vmem>>, vector<8x128xbf16>,
    %198 = vector.extract_strided_slice %134 {offsets = [0, 384], sizes = [8, 128], strides = [1, 1]} : vector<8x512xf32> to vector<8x128xf32>
    %199 = arith.truncf %198 : vector<8x128xf32> to vector<8x128xbf16>
    %c0_96 = arith.constant 0 : index
    %c384_97 = arith.constant 384 : index
    %200 = vector.load %arg15[%c0_96, %c384_97] : memref<16x1024xbf16, #tpu.memory_space<vmem>>, vector<16x128xbf16>
    %c0_98 = arith.constant 0 : index
    %c896_99 = arith.constant 896 : index
    %201 = vector.load %arg15[%c0_98, %c896_99] : memref<16x1024xbf16, #tpu.memory_space<vmem>>, vector<16x128xbf16>
    %cst_100 = arith.constant dense<0.000000e+00> : vector<8x16xf32>
    %202 = tpu.matmul %199, %200, %cst_100 {dimension_numbers = #tpu.dot_dimension_numbers<[1], [1], [0], [0], [0, 0, 1, 0], [], []>} : vector<8x128xbf16>, vector<16x128xbf16>, vector<8x16xf32> -> vector<8x16xf32>
    %cst_101 = arith.constant 0.353553385 : f32
    %203 = vector.broadcast %cst_101 : f32 to vector<8x16xf32>
    %204 = arith.mulf %202, %203 : vector<8x16xf32>
    %cst_102 = arith.constant dense<0xFF800000> : vector<8xf32>
    %205 = vector.multi_reduction <maximumf>, %204, %cst_102 [1] : vector<8x16xf32> to vector<8xf32>
    %206 = vector.shape_cast %205 : vector<8xf32> to vector<8x1xf32>
    %207 = vector.broadcast %206 : vector<8x1xf32> to vector<8x16xf32>
    %208 = arith.subf %204, %207 : vector<8x16xf32>
    %209 = math.exp %208 : vector<8x16xf32>
    %cst_103 = arith.constant dense<0.000000e+00> : vector<8xf32>
    %210 = vector.multi_reduction <add>, %209, %cst_103 [1] : vector<8x16xf32> to vector<8xf32>
    %211 = vector.shape_cast %210 : vector<8xf32> to vector<8x1xf32>
    %212 = arith.truncf %209 : vector<8x16xf32> to vector<8x16xbf16>
    %cst_104 = arith.constant dense<0.000000e+00> : vector<8x128xf32>
    %213 = tpu.matmul %212, %201, %cst_104 {dimension_numbers = #tpu.dot_dimension_numbers<[1], [0], [0], [1], [0, 0, 1, 1], [], []>} : vector<8x16xbf16>, vector<16x128xbf16>, vector<8x128xf32> -> vector<8x128xf32>
    %214 = tpu.reciprocal %211 : vector<8x1xf32> -> vector<8x1xf32>
    %215 = vector.broadcast %214 : vector<8x1xf32> to vector<8x128xf32>
    %216 = arith.mulf %213, %215 : vector<8x128xf32>
    %217 = arith.truncf %216 : vector<8x128xf32> to vector<8x128xbf16>
    %c0_105 = arith.constant 0 : index
    %c384_106 = arith.constant 384 : index
    %218 = vector.load %arg16[%c0_105, %c384_106] : memref<8x512xbf16, #tpu.memory_space<vmem>>, vector<8x128xbf16>
    tpu.vector_store %arg16[%c0_105, %c384_106], %217 {strides = array<i32>} : memref<8x512xbf16, #tpu.memory_space<vmem>>, vector<8x128xbf16>,
    %c0_107 = arith.constant 0 : index
    %c0_108 = arith.constant 0 : index
    %219 = vector.load %arg16[%c0_107, %c0_108] : memref<8x512xbf16, #tpu.memory_space<vmem>>, vector<8x512xbf16>
    %cst_109 = arith.constant dense<0.000000e+00> : vector<8x32xf32>
    %220 = tpu.matmul %219, %130, %cst_109 {dimension_numbers = #tpu.dot_dimension_numbers<[1], [0], [0], [1], [0, 0, 1, 1], [], []>} : vector<8x512xbf16>, vector<512x32xbf16>, vector<8x32xf32> -> vector<8x32xf32>
    %221 = vector.broadcast %131 : vector<1x32xf32> to vector<8x32xf32>
    %222 = arith.addf %220, %221 : vector<8x32xf32>
    %223 = arith.addf %126, %222 : vector<8x32xf32>
    %c0_110 = arith.constant 0 : index
    %c3584 = arith.constant 3584 : index
    %224 = vector.load %arg4[%c0_110, %c3584] : memref<1x4352xf32, #tpu.memory_space<vmem>>, vector<1x32xf32>
    %c0_111 = arith.constant 0 : index
    %c3712 = arith.constant 3712 : index
    %225 = vector.load %arg4[%c0_111, %c3712] : memref<1x4352xf32, #tpu.memory_space<vmem>>, vector<1x32xf32>
    %cst_112 = arith.constant dense<0.000000e+00> : vector<8xf32>
    %226 = vector.multi_reduction <add>, %223, %cst_112 [1] : vector<8x32xf32> to vector<8xf32>
    %227 = vector.shape_cast %226 : vector<8xf32> to vector<8x1xf32>
    %cst_113 = arith.constant 3.200000e+01 : f32
    %228 = vector.broadcast %cst_113 : f32 to vector<8x1xf32>
    %229 = arith.divf %227, %228 : vector<8x1xf32>
    %230 = vector.broadcast %229 : vector<8x1xf32> to vector<8x32xf32>
    %231 = arith.subf %223, %230 : vector<8x32xf32>
    %232 = arith.mulf %231, %231 : vector<8x32xf32>
    %cst_114 = arith.constant dense<0.000000e+00> : vector<8xf32>
    %233 = vector.multi_reduction <add>, %232, %cst_114 [1] : vector<8x32xf32> to vector<8xf32>
    %234 = vector.shape_cast %233 : vector<8xf32> to vector<8x1xf32>
    %cst_115 = arith.constant 3.200000e+01 : f32
    %235 = vector.broadcast %cst_115 : f32 to vector<8x1xf32>
    %236 = arith.divf %234, %235 : vector<8x1xf32>
    %cst_116 = arith.constant 9.99999974E-6 : f32
    %237 = vector.broadcast %cst_116 : f32 to vector<8x1xf32>
    %238 = arith.addf %236, %237 : vector<8x1xf32>
    %239 = math.rsqrt %238 : vector<8x1xf32>
    %240 = vector.broadcast %239 : vector<8x1xf32> to vector<8x32xf32>
    %241 = arith.mulf %231, %240 : vector<8x32xf32>
    %242 = vector.broadcast %224 : vector<1x32xf32> to vector<8x32xf32>
    %243 = arith.mulf %241, %242 : vector<8x32xf32>
    %244 = vector.broadcast %225 : vector<1x32xf32> to vector<8x32xf32>
    %245 = arith.addf %243, %244 : vector<8x32xf32>
    %246 = arith.truncf %245 : vector<8x32xf32> to vector<8x32xbf16>
    %c0_117 = arith.constant 0 : index
    %c0_118 = arith.constant 0 : index
    %247 = vector.load %arg11[%c0_117, %c0_118] : memref<32x64xbf16, #tpu.memory_space<vmem>>, vector<32x64xbf16>
    %cst_119 = arith.constant dense<0.000000e+00> : vector<8x64xf32>
    %248 = tpu.matmul %246, %247, %cst_119 {dimension_numbers = #tpu.dot_dimension_numbers<[1], [0], [0], [1], [0, 0, 1, 1], [], []>} : vector<8x32xbf16>, vector<32x64xbf16>, vector<8x64xf32> -> vector<8x64xf32>
    %c0_120 = arith.constant 0 : index
    %c3840 = arith.constant 3840 : index
    %249 = vector.load %arg4[%c0_120, %c3840] : memref<1x4352xf32, #tpu.memory_space<vmem>>, vector<1x64xf32>
    %250 = vector.broadcast %249 : vector<1x64xf32> to vector<8x64xf32>
    %251 = arith.addf %248, %250 : vector<8x64xf32>
    %cst_121 = arith.constant 0.000000e+00 : f32
    %252 = vector.broadcast %cst_121 : f32 to vector<8x64xf32>
    %253 = arith.maximumf %251, %252 : vector<8x64xf32>
    %254 = arith.truncf %253 : vector<8x64xf32> to vector<8x64xbf16>
    %c0_122 = arith.constant 0 : index
    %c0_123 = arith.constant 0 : index
    %255 = vector.load %arg12[%c0_122, %c0_123] : memref<64x32xbf16, #tpu.memory_space<vmem>>, vector<64x32xbf16>
    %cst_124 = arith.constant dense<0.000000e+00> : vector<8x32xf32>
    %256 = tpu.matmul %254, %255, %cst_124 {dimension_numbers = #tpu.dot_dimension_numbers<[1], [0], [0], [1], [0, 0, 1, 1], [], []>} : vector<8x64xbf16>, vector<64x32xbf16>, vector<8x32xf32> -> vector<8x32xf32>
    %c0_125 = arith.constant 0 : index
    %c3968 = arith.constant 3968 : index
    %257 = vector.load %arg4[%c0_125, %c3968] : memref<1x4352xf32, #tpu.memory_space<vmem>>, vector<1x32xf32>
    %258 = vector.broadcast %257 : vector<1x32xf32> to vector<8x32xf32>
    %259 = arith.addf %256, %258 : vector<8x32xf32>
    %260 = arith.addf %245, %259 : vector<8x32xf32>
    %c0_126 = arith.constant 0 : index
    %c4096 = arith.constant 4096 : index
    %261 = vector.load %arg4[%c0_126, %c4096] : memref<1x4352xf32, #tpu.memory_space<vmem>>, vector<1x32xf32>
    %c0_127 = arith.constant 0 : index
    %c4224 = arith.constant 4224 : index
    %262 = vector.load %arg4[%c0_127, %c4224] : memref<1x4352xf32, #tpu.memory_space<vmem>>, vector<1x32xf32>
    %cst_128 = arith.constant dense<0.000000e+00> : vector<8xf32>
    %263 = vector.multi_reduction <add>, %260, %cst_128 [1] : vector<8x32xf32> to vector<8xf32>
    %264 = vector.shape_cast %263 : vector<8xf32> to vector<8x1xf32>
    %cst_129 = arith.constant 3.200000e+01 : f32
    %265 = vector.broadcast %cst_129 : f32 to vector<8x1xf32>
    %266 = arith.divf %264, %265 : vector<8x1xf32>
    %267 = vector.broadcast %266 : vector<8x1xf32> to vector<8x32xf32>
    %268 = arith.subf %260, %267 : vector<8x32xf32>
    %269 = arith.mulf %268, %268 : vector<8x32xf32>
    %cst_130 = arith.constant dense<0.000000e+00> : vector<8xf32>
    %270 = vector.multi_reduction <add>, %269, %cst_130 [1] : vector<8x32xf32> to vector<8xf32>
    %271 = vector.shape_cast %270 : vector<8xf32> to vector<8x1xf32>
    %cst_131 = arith.constant 3.200000e+01 : f32
    %272 = vector.broadcast %cst_131 : f32 to vector<8x1xf32>
    %273 = arith.divf %271, %272 : vector<8x1xf32>
    %cst_132 = arith.constant 9.99999974E-6 : f32
    %274 = vector.broadcast %cst_132 : f32 to vector<8x1xf32>
    %275 = arith.addf %273, %274 : vector<8x1xf32>
    %276 = math.rsqrt %275 : vector<8x1xf32>
    %277 = vector.broadcast %276 : vector<8x1xf32> to vector<8x32xf32>
    %278 = arith.mulf %268, %277 : vector<8x32xf32>
    %279 = vector.broadcast %261 : vector<1x32xf32> to vector<8x32xf32>
    %280 = arith.mulf %278, %279 : vector<8x32xf32>
    %281 = vector.broadcast %262 : vector<1x32xf32> to vector<8x32xf32>
    %282 = arith.addf %280, %281 : vector<8x32xf32>
    %283 = arith.truncf %282 : vector<8x32xf32> to vector<8x32xbf16>
    %c0_133 = arith.constant 0 : index
    %c0_134 = arith.constant 0 : index
    %c0_135 = arith.constant 0 : index
    %284 = vector.load %arg13[%c0_133, %c0_134, %c0_135] : memref<1x8x32xbf16, #tpu.memory_space<vmem>>, vector<1x8x32xbf16>
    %285 = vector.shape_cast %284 : vector<1x8x32xbf16> to vector<8x32xbf16>
    %286 = vector.shape_cast %283 : vector<8x32xbf16> to vector<1x8x32xbf16>
    tpu.vector_store %arg13[%c0_133, %c0_134, %c0_135], %286 {strides = array<i32>} : memref<1x8x32xbf16, #tpu.memory_space<vmem>>, vector<1x8x32xbf16>,
    return
  }
  func.func @transform_0(%arg0: i32, %arg1: i32) -> (i32, i32, i32) {
    %c0_i32 = arith.constant 0 : i32
    %c0_i32_0 = arith.constant 0 : i32
    %c0_i32_1 = arith.constant 0 : i32
    return %arg0, %c0_i32, %c0_i32_0 : i32, i32, i32
  }
  func.func @transform_1(%arg0: i32, %arg1: i32) -> (i32, i32, i32) {
    %c0_i32 = arith.constant 0 : i32
    %c0_i32_0 = arith.constant 0 : i32
    %c0_i32_1 = arith.constant 0 : i32
    return %arg0, %c0_i32, %c0_i32_0 : i32, i32, i32
  }
  func.func @transform_2(%arg0: i32, %arg1: i32) -> (i32, i32) {
    %c0_i32 = arith.constant 0 : i32
    %c0_i32_0 = arith.constant 0 : i32
    %c0_i32_1 = arith.constant 0 : i32
    return %c0_i32, %c0_i32_0 : i32, i32
  }
  func.func @transform_3(%arg0: i32, %arg1: i32) -> (i32, i32) {
    %c0_i32 = arith.constant 0 : i32
    %c0_i32_0 = arith.constant 0 : i32
    %c0_i32_1 = arith.constant 0 : i32
    return %c0_i32, %c0_i32_0 : i32, i32
  }
  func.func @transform_4(%arg0: i32, %arg1: i32) -> (i32, i32) {
    %c0_i32 = arith.constant 0 : i32
    %c0_i32_0 = arith.constant 0 : i32
    %c0_i32_1 = arith.constant 0 : i32
    return %c0_i32, %c0_i32_0 : i32, i32
  }
  func.func @transform_5(%arg0: i32, %arg1: i32) -> (i32, i32) {
    %c0_i32 = arith.constant 0 : i32
    %c0_i32_0 = arith.constant 0 : i32
    %c0_i32_1 = arith.constant 0 : i32
    return %c0_i32, %c0_i32_0 : i32, i32
  }
  func.func @transform_6(%arg0: i32, %arg1: i32) -> (i32, i32) {
    %c0_i32 = arith.constant 0 : i32
    %c0_i32_0 = arith.constant 0 : i32
    %c0_i32_1 = arith.constant 0 : i32
    return %c0_i32, %c0_i32_0 : i32, i32
  }
  func.func @transform_7(%arg0: i32, %arg1: i32) -> (i32, i32) {
    %c0_i32 = arith.constant 0 : i32
    %c0_i32_0 = arith.constant 0 : i32
    %c0_i32_1 = arith.constant 0 : i32
    return %c0_i32, %c0_i32_0 : i32, i32
  }
  func.func @transform_8(%arg0: i32, %arg1: i32) -> (i32, i32) {
    %c0_i32 = arith.constant 0 : i32
    %c0_i32_0 = arith.constant 0 : i32
    %c0_i32_1 = arith.constant 0 : i32
    return %c0_i32, %c0_i32_0 : i32, i32
  }
  func.func @transform_9(%arg0: i32, %arg1: i32) -> (i32, i32) {
    %c0_i32 = arith.constant 0 : i32
    %c0_i32_0 = arith.constant 0 : i32
    %c0_i32_1 = arith.constant 0 : i32
    return %c0_i32, %c0_i32_0 : i32, i32
  }
  func.func @transform_10(%arg0: i32, %arg1: i32) -> (i32, i32) {
    %c0_i32 = arith.constant 0 : i32
    %c0_i32_0 = arith.constant 0 : i32
    %c0_i32_1 = arith.constant 0 : i32
    return %c0_i32, %c0_i32_0 : i32, i32
  }
  func.func @transform_11(%arg0: i32, %arg1: i32) -> (i32, i32, i32) {
    %c0_i32 = arith.constant 0 : i32
    %c0_i32_0 = arith.constant 0 : i32
    return %arg0, %arg1, %c0_i32 : i32, i32, i32
  }
}

module attributes {stable_mosaic.version = 11 : i64} {
  func.func @decoder_layer_kernel(%arg0: i32, %arg1: i32, %arg2: memref<1x16x32xbf16, #tpu.memory_space<vmem>>, %arg3: memref<1x16x32xbf16, #tpu.memory_space<vmem>>, %arg4: memref<1x4352xf32, #tpu.memory_space<vmem>>, %arg5: memref<32x512xbf16, #tpu.memory_space<vmem>>, %arg6: memref<32x1024xbf16, #tpu.memory_space<vmem>>, %arg7: memref<512x32xbf16, #tpu.memory_space<vmem>>, %arg8: memref<32x512xbf16, #tpu.memory_space<vmem>>, %arg9: memref<32x1024xbf16, #tpu.memory_space<vmem>>, %arg10: memref<512x32xbf16, #tpu.memory_space<vmem>>, %arg11: memref<32x64xbf16, #tpu.memory_space<vmem>>, %arg12: memref<64x32xbf16, #tpu.memory_space<vmem>>, %arg13: memref<1x8x32xbf16, #tpu.memory_space<vmem>>, %arg14: memref<16x1024xbf16, #tpu.memory_space<vmem>>, %arg15: memref<16x1024xbf16, #tpu.memory_space<vmem>>, %arg16: memref<8x512xbf16, #tpu.memory_space<vmem>>) attributes {dimension_semantics = [#tpu.dimension_semantics<parallel>, #tpu.dimension_semantics<arbitrary>], iteration_bounds = array<i64: 2, 2>, scalar_prefetch = 0 : i64, scratch_operands = 3 : i64, tpu.core_type = #tpu.core_type<tc>, window_params = [{transform_indices = @transform_0, window_bounds = array<i64: 1, 16, 32>}, {transform_indices = @transform_1, window_bounds = array<i64: 1, 16, 32>}, {pipeline_mode = #tpu.pipeline_mode<synchronous>, transform_indices = @transform_2, window_bounds = array<i64: 1, 4352>}, {pipeline_mode = #tpu.pipeline_mode<synchronous>, transform_indices = @transform_3, window_bounds = array<i64: 32, 512>}, {pipeline_mode = #tpu.pipeline_mode<synchronous>, transform_indices = @transform_4, window_bounds = array<i64: 32, 1024>}, {pipeline_mode = #tpu.pipeline_mode<synchronous>, transform_indices = @transform_5, window_bounds = array<i64: 512, 32>}, {pipeline_mode = #tpu.pipeline_mode<synchronous>, transform_indices = @transform_6, window_bounds = array<i64: 32, 512>}, {pipeline_mode = #tpu.pipeline_mode<synchronous>, transform_indices = @transform_7, window_bounds = array<i64: 32, 1024>}, {pipeline_mode = #tpu.pipeline_mode<synchronous>, transform_indices = @transform_8, window_bounds = array<i64: 512, 32>}, {pipeline_mode = #tpu.pipeline_mode<synchronous>, transform_indices = @transform_9, window_bounds = array<i64: 32, 64>}, {pipeline_mode = #tpu.pipeline_mode<synchronous>, transform_indices = @transform_10, window_bounds = array<i64: 64, 32>}, {transform_indices = @transform_11, window_bounds = array<i64: 1, 8, 32>}]} {
    %c0_i32 = arith.constant 0 : i32
    %0 = arith.cmpi eq, %arg1, %c0_i32 : i32
    %1 = arith.extui %0 : i1 to i32
    %c0_i32_0 = arith.constant 0 : i32
    %2 = arith.cmpi ne, %1, %c0_i32_0 : i32
    scf.if %2 {
      %c0_136 = arith.constant 0 : index
      %c0_137 = arith.constant 0 : index
      %c0_138 = arith.constant 0 : index
      %287 = vector.load %arg2[%c0_136, %c0_137, %c0_138] : memref<1x16x32xbf16, #tpu.memory_space<vmem>>, vector<1x16x32xbf16>
      %288 = vector.shape_cast %287 : vector<1x16x32xbf16> to vector<16x32xbf16>
      %c0_139 = arith.constant 0 : index
      %c0_140 = arith.constant 0 : index
      %289 = vector.load %arg6[%c0_139, %c0_140] : memref<32x1024xbf16, #tpu.memory_space<vmem>>, vector<32x1024xbf16>
      %cst_141 = arith.constant dense<0.000000e+00> : vector<16x1024xf32>
      %290 = tpu.matmul %288, %289, %cst_141 {dimension_numbers = #tpu.dot_dimension_numbers<[1], [0], [0], [1], [0, 0, 1, 1], [], []>} : vector<16x32xbf16>, vector<32x1024xbf16>, vector<16x1024xf32> -> vector<16x1024xf32>
      %c0_142 = arith.constant 0 : index
      %c512_143 = arith.constant 512 : index
      %291 = vector.load %arg4[%c0_142, %c512_143] : memref<1x4352xf32, #tpu.memory_space<vmem>>, vector<1x1024xf32>
      %292 = vector.broadcast %291 : vector<1x1024xf32> to vector<16x1024xf32>
      %293 = arith.addf %290, %292 : vector<16x1024xf32>
      %294 = arith.truncf %293 : vector<16x1024xf32> to vector<16x1024xbf16>
      %c0_144 = arith.constant 0 : index
      %c0_145 = arith.constant 0 : index
      %295 = vector.load %arg14[%c0_144, %c0_145] : memref<16x1024xbf16, #tpu.memory_space<vmem>>, vector<16x1024xbf16>
      tpu.vector_store %arg14[%c0_144, %c0_145], %294 {strides = array<i32>} : memref<16x1024xbf16, #tpu.memory_space<vmem>>, vector<16x1024xbf16>,
      %c0_146 = arith.constant 0 : index
      %c0_147 = arith.constant 0 : index
      %c0_148 = arith.constant 0 : index
      %296 = vector.load %arg3[%c0_146, %c0_147, %c0_148] : memref<1x16x32xbf16, #tpu.memory_space<vmem>>, vector<1x16x32xbf16>
      %297 = vector.shape_cast %296 : vector<1x16x32xbf16> to vector<16x32xbf16>
      %c0_149 = arith.constant 0 : index
      %c0_150 = arith.constant 0 : index
      %298 = vector.load %arg9[%c0_149, %c0_150] : memref<32x1024xbf16, #tpu.memory_space<vmem>>, vector<32x1024xbf16>
      %cst_151 = arith.constant dense<0.000000e+00> : vector<16x1024xf32>
      %299 = tpu.matmul %297, %298, %cst_151 {dimension_numbers = #tpu.dot_dimension_numbers<[1], [0], [0], [1], [0, 0, 1, 1], [], []>} : vector<16x32xbf16>, vector<32x1024xbf16>, vector<16x1024xf32> -> vector<16x1024xf32>
      %c0_152 = arith.constant 0 : index
      %c2432 = arith.constant 2432 : index
      %300 = vector.load %arg4[%c0_152, %c2432] : memref<1x4352xf32, #tpu.memory_space<vmem>>, vector<1x1024xf32>
      %301 = vector.broadcast %300 : vector<1x1024xf32> to vector<16x1024xf32>
      %302 = arith.addf %299, %301 : vector<16x1024xf32>
      %303 = arith.truncf %302 : vector<16x1024xf32> to vector<16x1024xbf16>
      %c0_153 = arith.constant 0 : index
      %c0_154 = arith.constant 0 : index
      %304 = vector.load %arg15[%c0_153, %c0_154] : memref<16x1024xbf16, #tpu.memory_space<vmem>>, vector<16x1024xbf16>
      tpu.vector_store %arg15[%c0_153, %c0_154], %303 {strides = array<i32>} : memref<16x1024xbf16, #tpu.memory_space<vmem>>, vector<16x1024xbf16>,
    } else {
    }
    %c8_i32 = arith.constant 8 : i32
    %3 = arith.muli %arg1, %c8_i32 : i32
    %4 = tpu.assume_multiple %3, 8 : i32
    %c0 = arith.constant 0 : index
    %5 = arith.index_cast %4 : i32 to index
    %c0_1 = arith.constant 0 : index
    %6 = vector.load %arg2[%c0, %5, %c0_1] : memref<1x16x32xbf16, #tpu.memory_space<vmem>>, vector<1x8x32xbf16>
    %7 = vector.shape_cast %6 : vector<1x8x32xbf16> to vector<8x32xbf16>
    %8 = arith.extf %7 : vector<8x32xbf16> to vector<8x32xf32>
    %c0_2 = arith.constant 0 : index
    %c0_3 = arith.constant 0 : index
    %9 = vector.load %arg5[%c0_2, %c0_3] : memref<32x512xbf16, #tpu.memory_space<vmem>>, vector<32x512xbf16>
    %c0_4 = arith.constant 0 : index
    %c0_5 = arith.constant 0 : index
    %10 = vector.load %arg4[%c0_4, %c0_5] : memref<1x4352xf32, #tpu.memory_space<vmem>>, vector<1x512xf32>
    %c0_6 = arith.constant 0 : index
    %c0_7 = arith.constant 0 : index
    %11 = vector.load %arg7[%c0_6, %c0_7] : memref<512x32xbf16, #tpu.memory_space<vmem>>, vector<512x32xbf16>
    %c0_8 = arith.constant 0 : index
    %c1536 = arith.constant 1536 : index
    %12 = vector.load %arg4[%c0_8, %c1536] : memref<1x4352xf32, #tpu.memory_space<vmem>>, vector<1x32xf32>
    %cst = arith.constant dense<0.000000e+00> : vector<8x512xf32>
    %13 = tpu.matmul %7, %9, %cst {dimension_numbers = #tpu.dot_dimension_numbers<[1], [0], [0], [1], [0, 0, 1, 1], [], []>} : vector<8x32xbf16>, vector<32x512xbf16>, vector<8x512xf32> -> vector<8x512xf32>
    %14 = vector.broadcast %10 : vector<1x512xf32> to vector<8x512xf32>
    %15 = arith.addf %13, %14 : vector<8x512xf32>
    %16 = vector.extract_strided_slice %15 {offsets = [0, 0], sizes = [8, 128], strides = [1, 1]} : vector<8x512xf32> to vector<8x128xf32>
    %17 = arith.truncf %16 : vector<8x128xf32> to vector<8x128xbf16>
    %c0_9 = arith.constant 0 : index
    %c0_10 = arith.constant 0 : index
    %18 = vector.load %arg14[%c0_9, %c0_10] : memref<16x1024xbf16, #tpu.memory_space<vmem>>, vector<16x128xbf16>
    %c0_11 = arith.constant 0 : index
    %c512 = arith.constant 512 : index
    %19 = vector.load %arg14[%c0_11, %c512] : memref<16x1024xbf16, #tpu.memory_space<vmem>>, vector<16x128xbf16>
    %cst_12 = arith.constant dense<0.000000e+00> : vector<8x16xf32>
    %20 = tpu.matmul %17, %18, %cst_12 {dimension_numbers = #tpu.dot_dimension_numbers<[1], [1], [0], [0], [0, 0, 1, 0], [], []>} : vector<8x128xbf16>, vector<16x128xbf16>, vector<8x16xf32> -> vector<8x16xf32>
    %cst_13 = arith.constant 0.353553385 : f32
    %21 = vector.broadcast %cst_13 : f32 to vector<8x16xf32>
    %22 = arith.mulf %20, %21 : vector<8x16xf32>
    %cst_14 = arith.constant dense<0xFF800000> : vector<8xf32>
    %23 = vector.multi_reduction <maximumf>, %22, %cst_14 [1] : vector<8x16xf32> to vector<8xf32>
    %24 = vector.shape_cast %23 : vector<8xf32> to vector<8x1xf32>
    %25 = vector.broadcast %24 : vector<8x1xf32> to vector<8x16xf32>
    %26 = arith.subf %22, %25 : vector<8x16xf32>
    %27 = math.exp %26 : vector<8x16xf32>
    %cst_15 = arith.constant dense<0.000000e+00> : vector<8xf32>
    %28 = vector.multi_reduction <add>, %27, %cst_15 [1] : vector<8x16xf32> to vector<8xf32>
    %29 = vector.shape_cast %28 : vector<8xf32> to vector<8x1xf32>
    %30 = arith.truncf %27 : vector<8x16xf32> to vector<8x16xbf16>
    %cst_16 = arith.constant dense<0.000000e+00> : vector<8x128xf32>
    %31 = tpu.matmul %30, %19, %cst_16 {dimension_numbers = #tpu.dot_dimension_numbers<[1], [0], [0], [1], [0, 0, 1, 1], [], []>} : vector<8x16xbf16>, vector<16x128xbf16>, vector<8x128xf32> -> vector<8x128xf32>
    %32 = tpu.reciprocal %29 : vector<8x1xf32> -> vector<8x1xf32>
    %33 = vector.broadcast %32 : vector<8x1xf32> to vector<8x128xf32>
    %34 = arith.mulf %31, %33 : vector<8x128xf32>
    %35 = arith.truncf %34 : vector<8x128xf32> to vector<8x128xbf16>
    %c0_17 = arith.constant 0 : index
    %c0_18 = arith.constant 0 : index
    %36 = vector.load %arg16[%c0_17, %c0_18] : memref<8x512xbf16, #tpu.memory_space<vmem>>, vector<8x128xbf16>
    tpu.vector_store %arg16[%c0_17, %c0_18], %35 {strides = array<i32>} : memref<8x512xbf16, #tpu.memory_space<vmem>>, vector<8x128xbf16>,
    %37 = vector.extract_strided_slice %15 {offsets = [0, 128], sizes = [8, 128], strides = [1, 1]} : vector<8x512xf32> to vector<8x128xf32>
    %38 = arith.truncf %37 : vector<8x128xf32> to vector<8x128xbf16>
    %c0_19 = arith.constant 0 : index
    %c128 = arith.constant 128 : index
    %39 = vector.load %arg14[%c0_19, %c128] : memref<16x1024xbf16, #tpu.memory_space<vmem>>, vector<16x128xbf16>
    %c0_20 = arith.constant 0 : index
    %c640 = arith.constant 640 : index
    %40 = vector.load %arg14[%c0_20, %c640] : memref<16x1024xbf16, #tpu.memory_space<vmem>>, vector<16x128xbf16>
    %cst_21 = arith.constant dense<0.000000e+00> : vector<8x16xf32>
    %41 = tpu.matmul %38, %39, %cst_21 {dimension_numbers = #tpu.dot_dimension_numbers<[1], [1], [0], [0], [0, 0, 1, 0], [], []>} : vector<8x128xbf16>, vector<16x128xbf16>, vector<8x16xf32> -> vector<8x16xf32>
    %cst_22 = arith.constant 0.353553385 : f32
    %42 = vector.broadcast %cst_22 : f32 to vector<8x16xf32>
    %43 = arith.mulf %41, %42 : vector<8x16xf32>
    %cst_23 = arith.constant dense<0xFF800000> : vector<8xf32>
    %44 = vector.multi_reduction <maximumf>, %43, %cst_23 [1] : vector<8x16xf32> to vector<8xf32>
    %45 = vector.shape_cast %44 : vector<8xf32> to vector<8x1xf32>
    %46 = vector.broadcast %45 : vector<8x1xf32> to vector<8x16xf32>
    %47 = arith.subf %43, %46 : vector<8x16xf32>
    %48 = math.exp %47 : vector<8x16xf32>
    %cst_24 = arith.constant dense<0.000000e+00> : vector<8xf32>
    %49 = vector.multi_reduction <add>, %48, %cst_24 [1] : vector<8x16xf32> to vector<8xf32>
    %50 = vector.shape_cast %49 : vector<8xf32> to vector<8x1xf32>
    %51 = arith.truncf %48 : vector<8x16xf32> to vector<8x16xbf16>
    %cst_25 = arith.constant dense<0.000000e+00> : vector<8x128xf32>
    %52 = tpu.matmul %51, %40, %cst_25 {dimension_numbers = #tpu.dot_dimension_numbers<[1], [0], [0], [1], [0, 0, 1, 1], [], []>} : vector<8x16xbf16>, vector<16x128xbf16>, vector<8x128xf32> -> vector<8x128xf32>
    %53 = tpu.reciprocal %50 : vector<8x1xf32> -> vector<8x1xf32>
    %54 = vector.broadcast %53 : vector<8x1xf32> to vector<8x128xf32>
    %55 = arith.mulf %52, %54 : vector<8x128xf32>
    %56 = arith.truncf %55 : vector<8x128xf32> to vector<8x128xbf16>
    %c0_26 = arith.constant 0 : index
    %c128_27 = arith.constant 128 : index
    %57 = vector.load %arg16[%c0_26, %c128_27] : memref<8x512xbf16, #tpu.memory_space<vmem>>, vector<8x128xbf16>
    tpu.vector_store %arg16[%c0_26, %c128_27], %56 {strides = array<i32>} : memref<8x512xbf16, #tpu.memory_space<vmem>>, vector<8x128xbf16>,
    %58 = vector.extract_strided_slice %15 {offsets = [0, 256], sizes = [8, 128], strides = [1, 1]} : vector<8x512xf32> to vector<8x128xf32>
    %59 = arith.truncf %58 : vector<8x128xf32> to vector<8x128xbf16>
    %c0_28 = arith.constant 0 : index
    %c256 = arith.constant 256 : index
    %60 = vector.load %arg14[%c0_28, %c256] : memref<16x1024xbf16, #tpu.memory_space<vmem>>, vector<16x128xbf16>
    %c0_29 = arith.constant 0 : index
    %c768 = arith.constant 768 : index
    %61 = vector.load %arg14[%c0_29, %c768] : memref<16x1024xbf16, #tpu.memory_space<vmem>>, vector<16x128xbf16>
    %cst_30 = arith.constant dense<0.000000e+00> : vector<8x16xf32>
    %62 = tpu.matmul %59, %60, %cst_30 {dimension_numbers = #tpu.dot_dimension_numbers<[1], [1], [0], [0], [0, 0, 1, 0], [], []>} : vector<8x128xbf16>, vector<16x128xbf16>, vector<8x16xf32> -> vector<8x16xf32>
    %cst_31 = arith.constant 0.353553385 : f32
    %63 = vector.broadcast %cst_31 : f32 to vector<8x16xf32>
    %64 = arith.mulf %62, %63 : vector<8x16xf32>
    %cst_32 = arith.constant dense<0xFF800000> : vector<8xf32>
    %65 = vector.multi_reduction <maximumf>, %64, %cst_32 [1] : vector<8x16xf32> to vector<8xf32>
    %66 = vector.shape_cast %65 : vector<8xf32> to vector<8x1xf32>
    %67 = vector.broadcast %66 : vector<8x1xf32> to vector<8x16xf32>
    %68 = arith.subf %64, %67 : vector<8x16xf32>
    %69 = math.exp %68 : vector<8x16xf32>
    %cst_33 = arith.constant dense<0.000000e+00> : vector<8xf32>
    %70 = vector.multi_reduction <add>, %69, %cst_33 [1] : vector<8x16xf32> to vector<8xf32>
    %71 = vector.shape_cast %70 : vector<8xf32> to vector<8x1xf32>
    %72 = arith.truncf %69 : vector<8x16xf32> to vector<8x16xbf16>
    %cst_34 = arith.constant dense<0.000000e+00> : vector<8x128xf32>
    %73 = tpu.matmul %72, %61, %cst_34 {dimension_numbers = #tpu.dot_dimension_numbers<[1], [0], [0], [1], [0, 0, 1, 1], [], []>} : vector<8x16xbf16>, vector<16x128xbf16>, vector<8x128xf32> -> vector<8x128xf32>
    %74 = tpu.reciprocal %71 : vector<8x1xf32> -> vector<8x1xf32>
    %75 = vector.broadcast %74 : vector<8x1xf32> to vector<8x128xf32>
    %76 = arith.mulf %73, %75 : vector<8x128xf32>
    %77 = arith.truncf %76 : vector<8x128xf32> to vector<8x128xbf16>
    %c0_35 = arith.constant 0 : index
    %c256_36 = arith.constant 256 : index
    %78 = vector.load %arg16[%c0_35, %c256_36] : memref<8x512xbf16, #tpu.memory_space<vmem>>, vector<8x128xbf16>
    tpu.vector_store %arg16[%c0_35, %c256_36], %77 {strides = array<i32>} : memref<8x512xbf16, #tpu.memory_space<vmem>>, vector<8x128xbf16>,
    %79 = vector.extract_strided_slice %15 {offsets = [0, 384], sizes = [8, 128], strides = [1, 1]} : vector<8x512xf32> to vector<8x128xf32>
    %80 = arith.truncf %79 : vector<8x128xf32> to vector<8x128xbf16>
    %c0_37 = arith.constant 0 : index
    %c384 = arith.constant 384 : index
    %81 = vector.load %arg14[%c0_37, %c384] : memref<16x1024xbf16, #tpu.memory_space<vmem>>, vector<16x128xbf16>
    %c0_38 = arith.constant 0 : index
    %c896 = arith.constant 896 : index
    %82 = vector.load %arg14[%c0_38, %c896] : memref<16x1024xbf16, #tpu.memory_space<vmem>>, vector<16x128xbf16>
    %cst_39 = arith.constant dense<0.000000e+00> : vector<8x16xf32>
    %83 = tpu.matmul %80, %81, %cst_39 {dimension_numbers = #tpu.dot_dimension_numbers<[1], [1], [0], [0], [0, 0, 1, 0], [], []>} : vector<8x128xbf16>, vector<16x128xbf16>, vector<8x16xf32> -> vector<8x16xf32>
    %cst_40 = arith.constant 0.353553385 : f32
    %84 = vector.broadcast %cst_40 : f32 to vector<8x16xf32>
    %85 = arith.mulf %83, %84 : vector<8x16xf32>
    %cst_41 = arith.constant dense<0xFF800000> : vector<8xf32>
    %86 = vector.multi_reduction <maximumf>, %85, %cst_41 [1] : vector<8x16xf32> to vector<8xf32>
    %87 = vector.shape_cast %86 : vector<8xf32> to vector<8x1xf32>
    %88 = vector.broadcast %87 : vector<8x1xf32> to vector<8x16xf32>
    %89 = arith.subf %85, %88 : vector<8x16xf32>
    %90 = math.exp %89 : vector<8x16xf32>
    %cst_42 = arith.constant dense<0.000000e+00> : vector<8xf32>
    %91 = vector.multi_reduction <add>, %90, %cst_42 [1] : vector<8x16xf32> to vector<8xf32>
    %92 = vector.shape_cast %91 : vector<8xf32> to vector<8x1xf32>
    %93 = arith.truncf %90 : vector<8x16xf32> to vector<8x16xbf16>
    %cst_43 = arith.constant dense<0.000000e+00> : vector<8x128xf32>
    %94 = tpu.matmul %93, %82, %cst_43 {dimension_numbers = #tpu.dot_dimension_numbers<[1], [0], [0], [1], [0, 0, 1, 1], [], []>} : vector<8x16xbf16>, vector<16x128xbf16>, vector<8x128xf32> -> vector<8x128xf32>
    %95 = tpu.reciprocal %92 : vector<8x1xf32> -> vector<8x1xf32>
    %96 = vector.broadcast %95 : vector<8x1xf32> to vector<8x128xf32>
    %97 = arith.mulf %94, %96 : vector<8x128xf32>
    %98 = arith.truncf %97 : vector<8x128xf32> to vector<8x128xbf16>
    %c0_44 = arith.constant 0 : index
    %c384_45 = arith.constant 384 : index
    %99 = vector.load %arg16[%c0_44, %c384_45] : memref<8x512xbf16, #tpu.memory_space<vmem>>, vector<8x128xbf16>
    tpu.vector_store %arg16[%c0_44, %c384_45], %98 {strides = array<i32>} : memref<8x512xbf16, #tpu.memory_space<vmem>>, vector<8x128xbf16>,
    %c0_46 = arith.constant 0 : index
    %c0_47 = arith.constant 0 : index
    %100 = vector.load %arg16[%c0_46, %c0_47] : memref<8x512xbf16, #tpu.memory_space<vmem>>, vector<8x512xbf16>
    %cst_48 = arith.constant dense<0.000000e+00> : vector<8x32xf32>
    %101 = tpu.matmul %100, %11, %cst_48 {dimension_numbers = #tpu.dot_dimension_numbers<[1], [0], [0], [1], [0, 0, 1, 1], [], []>} : vector<8x512xbf16>, vector<512x32xbf16>, vector<8x32xf32> -> vector<8x32xf32>
    %102 = vector.broadcast %12 : vector<1x32xf32> to vector<8x32xf32>
    %103 = arith.addf %101, %102 : vector<8x32xf32>
    %104 = arith.addf %8, %103 : vector<8x32xf32>
    %c0_49 = arith.constant 0 : index
    %c1664 = arith.constant 1664 : index
    %105 = vector.load %arg4[%c0_49, %c1664] : memref<1x4352xf32, #tpu.memory_space<vmem>>, vector<1x32xf32>
    %c0_50 = arith.constant 0 : index
    %c1792 = arith.constant 1792 : index
    %106 = vector.load %arg4[%c0_50, %c1792] : memref<1x4352xf32, #tpu.memory_space<vmem>>, vector<1x32xf32>
    %cst_51 = arith.constant dense<0.000000e+00> : vector<8xf32>
    %107 = vector.multi_reduction <add>, %104, %cst_51 [1] : vector<8x32xf32> to vector<8xf32>
    %108 = vector.shape_cast %107 : vector<8xf32> to vector<8x1xf32>
    %cst_52 = arith.constant 3.200000e+01 : f32
    %109 = vector.broadcast %cst_52 : f32 to vector<8x1xf32>
    %110 = arith.divf %108, %109 : vector<8x1xf32>
    %111 = vector.broadcast %110 : vector<8x1xf32> to vector<8x32xf32>
    %112 = arith.subf %104, %111 : vector<8x32xf32>
    %113 = arith.mulf %112, %112 : vector<8x32xf32>
    %cst_53 = arith.constant dense<0.000000e+00> : vector<8xf32>
    %114 = vector.multi_reduction <add>, %113, %cst_53 [1] : vector<8x32xf32> to vector<8xf32>
    %115 = vector.shape_cast %114 : vector<8xf32> to vector<8x1xf32>
    %cst_54 = arith.constant 3.200000e+01 : f32
    %116 = vector.broadcast %cst_54 : f32 to vector<8x1xf32>
    %117 = arith.divf %115, %116 : vector<8x1xf32>
    %cst_55 = arith.constant 9.99999974E-6 : f32
    %118 = vector.broadcast %cst_55 : f32 to vector<8x1xf32>
    %119 = arith.addf %117, %118 : vector<8x1xf32>
    %120 = math.rsqrt %119 : vector<8x1xf32>
    %121 = vector.broadcast %120 : vector<8x1xf32> to vector<8x32xf32>
    %122 = arith.mulf %112, %121 : vector<8x32xf32>
    %123 = vector.broadcast %105 : vector<1x32xf32> to vector<8x32xf32>
    %124 = arith.mulf %122, %123 : vector<8x32xf32>
    %125 = vector.broadcast %106 : vector<1x32xf32> to vector<8x32xf32>
    %126 = arith.addf %124, %125 : vector<8x32xf32>
    %127 = arith.truncf %126 : vector<8x32xf32> to vector<8x32xbf16>
    %c0_56 = arith.constant 0 : index
    %c0_57 = arith.constant 0 : index
    %128 = vector.load %arg8[%c0_56, %c0_57] : memref<32x512xbf16, #tpu.memory_space<vmem>>, vector<32x512xbf16>
    %c0_58 = arith.constant 0 : index
    %c1920 = arith.constant 1920 : index
    %129 = vector.load %arg4[%c0_58, %c1920] : memref<1x4352xf32, #tpu.memory_space<vmem>>, vector<1x512xf32>
    %c0_59 = arith.constant 0 : index
    %c0_60 = arith.constant 0 : index
    %130 = vector.load %arg10[%c0_59, %c0_60] : memref<512x32xbf16, #tpu.memory_space<vmem>>, vector<512x32xbf16>
    %c0_61 = arith.constant 0 : index
    %c3456 = arith.constant 3456 : index
    %131 = vector.load %arg4[%c0_61, %c3456] : memref<1x4352xf32, #tpu.memory_space<vmem>>, vector<1x32xf32>
    %cst_62 = arith.constant dense<0.000000e+00> : vector<8x512xf32>
    %132 = tpu.matmul %127, %128, %cst_62 {dimension_numbers = #tpu.dot_dimension_numbers<[1], [0], [0], [1], [0, 0, 1, 1], [], []>} : vector<8x32xbf16>, vector<32x512xbf16>, vector<8x512xf32> -> vector<8x512xf32>
    %133 = vector.broadcast %129 : vector<1x512xf32> to vector<8x512xf32>
    %134 = arith.addf %132, %133 : vector<8x512xf32>
    %135 = vector.extract_strided_slice %134 {offsets = [0, 0], sizes = [8, 128], strides = [1, 1]} : vector<8x512xf32> to vector<8x128xf32>
    %136 = arith.truncf %135 : vector<8x128xf32> to vector<8x128xbf16>
    %c0_63 = arith.constant 0 : index
    %c0_64 = arith.constant 0 : index
    %137 = vector.load %arg15[%c0_63, %c0_64] : memref<16x1024xbf16, #tpu.memory_space<vmem>>, vector<16x128xbf16>
    %c0_65 = arith.constant 0 : index
    %c512_66 = arith.constant 512 : index
    %138 = vector.load %arg15[%c0_65, %c512_66] : memref<16x1024xbf16, #tpu.memory_space<vmem>>, vector<16x128xbf16>
    %cst_67 = arith.constant dense<0.000000e+00> : vector<8x16xf32>
    %139 = tpu.matmul %136, %137, %cst_67 {dimension_numbers = #tpu.dot_dimension_numbers<[1], [1], [0], [0], [0, 0, 1, 0], [], []>} : vector<8x128xbf16>, vector<16x128xbf16>, vector<8x16xf32> -> vector<8x16xf32>
    %cst_68 = arith.constant 0.353553385 : f32
    %140 = vector.broadcast %cst_68 : f32 to vector<8x16xf32>
    %141 = arith.mulf %139, %140 : vector<8x16xf32>
    %cst_69 = arith.constant dense<0xFF800000> : vector<8xf32>
    %142 = vector.multi_reduction <maximumf>, %141, %cst_69 [1] : vector<8x16xf32> to vector<8xf32>
    %143 = vector.shape_cast %142 : vector<8xf32> to vector<8x1xf32>
    %144 = vector.broadcast %143 : vector<8x1xf32> to vector<8x16xf32>
    %145 = arith.subf %141, %144 : vector<8x16xf32>
    %146 = math.exp %145 : vector<8x16xf32>
    %cst_70 = arith.constant dense<0.000000e+00> : vector<8xf32>
    %147 = vector.multi_reduction <add>, %146, %cst_70 [1] : vector<8x16xf32> to vector<8xf32>
    %148 = vector.shape_cast %147 : vector<8xf32> to vector<8x1xf32>
    %149 = arith.truncf %146 : vector<8x16xf32> to vector<8x16xbf16>
    %cst_71 = arith.constant dense<0.000000e+00> : vector<8x128xf32>
    %150 = tpu.matmul %149, %138, %cst_71 {dimension_numbers = #tpu.dot_dimension_numbers<[1], [0], [0], [1], [0, 0, 1, 1], [], []>} : vector<8x16xbf16>, vector<16x128xbf16>, vector<8x128xf32> -> vector<8x128xf32>
    %151 = tpu.reciprocal %148 : vector<8x1xf32> -> vector<8x1xf32>
    %152 = vector.broadcast %151 : vector<8x1xf32> to vector<8x128xf32>
    %153 = arith.mulf %150, %152 : vector<8x128xf32>
    %154 = arith.truncf %153 : vector<8x128xf32> to vector<8x128xbf16>
    %c0_72 = arith.constant 0 : index
    %c0_73 = arith.constant 0 : index
    %155 = vector.load %arg16[%c0_72, %c0_73] : memref<8x512xbf16, #tpu.memory_space<vmem>>, vector<8x128xbf16>
    tpu.vector_store %arg16[%c0_72, %c0_73], %154 {strides = array<i32>} : memref<8x512xbf16, #tpu.memory_space<vmem>>, vector<8x128xbf16>,
    %156 = vector.extract_strided_slice %134 {offsets = [0, 128], sizes = [8, 128], strides = [1, 1]} : vector<8x512xf32> to vector<8x128xf32>
    %157 = arith.truncf %156 : vector<8x128xf32> to vector<8x128xbf16>
    %c0_74 = arith.constant 0 : index
    %c128_75 = arith.constant 128 : index
    %158 = vector.load %arg15[%c0_74, %c128_75] : memref<16x1024xbf16, #tpu.memory_space<vmem>>, vector<16x128xbf16>
    %c0_76 = arith.constant 0 : index
    %c640_77 = arith.constant 640 : index
    %159 = vector.load %arg15[%c0_76, %c640_77] : memref<16x1024xbf16, #tpu.memory_space<vmem>>, vector<16x128xbf16>
    %cst_78 = arith.constant dense<0.000000e+00> : vector<8x16xf32>
    %160 = tpu.matmul %157, %158, %cst_78 {dimension_numbers = #tpu.dot_dimension_numbers<[1], [1], [0], [0], [0, 0, 1, 0], [], []>} : vector<8x128xbf16>, vector<16x128xbf16>, vector<8x16xf32> -> vector<8x16xf32>
    %cst_79 = arith.constant 0.353553385 : f32
    %161 = vector.broadcast %cst_79 : f32 to vector<8x16xf32>
    %162 = arith.mulf %160, %161 : vector<8x16xf32>
    %cst_80 = arith.constant dense<0xFF800000> : vector<8xf32>
    %163 = vector.multi_reduction <maximumf>, %162, %cst_80 [1] : vector<8x16xf32> to vector<8xf32>
    %164 = vector.shape_cast %163 : vector<8xf32> to vector<8x1xf32>
    %165 = vector.broadcast %164 : vector<8x1xf32> to vector<8x16xf32>
    %166 = arith.subf %162, %165 : vector<8x16xf32>
    %167 = math.exp %166 : vector<8x16xf32>
    %cst_81 = arith.constant dense<0.000000e+00> : vector<8xf32>
    %168 = vector.multi_reduction <add>, %167, %cst_81 [1] : vector<8x16xf32> to vector<8xf32>
    %169 = vector.shape_cast %168 : vector<8xf32> to vector<8x1xf32>
    %170 = arith.truncf %167 : vector<8x16xf32> to vector<8x16xbf16>
    %cst_82 = arith.constant dense<0.000000e+00> : vector<8x128xf32>
    %171 = tpu.matmul %170, %159, %cst_82 {dimension_numbers = #tpu.dot_dimension_numbers<[1], [0], [0], [1], [0, 0, 1, 1], [], []>} : vector<8x16xbf16>, vector<16x128xbf16>, vector<8x128xf32> -> vector<8x128xf32>
    %172 = tpu.reciprocal %169 : vector<8x1xf32> -> vector<8x1xf32>
    %173 = vector.broadcast %172 : vector<8x1xf32> to vector<8x128xf32>
    %174 = arith.mulf %171, %173 : vector<8x128xf32>
    %175 = arith.truncf %174 : vector<8x128xf32> to vector<8x128xbf16>
    %c0_83 = arith.constant 0 : index
    %c128_84 = arith.constant 128 : index
    %176 = vector.load %arg16[%c0_83, %c128_84] : memref<8x512xbf16, #tpu.memory_space<vmem>>, vector<8x128xbf16>
    tpu.vector_store %arg16[%c0_83, %c128_84], %175 {strides = array<i32>} : memref<8x512xbf16, #tpu.memory_space<vmem>>, vector<8x128xbf16>,
    %177 = vector.extract_strided_slice %134 {offsets = [0, 256], sizes = [8, 128], strides = [1, 1]} : vector<8x512xf32> to vector<8x128xf32>
    %178 = arith.truncf %177 : vector<8x128xf32> to vector<8x128xbf16>
    %c0_85 = arith.constant 0 : index
    %c256_86 = arith.constant 256 : index
    %179 = vector.load %arg15[%c0_85, %c256_86] : memref<16x1024xbf16, #tpu.memory_space<vmem>>, vector<16x128xbf16>
    %c0_87 = arith.constant 0 : index
    %c768_88 = arith.constant 768 : index
    %180 = vector.load %arg15[%c0_87, %c768_88] : memref<16x1024xbf16, #tpu.memory_space<vmem>>, vector<16x128xbf16>
    %cst_89 = arith.constant dense<0.000000e+00> : vector<8x16xf32>
    %181 = tpu.matmul %178, %179, %cst_89 {dimension_numbers = #tpu.dot_dimension_numbers<[1], [1], [0], [0], [0, 0, 1, 0], [], []>} : vector<8x128xbf16>, vector<16x128xbf16>, vector<8x16xf32> -> vector<8x16xf32>
    %cst_90 = arith.constant 0.353553385 : f32
    %182 = vector.broadcast %cst_90 : f32 to vector<8x16xf32>
    %183 = arith.mulf %181, %182 : vector<8x16xf32>
    %cst_91 = arith.constant dense<0xFF800000> : vector<8xf32>
    %184 = vector.multi_reduction <maximumf>, %183, %cst_91 [1] : vector<8x16xf32> to vector<8xf32>
    %185 = vector.shape_cast %184 : vector<8xf32> to vector<8x1xf32>
    %186 = vector.broadcast %185 : vector<8x1xf32> to vector<8x16xf32>
    %187 = arith.subf %183, %186 : vector<8x16xf32>
    %188 = math.exp %187 : vector<8x16xf32>
    %cst_92 = arith.constant dense<0.000000e+00> : vector<8xf32>
    %189 = vector.multi_reduction <add>, %188, %cst_92 [1] : vector<8x16xf32> to vector<8xf32>
    %190 = vector.shape_cast %189 : vector<8xf32> to vector<8x1xf32>
    %191 = arith.truncf %188 : vector<8x16xf32> to vector<8x16xbf16>
    %cst_93 = arith.constant dense<0.000000e+00> : vector<8x128xf32>
    %192 = tpu.matmul %191, %180, %cst_93 {dimension_numbers = #tpu.dot_dimension_numbers<[1], [0], [0], [1], [0, 0, 1, 1], [], []>} : vector<8x16xbf16>, vector<16x128xbf16>, vector<8x128xf32> -> vector<8x128xf32>
    %193 = tpu.reciprocal %190 : vector<8x1xf32> -> vector<8x1xf32>
    %194 = vector.broadcast %193 : vector<8x1xf32> to vector<8x128xf32>
    %195 = arith.mulf %192, %194 : vector<8x128xf32>
    %196 = arith.truncf %195 : vector<8x128xf32> to vector<8x128xbf16>
    %c0_94 = arith.constant 0 : index
    %c256_95 = arith.constant 256 : index
    %197 = vector.load %arg16[%c0_94, %c256_95] : memref<8x512xbf16, #tpu.memory_space<vmem>>, vector<8x128xbf16>
    tpu.vector_store %arg16[%c0_94, %c256_95], %196 {strides = array<i32>} : memref<8x512xbf16, #tpu.memory_space<vmem>>, vector<8x128xbf16>,
    %198 = vector.extract_strided_slice %134 {offsets = [0, 384], sizes = [8, 128], strides = [1, 1]} : vector<8x512xf32> to vector<8x128xf32>
    %199 = arith.truncf %198 : vector<8x128xf32> to vector<8x128xbf16>
    %c0_96 = arith.constant 0 : index
    %c384_97 = arith.constant 384 : index
    %200 = vector.load %arg15[%c0_96, %c384_97] : memref<16x1024xbf16, #tpu.memory_space<vmem>>, vector<16x128xbf16>
    %c0_98 = arith.constant 0 : index
    %c896_99 = arith.constant 896 : index
    %201 = vector.load %arg15[%c0_98, %c896_99] : memref<16x1024xbf16, #tpu.memory_space<vmem>>, vector<16x128xbf16>
    %cst_100 = arith.constant dense<0.000000e+00> : vector<8x16xf32>
    %202 = tpu.matmul %199, %200, %cst_100 {dimension_numbers = #tpu.dot_dimension_numbers<[1], [1], [0], [0], [0, 0, 1, 0], [], []>} : vector<8x128xbf16>, vector<16x128xbf16>, vector<8x16xf32> -> vector<8x16xf32>
    %cst_101 = arith.constant 0.353553385 : f32
    %203 = vector.broadcast %cst_101 : f32 to vector<8x16xf32>
    %204 = arith.mulf %202, %203 : vector<8x16xf32>
    %cst_102 = arith.constant dense<0xFF800000> : vector<8xf32>
    %205 = vector.multi_reduction <maximumf>, %204, %cst_102 [1] : vector<8x16xf32> to vector<8xf32>
    %206 = vector.shape_cast %205 : vector<8xf32> to vector<8x1xf32>
    %207 = vector.broadcast %206 : vector<8x1xf32> to vector<8x16xf32>
    %208 = arith.subf %204, %207 : vector<8x16xf32>
    %209 = math.exp %208 : vector<8x16xf32>
    %cst_103 = arith.constant dense<0.000000e+00> : vector<8xf32>
    %210 = vector.multi_reduction <add>, %209, %cst_103 [1] : vector<8x16xf32> to vector<8xf32>
    %211 = vector.shape_cast %210 : vector<8xf32> to vector<8x1xf32>
    %212 = arith.truncf %209 : vector<8x16xf32> to vector<8x16xbf16>
    %cst_104 = arith.constant dense<0.000000e+00> : vector<8x128xf32>
    %213 = tpu.matmul %212, %201, %cst_104 {dimension_numbers = #tpu.dot_dimension_numbers<[1], [0], [0], [1], [0, 0, 1, 1], [], []>} : vector<8x16xbf16>, vector<16x128xbf16>, vector<8x128xf32> -> vector<8x128xf32>
    %214 = tpu.reciprocal %211 : vector<8x1xf32> -> vector<8x1xf32>
    %215 = vector.broadcast %214 : vector<8x1xf32> to vector<8x128xf32>
    %216 = arith.mulf %213, %215 : vector<8x128xf32>
    %217 = arith.truncf %216 : vector<8x128xf32> to vector<8x128xbf16>
    %c0_105 = arith.constant 0 : index
    %c384_106 = arith.constant 384 : index
    %218 = vector.load %arg16[%c0_105, %c384_106] : memref<8x512xbf16, #tpu.memory_space<vmem>>, vector<8x128xbf16>
    tpu.vector_store %arg16[%c0_105, %c384_106], %217 {strides = array<i32>} : memref<8x512xbf16, #tpu.memory_space<vmem>>, vector<8x128xbf16>,
    %c0_107 = arith.constant 0 : index
    %c0_108 = arith.constant 0 : index
    %219 = vector.load %arg16[%c0_107, %c0_108] : memref<8x512xbf16, #tpu.memory_space<vmem>>, vector<8x512xbf16>
    %cst_109 = arith.constant dense<0.000000e+00> : vector<8x32xf32>
    %220 = tpu.matmul %219, %130, %cst_109 {dimension_numbers = #tpu.dot_dimension_numbers<[1], [0], [0], [1], [0, 0, 1, 1], [], []>} : vector<8x512xbf16>, vector<512x32xbf16>, vector<8x32xf32> -> vector<8x32xf32>
    %221 = vector.broadcast %131 : vector<1x32xf32> to vector<8x32xf32>
    %222 = arith.addf %220, %221 : vector<8x32xf32>
    %223 = arith.addf %126, %222 : vector<8x32xf32>
    %c0_110 = arith.constant 0 : index
    %c3584 = arith.constant 3584 : index
    %224 = vector.load %arg4[%c0_110, %c3584] : memref<1x4352xf32, #tpu.memory_space<vmem>>, vector<1x32xf32>
    %c0_111 = arith.constant 0 : index
    %c3712 = arith.constant 3712 : index
    %225 = vector.load %arg4[%c0_111, %c3712] : memref<1x4352xf32, #tpu.memory_space<vmem>>, vector<1x32xf32>
    %cst_112 = arith.constant dense<0.000000e+00> : vector<8xf32>
    %226 = vector.multi_reduction <add>, %223, %cst_112 [1] : vector<8x32xf32> to vector<8xf32>
    %227 = vector.shape_cast %226 : vector<8xf32> to vector<8x1xf32>
    %cst_113 = arith.constant 3.200000e+01 : f32
    %228 = vector.broadcast %cst_113 : f32 to vector<8x1xf32>
    %229 = arith.divf %227, %228 : vector<8x1xf32>
    %230 = vector.broadcast %229 : vector<8x1xf32> to vector<8x32xf32>
    %231 = arith.subf %223, %230 : vector<8x32xf32>
    %232 = arith.mulf %231, %231 : vector<8x32xf32>
    %cst_114 = arith.constant dense<0.000000e+00> : vector<8xf32>
    %233 = vector.multi_reduction <add>, %232, %cst_114 [1] : vector<8x32xf32> to vector<8xf32>
    %234 = vector.shape_cast %233 : vector<8xf32> to vector<8x1xf32>
    %cst_115 = arith.constant 3.200000e+01 : f32
    %235 = vector.broadcast %cst_115 : f32 to vector<8x1xf32>
    %236 = arith.divf %234, %235 : vector<8x1xf32>
    %cst_116 = arith.constant 9.99999974E-6 : f32
    %237 = vector.broadcast %cst_116 : f32 to vector<8x1xf32>
    %238 = arith.addf %236, %237 : vector<8x1xf32>
    %239 = math.rsqrt %238 : vector<8x1xf32>
    %240 = vector.broadcast %239 : vector<8x1xf32> to vector<8x32xf32>
    %241 = arith.mulf %231, %240 : vector<8x32xf32>
    %242 = vector.broadcast %224 : vector<1x32xf32> to vector<8x32xf32>
    %243 = arith.mulf %241, %242 : vector<8x32xf32>
    %244 = vector.broadcast %225 : vector<1x32xf32> to vector<8x32xf32>
    %245 = arith.addf %243, %244 : vector<8x32xf32>
    %246 = arith.truncf %245 : vector<8x32xf32> to vector<8x32xbf16>
    %c0_117 = arith.constant 0 : index
    %c0_118 = arith.constant 0 : index
    %247 = vector.load %arg11[%c0_117, %c0_118] : memref<32x64xbf16, #tpu.memory_space<vmem>>, vector<32x64xbf16>
    %cst_119 = arith.constant dense<0.000000e+00> : vector<8x64xf32>
    %248 = tpu.matmul %246, %247, %cst_119 {dimension_numbers = #tpu.dot_dimension_numbers<[1], [0], [0], [1], [0, 0, 1, 1], [], []>} : vector<8x32xbf16>, vector<32x64xbf16>, vector<8x64xf32> -> vector<8x64xf32>
    %c0_120 = arith.constant 0 : index
    %c3840 = arith.constant 3840 : index
    %249 = vector.load %arg4[%c0_120, %c3840] : memref<1x4352xf32, #tpu.memory_space<vmem>>, vector<1x64xf32>
    %250 = vector.broadcast %249 : vector<1x64xf32> to vector<8x64xf32>
    %251 = arith.addf %248, %250 : vector<8x64xf32>
    %cst_121 = arith.constant 0.000000e+00 : f32
    %252 = vector.broadcast %cst_121 : f32 to vector<8x64xf32>
    %253 = arith.maximumf %251, %252 : vector<8x64xf32>
    %254 = arith.truncf %253 : vector<8x64xf32> to vector<8x64xbf16>
    %c0_122 = arith.constant 0 : index
    %c0_123 = arith.constant 0 : index
    %255 = vector.load %arg12[%c0_122, %c0_123] : memref<64x32xbf16, #tpu.memory_space<vmem>>, vector<64x32xbf16>
    %cst_124 = arith.constant dense<0.000000e+00> : vector<8x32xf32>
    %256 = tpu.matmul %254, %255, %cst_124 {dimension_numbers = #tpu.dot_dimension_numbers<[1], [0], [0], [1], [0, 0, 1, 1], [], []>} : vector<8x64xbf16>, vector<64x32xbf16>, vector<8x32xf32> -> vector<8x32xf32>
    %c0_125 = arith.constant 0 : index
    %c3968 = arith.constant 3968 : index
    %257 = vector.load %arg4[%c0_125, %c3968] : memref<1x4352xf32, #tpu.memory_space<vmem>>, vector<1x32xf32>
    %258 = vector.broadcast %257 : vector<1x32xf32> to vector<8x32xf32>
    %259 = arith.addf %256, %258 : vector<8x32xf32>
    %260 = arith.addf %245, %259 : vector<8x32xf32>
    %c0_126 = arith.constant 0 : index
    %c4096 = arith.constant 4096 : index
    %261 = vector.load %arg4[%c0_126, %c4096] : memref<1x4352xf32, #tpu.memory_space<vmem>>, vector<1x32xf32>
    %c0_127 = arith.constant 0 : index
    %c4224 = arith.constant 4224 : index
    %262 = vector.load %arg4[%c0_127, %c4224] : memref<1x4352xf32, #tpu.memory_space<vmem>>, vector<1x32xf32>
    %cst_128 = arith.constant dense<0.000000e+00> : vector<8xf32>
    %263 = vector.multi_reduction <add>, %260, %cst_128 [1] : vector<8x32xf32> to vector<8xf32>
    %264 = vector.shape_cast %263 : vector<8xf32> to vector<8x1xf32>
    %cst_129 = arith.constant 3.200000e+01 : f32
    %265 = vector.broadcast %cst_129 : f32 to vector<8x1xf32>
    %266 = arith.divf %264, %265 : vector<8x1xf32>
    %267 = vector.broadcast %266 : vector<8x1xf32> to vector<8x32xf32>
    %268 = arith.subf %260, %267 : vector<8x32xf32>
    %269 = arith.mulf %268, %268 : vector<8x32xf32>
    %cst_130 = arith.constant dense<0.000000e+00> : vector<8xf32>
    %270 = vector.multi_reduction <add>, %269, %cst_130 [1] : vector<8x32xf32> to vector<8xf32>
    %271 = vector.shape_cast %270 : vector<8xf32> to vector<8x1xf32>
    %cst_131 = arith.constant 3.200000e+01 : f32
    %272 = vector.broadcast %cst_131 : f32 to vector<8x1xf32>
    %273 = arith.divf %271, %272 : vector<8x1xf32>
    %cst_132 = arith.constant 9.99999974E-6 : f32
    %274 = vector.broadcast %cst_132 : f32 to vector<8x1xf32>
    %275 = arith.addf %273, %274 : vector<8x1xf32>
    %276 = math.rsqrt %275 : vector<8x1xf32>
    %277 = vector.broadcast %276 : vector<8x1xf32> to vector<8x32xf32>
    %278 = arith.mulf %268, %277 : vector<8x32xf32>
    %279 = vector.broadcast %261 : vector<1x32xf32> to vector<8x32xf32>
    %280 = arith.mulf %278, %279 : vector<8x32xf32>
    %281 = vector.broadcast %262 : vector<1x32xf32> to vector<8x32xf32>
    %282 = arith.addf %280, %281 : vector<8x32xf32>
    %283 = arith.truncf %282 : vector<8x32xf32> to vector<8x32xbf16>
    %c0_133 = arith.constant 0 : index
    %c0_134 = arith.constant 0 : index
    %c0_135 = arith.constant 0 : index
    %284 = vector.load %arg13[%c0_133, %c0_134, %c0_135] : memref<1x8x32xbf16, #tpu.memory_space<vmem>>, vector<1x8x32xbf16>
    %285 = vector.shape_cast %284 : vector<1x8x32xbf16> to vector<8x32xbf16>
    %286 = vector.shape_cast %283 : vector<8x32xbf16> to vector<1x8x32xbf16>
    tpu.vector_store %arg13[%c0_133, %c0_134, %c0_135], %286 {strides = array<i32>} : memref<1x8x32xbf16, #tpu.memory_space<vmem>>, vector<1x8x32xbf16>,
    return
  }
  func.func @transform_0(%arg0: i32, %arg1: i32) -> (i32, i32, i32) {
    %c0_i32 = arith.constant 0 : i32
    %c0_i32_0 = arith.constant 0 : i32
    %c0_i32_1 = arith.constant 0 : i32
    return %arg0, %c0_i32, %c0_i32_0 : i32, i32, i32
  }
  func.func @transform_1(%arg0: i32, %arg1: i32) -> (i32, i32, i32) {
    %c0_i32 = arith.constant 0 : i32
    %c0_i32_0 = arith.constant 0 : i32
    %c0_i32_1 = arith.constant 0 : i32
    return %arg0, %c0_i32, %c0_i32_0 : i32, i32, i32
  }
  func.func @transform_2(%arg0: i32, %arg1: i32) -> (i32, i32) {
    %c0_i32 = arith.constant 0 : i32
    %c0_i32_0 = arith.constant 0 : i32
    %c0_i32_1 = arith.constant 0 : i32
    return %c0_i32, %c0_i32_0 : i32, i32
  }
  func.func @transform_3(%arg0: i32, %arg1: i32) -> (i32, i32) {
    %c0_i32 = arith.constant 0 : i32
    %c0_i32_0 = arith.constant 0 : i32
    %c0_i32_1 = arith.constant 0 : i32
    return %c0_i32, %c0_i32_0 : i32, i32
  }
  func.func @transform_4(%arg0: i32, %arg1: i32) -> (i32, i32) {
    %c0_i32 = arith.constant 0 : i32
    %c0_i32_0 = arith.constant 0 : i32
    %c0_i32_1 = arith.constant 0 : i32
    return %c0_i32, %c0_i32_0 : i32, i32
  }
  func.func @transform_5(%arg0: i32, %arg1: i32) -> (i32, i32) {
    %c0_i32 = arith.constant 0 : i32
    %c0_i32_0 = arith.constant 0 : i32
    %c0_i32_1 = arith.constant 0 : i32
    return %c0_i32, %c0_i32_0 : i32, i32
  }
  func.func @transform_6(%arg0: i32, %arg1: i32) -> (i32, i32) {
    %c0_i32 = arith.constant 0 : i32
    %c0_i32_0 = arith.constant 0 : i32
    %c0_i32_1 = arith.constant 0 : i32
    return %c0_i32, %c0_i32_0 : i32, i32
  }
  func.func @transform_7(%arg0: i32, %arg1: i32) -> (i32, i32) {
    %c0_i32 = arith.constant 0 : i32
    %c0_i32_0 = arith.constant 0 : i32
    %c0_i32_1 = arith.constant 0 : i32
    return %c0_i32, %c0_i32_0 : i32, i32
  }
  func.func @transform_8(%arg0: i32, %arg1: i32) -> (i32, i32) {
    %c0_i32 = arith.constant 0 : i32
    %c0_i32_0 = arith.constant 0 : i32
    %c0_i32_1 = arith.constant 0 : i32
    return %c0_i32, %c0_i32_0 : i32, i32
  }
  func.func @transform_9(%arg0: i32, %arg1: i32) -> (i32, i32) {
    %c0_i32 = arith.constant 0 : i32
    %c0_i32_0 = arith.constant 0 : i32
    %c0_i32_1 = arith.constant 0 : i32
    return %c0_i32, %c0_i32_0 : i32, i32
  }
  func.func @transform_10(%arg0: i32, %arg1: i32) -> (i32, i32) {
    %c0_i32 = arith.constant 0 : i32
    %c0_i32_0 = arith.constant 0 : i32
    %c0_i32_1 = arith.constant 0 : i32
    return %c0_i32, %c0_i32_0 : i32, i32
  }
  func.func @transform_11(%arg0: i32, %arg1: i32) -> (i32, i32, i32) {
    %c0_i32 = arith.constant 0 : i32
    %c0_i32_0 = arith.constant 0 : i32
    return %arg0, %arg1, %c0_i32 : i32, i32, i32
  }
}

</mosaic_0001>

<bundles_post_ra>
// kernel: tpu_custom_call.1
= control target key start
LH: loop header
LB: loop body
LE: loop exit
PB: predicated region body
PF: predicated region fallthrough
CT: control target
= control target key end

     0   :  { %16 = vsyncpa [#allocation6], 0  ;;  %s5043_s0 = inlined_call_operand.vmem [shape: bf16[2,16,32], index: 0, kind: input, shape index: {}]   ;;  %s5044_s1 = inlined_call_operand.vmem [shape: bf16[2,16,32], index: 1, kind: input, shape index: {}]   ;;  %s5045_s2 = inlined_call_operand.vmem [shape: f32[1,4352], index: 2, kind: input, shape index: {}]   ;;  %s5046_s3 = inlined_call_operand.vmem [shape: bf16[32,512], index: 3, kind: input, shape index: {}]   ;;  %s5047_s4 = inlined_call_operand.vmem [shape: bf16[32,1024], index: 4, kind: input, shape index: {}]   ;;  %s5048_s5 = inlined_call_operand.vmem [shape: bf16[512,32], index: 5, kind: input, shape index: {}]   ;;  %s5049_s6 = inlined_call_operand.vmem [shape: bf16[32,512], index: 6, kind: input, shape index: {}]   ;;  %s5050_s7 = inlined_call_operand.vmem [shape: bf16[32,1024], index: 7, kind: input, shape index: {}]   ;;  %s5051_s8 = inlined_call_operand.vmem [shape: bf16[512,32], index: 8, kind: input, shape index: {}]   ;;  %s5052_s9 = inlined_call_operand.vmem [shape: bf16[32,64], index: 9, kind: input, shape index: {}]   ;;  %s5053_s10 = inlined_call_operand.vmem [shape: bf16[64,32], index: 10, kind: input, shape index: {}]   ;;  %s5054_s11 = inlined_call_operand.hbm [shape: bf16[2,16,32], index: 11, kind: output, shape index: {}]  }
   0x1   :  { %18 = vsyncpa [#allocation6 + $0x1], 0  ;;  %s4331_s17 = smov 0   ;;  %s4333_s18 = smov 0  }
   0x2   :  { %s4335_s19 = smov 0   ;;  %s4337_s20 = smov 0  }
   0x3   :  { %s4339_s21 = smov 0   ;;  %s4341_s22 = smov 0  }
   0x4   :  { %s4343_s23 = smov 0   ;;  %s4345_s24 = smov 0  }
   0x5 LB: > { %5062 = sst [smem:[#allocation8_spill]] %s4244_s19  ;;  %s3483_s25 = sadd.s32 4294967295, %s4264_s24   ;;  %s4264_s24 = sphi %s4345_s24, %s24_s24   ;;  %s4260_s23 = sphi %s4343_s23, %s5080_s23   ;;  %s4256_s22 = sphi %s4341_s22, %s5079_s22   ;;  %s4252_s21 = sphi %s4339_s21, %s5078_s21   ;;  %s4248_s20 = sphi %s4337_s20, %s5077_s20   ;;  %s4244_s19 = sphi %s4335_s19, %s5076_s19   ;;  %s4240_s18 = sphi %s4333_s18, %s5082_s18   ;;  %s4236_s17 = sphi %s4331_s17, %s5081_s17  }
   0x6   : > { %5063 = sst [smem:[#allocation9_spill]] %s4256_s22  ;;  %s3484_s26 = sadd.s32 4294967294, %s4264_s24  }
   0x7   : > { %5064 = sst [smem:[#allocation10_spill]] %s4260_s23  ;;  %s33_s27 = sadd.s32 1, %s4256_s22 }
   0x8   : > { %p34_p0 = scmp.ge.s32.totalorder %s33_s27, 2  ;;  %s36_s28 = sadd.s32 1, %s4260_s23 }
   0x9   : > { %p296_p1 = scmp.ne.s32.totalorder %s4244_s19, %s4240_s18  ;;  %p297_p2 = scmp.eq.s32.totalorder %s3483_s25, 3 }
   0xa   : > { %s5084_s27 = smov (%p34_p0, %s33_s27), 0  ;;  %s5086_s28 = smov (!%p34_p0, %s36_s28), %s4260_s23 }
   0xb   : > { %5065 = sst [smem:[#allocation11_spill]] %s5084_s27  ;;  %s282_s29 = ssub.s32 %s4256_s22, %s5084_s27 }
   0xc   : > { %p4382_p3 = por %p297_p2, %p296_p1  ;;  %p38_p4 = scmp.ge.s32.totalorder %s5086_s28, 2 }
   0xd   : > { %p302_p5 = scmp.ne.s32.totalorder %s4240_s18, %s4236_s17  ;;  %p303_p6 = scmp.eq.s32.totalorder %s3484_s26, 3 }
   0xe   : > { %p3487_p7 = scmp.ge.s32.totalorder %s4264_s24, 1  ;;  %s5088_s28 = smov (%p38_p4, %s5086_s28), 0 }
   0xf   : > { %5067 = sst [smem:[#allocation12_spill]] %s5088_s28  ;;  %p4391_p8 = por %p303_p6, %p302_p5 }
  0x10   : > { %p364_p9 = scmp.lt.s32.totalorder %s4264_s24, 5  ;;  %s281_s13 = ssub.s32 %s4260_s23, %s5088_s28 }
  0x11   : > { %s5068_s12 = scalar_select %p4391_p8, 1, 0 }
  0x12   : > { %s286_s14 = sadd.s32 1, %s4244_s19  ;;  %s283_s15 = sor.u32 %s282_s29, %s281_s13 }
  0x13   : > { %5069 = sst [smem:[#allocation13_spill]] %s5068_s12  ;;  %p365_p10 = pnand %p3487_p7, %p364_p9 }
  0x14   : > { %p284_p11 = scmp.eq.s32.totalorder %s283_s15, 0  ;;  %s5060_s25 = sand.u32 (!%p365_p10), 1, %s4240_s18  }
  0x15   : > { %368 = sbr.rel (%p365_p10) target bundleno = 3589 (0xe05), region = 64  ;;  %p409_p12 = scmp.lt.s32.totalorder (!%p365_p10), %s4252_s21, 1 }
  0x16   : > { %s4400_s16 = scalar_select %p284_p11, %s4244_s19, %s286_s14  }
  0x17   : > { %s4406_s26 = sshll.u32 (!%p365_p10), %s5060_s25, 2  ;;  %p3493_p13 = scmp.ne.s32.totalorder (!%p365_p10), %s4248_s20, 0 }
  0x18   : > { %5070 = sst [smem:[#allocation14_spill]] %s4400_s16 }
  0x1a   : > { %s410_s27 = scalar_select %p409_p12, %s4252_s21, 1 }
  0x1b   : > { %423 = sbr.rel (%p3493_p13) target bundleno = 272 (0x110), region = 68 }
  0x1c   : > { %s3693_s22 = sshll.u32 %s410_s27, 3 }
  0x1d   : > { %s4412_s29 = scalar_lea.vmem %s5043_s0, %s3693_s22  ;;  %s4417_s15 = scalar_lea.vmem %s5044_s1, %s3693_s22 }
  0x20   : > { %v434_v0 = vld [vmem:[%s5047_s4 + $0x40] sm:$0xff]  ;;  %v435_v2 = vld [vmem:[%s5047_s4 + $0x48] sm:$0xff]  ;;  %v4266_v8 = vmov 0   ;;  %v436_v15 = vld [vmem:[%s5047_s4 + $0x50] sm:$0xff]  ;;  %vm569_vm0 = vcmask 261120  }
  0x21   : > { %v438_v1 = vld [vmem:[%s5047_s4 + $0x60] sm:$0xff]  ;;  %v439_v4 = vld [vmem:[%s5047_s4 + $0x68] sm:$0xff]  ;;  %605 = vmatprep.mubr.bf16.mxu0 %v4266_v8  ;;  %648 = vmatprep.mubr.bf16.mxu1 %v4266_v8  ;;  %v440_v17 = vld [vmem:[%s5047_s4 + $0x70] sm:$0xff] }
  0x22   : > { %v3504_v3 = vcombine.high %v434_v0, %v438_v1  ;;  %v3503_v5 = vcombine.low %v434_v0, %v438_v1  ;;  %v426_v6 = vld [vmem:[%s5047_s4] sm:$0xff]  ;;  %v3506_v9 = vcombine.high %v435_v2, %v439_v4  ;;  %v3505_v10 = vcombine.low %v435_v2, %v439_v4  ;;  %v427_v12 = vld [vmem:[%s5047_s4 + $0x8] sm:$0xff]  ;;  %v437_v18 = vld [vmem:[%s5047_s4 + $0x58] sm:$0xff] }
  0x23   : > { %v430_v7 = vld [vmem:[%s5047_s4 + $0x20] sm:$0xff]  ;;  %v431_v13 = vld [vmem:[%s5047_s4 + $0x28] sm:$0xff]  ;;  %v441_v19 = vld [vmem:[%s5047_s4 + $0x78] sm:$0xff]  ;;  %v3508_v21 = vcombine.high %v436_v15, %v440_v17  ;;  %v3507_v28 = vcombine.low %v436_v15, %v440_v17 }
  0x24   : > { %v3496_v11 = vcombine.high %v426_v6, %v430_v7  ;;  %585 = vmatprep.subr.bf16.mxu0 %v3504_v3  ;;  %v3498_v14 = vcombine.high %v427_v12, %v431_v13  ;;  %628 = vmatprep.subr.bf16.mxu1 %v3506_v9  ;;  %v3495_v16 = vcombine.low %v426_v6, %v430_v7  ;;  %v428_v23 = vld [vmem:[%s5047_s4 + $0x10] sm:$0xff]  ;;  %v4030_v25 = vld [vmem:[%s4412_s29] sm:$0xff]   ;;  %v429_v26 = vld [vmem:[%s5047_s4 + $0x18] sm:$0xff]  ;;  %v444_v3 = vlaneseq }
  0x25   : > { %586 = vmatpush1.bf16.msra.mxu0 %v3503_v5  ;;  %629 = vmatpush1.bf16.msra.mxu1 %v3505_v10  ;;  %v3497_v20 = vcombine.low %v427_v12, %v431_v13  ;;  %v3510_v22 = vcombine.high %v437_v18, %v441_v19  ;;  %v432_v24 = vld [vmem:[%s5047_s4 + $0x30] sm:$0xff]  ;;  %v433_v27 = vld [vmem:[%s5047_s4 + $0x38] sm:$0xff]  ;;  %v3509_v29 = vcombine.low %v437_v18, %v441_v19  ;;  %v811_v32 = vld [vmem:[%s5050_s7 + $0x40] sm:$0xff] }
  0x26   : > { %587 = vmatprep.subr.bf16.mxu0 %v3496_v11  ;;  %630 = vmatprep.subr.bf16.mxu1 %v3498_v14  ;;  %v3500_v30 = vcombine.high %v428_v23, %v432_v24  ;;  %v3502_v31 = vcombine.high %v429_v26, %v433_v27  ;;  %v815_v33 = vld [vmem:[%s5050_s7 + $0x60] sm:$0xff]  ;;  %v812_v34 = vld [vmem:[%s5050_s7 + $0x48] sm:$0xff]  ;;  %v3499_v36 = vcombine.low %v428_v23, %v432_v24  ;;  %v813_v48 = vld [vmem:[%s5050_s7 + $0x50] sm:$0xff]  ;;  %v4535_v4 = vshrl.u32 %v444_v3, 7 }
  0x27   : > { %v816_v35 = vld [vmem:[%s5050_s7 + $0x68] sm:$0xff]  ;;  %v3501_v37 = vcombine.low %v429_v26, %v433_v27  ;;  %v3533_v38 = vcombine.high %v811_v32, %v815_v33  ;;  %v803_v40 = vld [vmem:[%s5050_s7] sm:$0xff]  ;;  %v3532_v44 = vcombine.low %v811_v32, %v815_v33  ;;  %v817_v49 = vld [vmem:[%s5050_s7 + $0x70] sm:$0xff] }
  0x28   : > { %v3535_v39 = vcombine.high %v812_v34, %v816_v35  ;;  %v807_v41 = vld [vmem:[%s5050_s7 + $0x20] sm:$0xff]  ;;  %v804_v42 = vld [vmem:[%s5050_s7 + $0x8] sm:$0xff]  ;;  %v3534_v45 = vcombine.low %v812_v34, %v816_v35  ;;  %v814_v50 = vld [vmem:[%s5050_s7 + $0x58] sm:$0xff]  ;;  %v3537_v54 = vcombine.high %v813_v48, %v817_v49  ;;  %v3536_v61 = vcombine.low %v813_v48, %v817_v49 }
  0x29   : > { %588 = vmatpush1.bf16.msra.mxu0 %v3495_v16  ;;  %631 = vmatpush1.bf16.msra.mxu1 %v3497_v20  ;;  %v808_v43 = vld [vmem:[%s5050_s7 + $0x28] sm:$0xff]  ;;  %v3525_v46 = vcombine.high %v803_v40, %v807_v41  ;;  %v818_v51 = vld [vmem:[%s5050_s7 + $0x78] sm:$0xff]  ;;  %v3524_v52 = vcombine.low %v803_v40, %v807_v41  ;;  %v805_v56 = vld [vmem:[%s5050_s7 + $0x10] sm:$0xff]  ;;  %v446_v5 = vsub.s32 0, %v4535_v4  ;;  %v450_v6 = vsub.s32 1, %v4535_v4 }
  0x2a   : > { %671 = vmatprep.subr.bf16.mxu0 %v3508_v21  ;;  %714 = vmatprep.subr.bf16.mxu1 %v3510_v22  ;;  %v3527_v47 = vcombine.high %v804_v42, %v808_v43  ;;  %v3526_v53 = vcombine.low %v804_v42, %v808_v43  ;;  %v3539_v55 = vcombine.high %v814_v50, %v818_v51  ;;  %v809_v57 = vld [vmem:[%s5050_s7 + $0x30] sm:$0xff]  ;;  %v4031_v58 = vld [vmem:[%s4417_s15] sm:$0xff]   ;;  %v806_v59 = vld [vmem:[%s5050_s7 + $0x18] sm:$0xff]  ;;  %v454_v9 = vsub.s32 2, %v4535_v4 }
  0x2b   : > { %v810_v60 = vld [vmem:[%s5050_s7 + $0x38] sm:$0xff]  ;;  %v3538_v62 = vcombine.low %v814_v50, %v818_v51  ;;  %v3529_v63 = vcombine.high %v805_v56, %v809_v57  ;;  %v3528_v1 = vcombine.low %v805_v56, %v809_v57  ;;  %v442_v7 = vld [vmem:[%s5045_s2 + $0x4] sm:$0xff]  ;;  %v462_v20 = vsub.s32 4, %v4535_v4 }
  0x2c   : > { %3511 = vmatmul.mubr.msk.bf16.vlgmr.msra.gmra.mxu0 %vm569_vm0, %v4030_v25  ;;  %3512 = vmatmul.mubr.msk.bf16.vlgmr.msra.gmra.mxu1 %vm569_vm0, %v4030_v25  ;;  %v3531_v0 = vcombine.high %v806_v59, %v810_v60  ;;  %v3530_v2 = vcombine.low %v806_v59, %v810_v60  ;;  %v447_v10 = vrot.slane %v442_v7, %v446_v5  ;;  %v466_v21 = vsub.s32 5, %v4535_v4  ;;  %v819_v51 = vld [vmem:[%s5045_s2 + $0x13] sm:$0xff] }
  0x2d   : > { %672 = vmatpush1.bf16.msra.mxu0 %v3507_v28  ;;  %715 = vmatpush1.bf16.msra.mxu1 %v3509_v29  ;;  %v451_v11 = vrot.slane %v442_v7, %v450_v6  ;;  %v455_v13 = vrot.slane %v442_v7, %v454_v9  ;;  %v474_v26 = vsub.s32 7, %v4535_v4  ;;  %v463_v34 = vrot.slane %v442_v7, %v462_v20 }
  0x2e   : > { %673 = vmatprep.subr.bf16.mxu0 %v3500_v30  ;;  %716 = vmatprep.subr.bf16.mxu1 %v3502_v31  ;;  %v467_v35 = vrot.slane %v442_v7, %v466_v21  ;;  %v824_v59 = vrot.slane %v819_v51, %v446_v5  ;;  %v828_v60 = vrot.slane %v819_v51, %v450_v6 }
  0x2f   : > { %691 = vmatprep.mubr.bf16.mxu0 %v4266_v8  ;;  %734 = vmatprep.mubr.bf16.mxu1 %v4266_v8  ;;  %v475_v40 = vrot.slane %v442_v7, %v474_v26 }
  0x31   : > { %674 = vmatpush1.bf16.msra.mxu0 %v3499_v36  ;;  %717 = vmatpush1.bf16.msra.mxu1 %v3501_v37 }
  0x32   : > { %961 = vmatprep.subr.bf16.mxu0 %v3533_v38  ;;  %1004 = vmatprep.subr.bf16.mxu1 %v3535_v39 }
  0x34   : > { %3513 = vmatmul.mubr.msk.bf16.vlgmr.msra.gmra.mxu0 %vm569_vm0, %v4030_v25  ;;  %3514 = vmatmul.mubr.msk.bf16.vlgmr.msra.gmra.mxu1 %vm569_vm0, %v4030_v25  ;;  %v470_v25 = vsub.s32 6, %v4535_v4 }
  0x35   : > { %962 = vmatpush1.bf16.msra.mxu0 %v3532_v44  ;;  %1005 = vmatpush1.bf16.msra.mxu1 %v3534_v45 }
  0x36   : > { %963 = vmatprep.subr.bf16.mxu0 %v3525_v46  ;;  %1006 = vmatprep.subr.bf16.mxu1 %v3527_v47  ;;  %v471_v39 = vrot.slane %v442_v7, %v470_v25 }
  0x37   : > { %981 = vmatprep.mubr.bf16.mxu0 %v4266_v8  ;;  %1024 = vmatprep.mubr.bf16.mxu1 %v4266_v8 }
  0x39   : > { %964 = vmatpush1.bf16.msra.mxu0 %v3524_v52  ;;  %1007 = vmatpush1.bf16.msra.mxu1 %v3526_v53 }
  0x3a   : > { %1047 = vmatprep.subr.bf16.mxu0 %v3537_v54  ;;  %1090 = vmatprep.subr.bf16.mxu1 %v3539_v55 }
  0x3c   : > { %3540 = vmatmul.mubr.msk.bf16.vlgmr.msra.gmra.mxu0 %vm569_vm0, %v4031_v58  ;;  %3541 = vmatmul.mubr.msk.bf16.vlgmr.msra.gmra.mxu1 %vm569_vm0, %v4031_v58 }
  0x3d   : > { %1048 = vmatpush1.bf16.msra.mxu0 %v3536_v61  ;;  %1091 = vmatpush1.bf16.msra.mxu1 %v3538_v62 }
  0x3e   : > { %1049 = vmatprep.subr.bf16.mxu0 %v3529_v63  ;;  %1092 = vmatprep.subr.bf16.mxu1 %v3531_v0  ;;  %v832_v0 = vrot.slane %v819_v51, %v454_v9 }
  0x3f   : > { %1067 = vmatprep.mubr.bf16.mxu0 %v4266_v8  ;;  %1110 = vmatprep.mubr.bf16.mxu1 %v4266_v8  ;;  %v458_v8 = vsub.s32 3, %v4535_v4 }
  0x41   : > { %1050 = vmatpush1.bf16.msra.mxu0 %v3528_v1  ;;  %1093 = vmatpush1.bf16.msra.mxu1 %v3530_v2  ;;  %v459_v14 = vrot.slane %v442_v7, %v458_v8  ;;  %v836_v1 = vrot.slane %v819_v51, %v458_v8 }
  0x44   : > { %3542 = vmatmul.mubr.msk.bf16.vlgmr.msra.gmra.mxu0 %vm569_vm0, %v4031_v58  ;;  %3543 = vmatmul.mubr.msk.bf16.vlgmr.msra.gmra.mxu1 %vm569_vm0, %v4031_v58 }
  0xec   : > { %v607_v12 = vpop.f32.mrf.mxu0  ;;  %v650_v15 = vpop.f32.mrf.mxu1 }
  0xed   : > { %v608_v17 = vadd.f32 %v607_v12, %v447_v10  ;;  %v651_v22 = vadd.f32 %v650_v15, %v455_v13 }
  0xee   : > { %v609_v16 = vpop.f32.mrf.mxu0  ;;  %v652_v19 = vpop.f32.mrf.mxu1 }
  0xef   : > { %v610_v18 = vadd.f32 %v609_v16, %v451_v11  ;;  %v653_v23 = vadd.f32 %v652_v19, %v459_v14 }
  0xf0   : > { %v611_v24 = vpop.f32.mrf.mxu0  ;;  %v654_v28 = vpop.f32.mrf.mxu1 }
  0xf1   : > { %v3695_v27 = vpack.c.bf16 %v610_v18, %v608_v17  ;;  %v3696_v29 = vpack.c.bf16 %v653_v23, %v651_v22  ;;  %v612_v31 = vadd.f32 %v611_v24, %v447_v10  ;;  %v655_v36 = vadd.f32 %v654_v28, %v455_v13 }
  0xf2   : > { %v613_v30 = vpop.f32.mrf.mxu0  ;;  %v656_v33 = vpop.f32.mrf.mxu1  ;;  %v840_v22 = vrot.slane %v819_v51, %v462_v20  ;;  %v844_v23 = vrot.slane %v819_v51, %v466_v21 }
  0xf3   : > { %793 = vst [vmem:[#allocation2] sm:$0xff] %v3695_v27  ;;  %v614_v32 = vadd.f32 %v613_v30, %v451_v11  ;;  %794 = vst [vmem:[#allocation2 + $0x8] sm:$0xff] %v3696_v29  ;;  %v657_v37 = vadd.f32 %v656_v33, %v459_v14  ;;  %v848_v29 = vrot.slane %v819_v51, %v470_v25 }
  0xf4   : > { %v693_v38 = vpop.f32.mrf.mxu0  ;;  %v736_v42 = vpop.f32.mrf.mxu1  ;;  %v852_v30 = vrot.slane %v819_v51, %v474_v26 }
  0xf5   : > { %v3699_v41 = vpack.c.bf16 %v614_v32, %v612_v31  ;;  %v3700_v43 = vpack.c.bf16 %v657_v37, %v655_v36  ;;  %v694_v45 = vadd.f32 %v693_v38, %v463_v34  ;;  %v737_v48 = vadd.f32 %v736_v42, %v471_v39 }
  0xf6   : > { %v695_v44 = vpop.f32.mrf.mxu0  ;;  %v738_v47 = vpop.f32.mrf.mxu1 }
  0xf7   : > { %797 = vst [vmem:[#allocation2 + $0x20] sm:$0xff] %v3699_v41  ;;  %v696_v46 = vadd.f32 %v695_v44, %v467_v35  ;;  %798 = vst [vmem:[#allocation2 + $0x28] sm:$0xff] %v3700_v43  ;;  %v739_v49 = vadd.f32 %v738_v47, %v475_v40 }
  0xf8   : > { %v697_v50 = vpop.f32.mrf.mxu0  ;;  %v740_v53 = vpop.f32.mrf.mxu1 }
  0xf9   : > { %v3697_v52 = vpack.c.bf16 %v696_v46, %v694_v45  ;;  %v3698_v54 = vpack.c.bf16 %v739_v49, %v737_v48  ;;  %v698_v56 = vadd.f32 %v697_v50, %v463_v34  ;;  %v741_v61 = vadd.f32 %v740_v53, %v471_v39 }
  0xfa   : > { %v699_v55 = vpop.f32.mrf.mxu0  ;;  %v742_v58 = vpop.f32.mrf.mxu1 }
  0xfb   : > { %795 = vst [vmem:[#allocation2 + $0x10] sm:$0xff] %v3697_v52  ;;  %v700_v57 = vadd.f32 %v699_v55, %v467_v35  ;;  %796 = vst [vmem:[#allocation2 + $0x18] sm:$0xff] %v3698_v54  ;;  %v743_v62 = vadd.f32 %v742_v58, %v475_v40 }
  0xfc   : > { %v983_v63 = vpop.f32.mrf.mxu0  ;;  %v1026_v3 = vpop.f32.mrf.mxu1 }
  0xfd   : > { %v3701_v2 = vpack.c.bf16 %v700_v57, %v698_v56  ;;  %v3702_v7 = vpack.c.bf16 %v743_v62, %v741_v61  ;;  %v984_v11 = vadd.f32 %v983_v63, %v824_v59  ;;  %v1027_v14 = vadd.f32 %v1026_v3, %v832_v0 }
  0xfe   : > { %v985_v10 = vpop.f32.mrf.mxu0  ;;  %v1028_v13 = vpop.f32.mrf.mxu1 }
  0xff   : > { %799 = vst [vmem:[#allocation2 + $0x30] sm:$0xff] %v3701_v2  ;;  %v986_v12 = vadd.f32 %v985_v10, %v828_v60  ;;  %800 = vst [vmem:[#allocation2 + $0x38] sm:$0xff] %v3702_v7  ;;  %v1029_v15 = vadd.f32 %v1028_v13, %v836_v1 }
 0x100   : > { %v987_v16 = vpop.f32.mrf.mxu0  ;;  %v1030_v6 = vpop.f32.mrf.mxu1 }
 0x101   : > { %v3703_v5 = vpack.c.bf16 %v986_v12, %v984_v11  ;;  %v3704_v17 = vpack.c.bf16 %v1029_v15, %v1027_v14  ;;  %v988_v19 = vadd.f32 %v987_v16, %v824_v59  ;;  %v1031_v24 = vadd.f32 %v1030_v6, %v832_v0 }
 0x102   : > { %v989_v18 = vpop.f32.mrf.mxu0  ;;  %v1032_v8 = vpop.f32.mrf.mxu1 }
 0x103   : > { %1169 = vst [vmem:[#allocation3] sm:$0xff] %v3703_v5  ;;  %v990_v9 = vadd.f32 %v989_v18, %v828_v60  ;;  %1170 = vst [vmem:[#allocation3 + $0x8] sm:$0xff] %v3704_v17  ;;  %v1033_v27 = vadd.f32 %v1032_v8, %v836_v1 }
 0x104   : > { %v1069_v28 = vpop.f32.mrf.mxu0  ;;  %v1112_v32 = vpop.f32.mrf.mxu1 }
 0x105   : > { %v3707_v31 = vpack.c.bf16 %v990_v9, %v988_v19  ;;  %v3708_v33 = vpack.c.bf16 %v1033_v27, %v1031_v24  ;;  %v1070_v35 = vadd.f32 %v1069_v28, %v840_v22  ;;  %v1113_v21 = vadd.f32 %v1112_v32, %v848_v29 }
 0x106   : > { %v1071_v34 = vpop.f32.mrf.mxu0  ;;  %v1114_v36 = vpop.f32.mrf.mxu1 }
 0x107   : > { %1173 = vst [vmem:[#allocation3 + $0x20] sm:$0xff] %v3707_v31  ;;  %v1072_v20 = vadd.f32 %v1071_v34, %v844_v23  ;;  %1174 = vst [vmem:[#allocation3 + $0x28] sm:$0xff] %v3708_v33  ;;  %v1115_v37 = vadd.f32 %v1114_v36, %v852_v30 }
 0x108   : > { %v1073_v38 = vpop.f32.mrf.mxu0  ;;  %v1116_v40 = vpop.f32.mrf.mxu1 }
 0x109   : > { %v3705_v39 = vpack.c.bf16 %v1072_v20, %v1070_v35  ;;  %v3706_v41 = vpack.c.bf16 %v1115_v37, %v1113_v21  ;;  %v1074_v25 = vadd.f32 %v1073_v38, %v840_v22  ;;  %v1117_v43 = vadd.f32 %v1116_v40, %v848_v29 }
 0x10a   : > { %v1075_v42 = vpop.f32.mrf.mxu0  ;;  %v1118_v26 = vpop.f32.mrf.mxu1 }
 0x10b   : > { %1171 = vst [vmem:[#allocation3 + $0x10] sm:$0xff] %v3705_v39  ;;  %v1076_v4 = vadd.f32 %v1075_v42, %v844_v23  ;;  %1172 = vst [vmem:[#allocation3 + $0x18] sm:$0xff] %v3706_v41  ;;  %v1119_v44 = vadd.f32 %v1118_v26, %v852_v30 }
 0x10d   : > { %v3709_v45 = vpack.c.bf16 %v1076_v4, %v1074_v25  ;;  %v3710_v46 = vpack.c.bf16 %v1119_v44, %v1117_v43 }
 0x10f   : > { %1175 = vst [vmem:[#allocation3 + $0x30] sm:$0xff] %v3709_v45  ;;  %1176 = vst [vmem:[#allocation3 + $0x38] sm:$0xff] %v3710_v46 }
 0x110 PF: > { %v4032_v47 = vld [vmem:[%s5046_s3 + $0x24] ss:$16 sps:$4 sm:$0xff]   ;;  %s3552_s14 = sshll.u32 %s4248_s20, 3  ;;  %v4034_v48 = vld [vmem:[%s5046_s3 + $0x20] ss:$16 sps:$4 sm:$0xff]   ;;  %v4267_v49 = vmov 0   ;;  %v1259_v61 = vlaneseq }
 0x111   : > { %1355 = vmatprep.mubr.bf16.mxu0 %v4267_v49  ;;  %s1178_s12 = sshra.s32 %s3552_s14, 3  ;;  %1396 = vmatprep.mubr.bf16.mxu1 %v4267_v49  ;;  %v4035_v50 = vld [vmem:[%s5046_s3 + $0x4] ss:$16 sps:$4 sm:$0xff]   ;;  %v4037_v51 = vld [vmem:[%s5046_s3] ss:$16 sps:$4 sm:$0xff]   ;;  %vm1319_vm1 = vcmask 261120  }
 0x112   : > { %1335 = vmatprep.subr.bf16.mxu0 %v4032_v47  ;;  %s3553_s16 = sshll.u32 %s1178_s12, 2  ;;  %v4038_v52 = vld [vmem:[%s5046_s3 + $0x2c] ss:$16 sps:$4 sm:$0xff]   ;;  %v4040_v53 = vld [vmem:[%s5046_s3 + $0x28] ss:$16 sps:$4 sm:$0xff]   ;;  %v4268_v60 = vmov 0.0  }
 0x113   : > { %1336 = vmatpush1.bf16.msra.mxu0 %v4034_v48  ;;  %s1181_s13 = scalar_lea.vmem %s4412_s29, %s3553_s16  ;;  %1376 = vmatprep.subr.bf16.mxu1 %v4038_v52  ;;  %v4041_v55 = vld [vmem:[%s5046_s3 + $0xc] ss:$16 sps:$4 sm:$0xff]   ;;  %v1406_v56 = vld [vmem:[#allocation2] sm:$0xf]  ;;  %v4043_v57 = vld [vmem:[%s5046_s3 + $0x8] ss:$16 sps:$4 sm:$0xff]  }
 0x114   : > { %1337 = vmatprep.subr.bf16.mxu0 %v4035_v50  ;;  %v4589_v54 = vld [vmem:[%s1181_s13] sm:$0xf]  ;;  %1377 = vmatpush1.bf16.msra.mxu1 %v4040_v53  ;;  %vm4269_vm2 = vmmov 0   ;;  %v4608_v62 = vshrl.u32 %v1259_v61, 7  ;;  %v1522_v3 = vld [vmem:[#allocation2 + $0x4] sm:$0xf] }
 0x115   : > { %v1407_v58 = vld [vmem:[#allocation2 + $0x20] sm:$0xf]  ;;  %1378 = vmatprep.subr.bf16.mxu1 %v4041_v55  ;;  %v1523_v7 = vld [vmem:[#allocation2 + $0x24] sm:$0xf]  ;;  %v1637_v9 = vld [vmem:[#allocation2 + $0x8] sm:$0xf] }
 0x116   : > { %v3564_v59 = vcombine.low %v1406_v56, %v1407_v58  ;;  %v1261_v63 = vsub.s32 0, %v4608_v62  ;;  %v1192_v0 = vld [vmem:[%s5045_s2] sm:$0xf]  ;;  %v1265_v2 = vsub.s32 1, %v4608_v62  ;;  %v3567_v13 = vcombine.low %v1522_v3, %v1523_v7  ;;  %v1638_v8 = vld [vmem:[#allocation2 + $0x28] sm:$0xf] }
 0x117   : > { %1338 = vmatpush1.bf16.msra.mxu0 %v4037_v51  ;;  %v1269_v6 = vsub.s32 2, %v4608_v62  ;;  %v3570_v27 = vcombine.low %v1637_v9, %v1638_v8  ;;  %v1273_v30 = vsub.s32 3, %v4608_v62  ;;  %v1752_v31 = vld [vmem:[#allocation2 + $0xc] sm:$0xf]  ;;  %vm1457_vm3 = vcmask 130048   ;;  %s3689_s27 = sshll.u32 %s4252_s21, 1 }
 0x118   : > { %3839 = vmatprep.subr.bf16.mxu0 %v4268_v60  ;;  %1379 = vmatpush1.bf16.msra.mxu1 %v4043_v57  ;;  %v1262_v1 = vrot.slane %v1192_v0, %v1261_v63  ;;  %v1266_v15 = vrot.slane %v1192_v0, %v1265_v2  ;;  %v1753_v32 = vld [vmem:[#allocation2 + $0x2c] sm:$0xf]  ;;  %v1408_v56 = vld [vmem:[#allocation2 + $0x10] sm:$0xf]  ;;  %v1639_v8 = vld [vmem:[#allocation2 + $0x18] sm:$0xf]  ;;  %s3393_s12 = sadd.s32 %s4248_s20, %s3689_s27 }
 0x119   : > { %3845 = vmatprep.subr.bf16.mxu1 %v4268_v60  ;;  %v1270_v23 = vrot.slane %v1192_v0, %v1269_v6  ;;  %v3573_v34 = vcombine.low %v1752_v31, %v1753_v32  ;;  %v1274_v35 = vrot.slane %v1192_v0, %v1273_v30  ;;  %v1409_v57 = vld [vmem:[#allocation2 + $0x30] sm:$0xf]  ;;  %vm3304_vm4 = vcmask 523264   ;;  %s3690_s16 = sshll.u32 %s3393_s12, 6  ;;  %s5071_s13 = scalar_lea.vmem [#allocation5], %s4406_s26 }
 0x11a   : > { %3562 = vmatmul.mubr.msk.bf16.vlgmr.msra.gmra.mxu0 %vm1319_vm1, %v4589_v54  ;;  %s3397_s22 = sshll.u32 %s5071_s13, 4  ;;  %vm3379_vm5 = vcmask 257024   ;;  %s3395_s25 = scalar_lea.hbm %s5054_s11, %s3690_s16  ;;  %s3398_s22 = int_to_ptr.vmem [resolvable:$true] %s3397_s22 }
 0x11b   : > { %3840 = vmatpush3.bf16.xpose.msra.mxu0 %v3564_v59  ;;  %3563 = vmatmul.mubr.msk.bf16.vlgmr.msra.gmra.mxu1 %vm1319_vm1, %v4589_v54  ;;  %v3565_v59 = vcombine.low %v1408_v56, %v1409_v57  ;;  %v4061_v56 = vld [vmem:[%s5048_s5 + $0xe8] sm:$0xff]   ;;  %s5072_s14 = smov %s5071_s13  ;;  %s5073_s15 = sand.u32 1, %s4240_s18  }
 0x11c   : > { %3851 = vmatprep.subr.bf16.mxu0 %v4268_v60  ;;  %3841 = vmatprep.mubr.msk.bf16.mxu0 %vm4269_vm2, %v4268_v60  ;;  %v4062_v57 = vld [vmem:[%s5048_s5 + $0x8] sm:$0xff]   ;;  %s3382_s20 = scalar_lea.sflag [#allocation6], %s5073_s15  ;;  %s4172_s27 = scalar_lea.vmem %s3398_s22, 64 }
 0x11d   : > { %3847 = vmatprep.mubr.msk.bf16.mxu1 %vm4269_vm2, %v4268_v60  ;;  %3846 = vmatpush3.bf16.msra.mxu1 %v3565_v59  ;;  %v4064_v59 = vld [vmem:[%s5048_s5 + $0x40] sm:$0xff]   ;;  %p4173_p0 = scmp.ne.s32.totalorder %s3398_s22, %s4172_s27  ;;  %s4270_s29 = smov [#allocation5]  }
 0x11e   : > { %3857 = vmatprep.subr.bf16.mxu1 %v4268_v60  ;;  %s4176_s12 = sshll.u32 %s4270_s29, 4  ;;  %s4177_s12 = int_to_ptr.vmem [resolvable:$false] %s4176_s12 }
 0x11f   : > { %p4174_p1 = pnand %p4173_p0, %p4382_p3  ;;  %s4178_s23 = scalar_lea.vmem %s4177_s12, 128 }
 0x120   : > { %p4179_p4 = scmp.lt.s32.totalorder %s3398_s22, %s4177_s12  ;;  %p4180_p5 = scmp.lt.s32.totalorder %s4178_s23, %s4172_s27 }
 0x121   : > { %p4175_p2 = pneg %p4174_p1 }
 0x122   : > { %p4181_p6 = por %p4180_p5, %p4179_p4 }
 0x124   : > { %p4182_p7 = pnand %p4181_p6, %p4175_p2 }
 0x1da   : > { %v1357_v10 = vpop.f32.mrf.mxu0 }
 0x1db   : > { %v1358_v11 = vadd.f32 %v1357_v10, %v1262_v1  ;;  %v1398_v16 = vpop.f32.mrf.mxu1 }
 0x1dc   : > { %v1359_v12 = vpop.f32.mrf.mxu0  ;;  %v1399_v29 = vadd.f32 %v1398_v16, %v1270_v23 }
 0x1dd   : > { %v1405_v14 = vpack.c.bf16 %v1358_v11, %v1358_v11  ;;  %v1400_v17 = vpop.f32.mrf.mxu1  ;;  %v1360_v19 = vadd.f32 %v1359_v12, %v1266_v15 }
 0x1de   : > { %v1361_v5 = vpop.f32.mrf.mxu0  ;;  %v1636_v33 = vpack.c.bf16 %v1399_v29, %v1399_v29  ;;  %v1401_v20 = vadd.f32 %v1400_v17, %v1274_v35 }
 0x1df   : > { %3842 = vmatmul.mubr.bf16.vlgmr.msra.gmra.mxu0 %v1405_v14  ;;  %v1402_v22 = vpop.f32.mrf.mxu1  ;;  %v1521_v28 = vpack.c.bf16 %v1360_v19, %v1360_v19  ;;  %v1525_v14 = vld [vmem:[#allocation2 + $0x34] sm:$0xf] }
 0x1e0   : > { %3852 = vmatpush3.bf16.xpose.msra.mxu0 %v3567_v13  ;;  %v1362_v18 = vpop.f32.mrf.mxu0  ;;  %3853 = vmatprep.mubr.msk.bf16.mxu0 %vm4269_vm2, %v4268_v60  ;;  %v1751_v36 = vpack.c.bf16 %v1401_v20, %v1401_v20  ;;  %v1524_v13 = vld [vmem:[#allocation2 + $0x14] sm:$0xf]  ;;  %v1640_v22 = vld [vmem:[#allocation2 + $0x38] sm:$0xf] }
 0x1e1   : > { %3863 = vmatprep.subr.bf16.mxu0 %v4268_v60  ;;  %v1403_v24 = vpop.f32.mrf.mxu1  ;;  %v3568_v17 = vcombine.low %v1524_v13, %v1525_v14  ;;  %v4075_v13 = vld [vmem:[%s5048_s5 + $0x88] sm:$0xff]   ;;  %v4076_v14 = vld [vmem:[%s5048_s5 + $0xc0] sm:$0xff]  }
 0x1e7   : > { %3854 = vmatmul.mubr.bf16.vlgmr.msra.gmra.mxu0 %v1521_v28  ;;  %v3571_v28 = vcombine.low %v1639_v8, %v1640_v22 }
 0x1e8   : > { %3864 = vmatpush3.bf16.xpose.msra.mxu0 %v3570_v27  ;;  %3865 = vmatprep.mubr.msk.bf16.mxu0 %vm4269_vm2, %v4268_v60 }
 0x1e9   : > { %3875 = vmatprep.subr.bf16.mxu0 %v4268_v60 }
 0x1ef   : > { %3866 = vmatmul.mubr.bf16.vlgmr.msra.gmra.mxu0 %v1636_v33  ;;  %v1754_v33 = vld [vmem:[#allocation2 + $0x1c] sm:$0xf] }
 0x1f0   : > { %3876 = vmatpush3.bf16.xpose.msra.mxu0 %v3573_v34  ;;  %3877 = vmatprep.mubr.msk.bf16.mxu0 %vm4269_vm2, %v4268_v60  ;;  %v1755_v34 = vld [vmem:[#allocation2 + $0x3c] sm:$0xf] }
 0x1f1   : > { %v3574_v20 = vcombine.low %v1754_v33, %v1755_v34 }
 0x1f7   : > { %3878 = vmatmul.mubr.bf16.vlgmr.msra.gmra.mxu0 %v1751_v36 }
 0x29f   : > { %v1450_v21 = vpop.f32.mrf.mxu0 }
 0x2a0   : > { %v1456_v37 = vmul.f32 0.35355338, %v1450_v21 }
 0x2a1   : > { %v3843_v38 = vpop.f32.mrf.mxu0 }
 0x2a2   : > { %v1458_v39 = vsel %vm1457_vm3, %v1456_v37, -inf }
 0x2a3   : > { %1459 = vmax.xlane.f32.xlu0 %v1458_v39  ;;  %v1453_v40 = vpop.f32.mrf.mxu0 }
 0x2a4   : > { %v4044_v40 = vld [vmem:[%s5048_s5 + $0x78] sm:$0xff]  }
 0x2a5   : > { %v3844_v41 = vpop.f32.mrf.mxu0  ;;  %3727 = vmatprep.subr.bf16.mxu0 %v4044_v40 }
 0x2a6   : > { %v4045_v41 = vld [vmem:[%s5048_s5 + $0x38] sm:$0xff]  }
 0x2a7   : > { %v1566_v42 = vpop.f32.mrf.mxu0  ;;  %3728 = vmatpush3.bf16.msra.mxu0 %v4045_v41 }
 0x2a8   : > { %v1572_v25 = vmul.f32 0.35355338, %v1566_v42  ;;  %v4046_v42 = vld [vmem:[%s5048_s5 + $0x70] sm:$0xff]  }
 0x2a9   : > { %v3855_v4 = vpop.f32.mrf.mxu0  ;;  %3729 = vmatprep.subr.bf16.mxu0 %v4046_v42 }
 0x2aa   : > { %v1573_v26 = vsel %vm1457_vm3, %v1572_v25, -inf  ;;  %v4048_v4 = vld [vmem:[%s5048_s5 + $0x68] sm:$0xff]  }
 0x2ab   : > { %1574 = vmax.xlane.f32.xlu0 %v1573_v26  ;;  %v1569_v43 = vpop.f32.mrf.mxu0  ;;  %v4049_v26 = vld [vmem:[%s5048_s5 + $0x28] sm:$0xff]  }
 0x2ac   : > { %v4050_v43 = vld [vmem:[%s5048_s5 + $0x60] sm:$0xff]  }
 0x2ad   : > { %v3856_v44 = vpop.f32.mrf.mxu0 }
 0x2ae   : > { %v4051_v44 = vld [vmem:[%s5048_s5 + $0x20] sm:$0xff]  }
 0x2af   : > { %v1681_v45 = vpop.f32.mrf.mxu0 }
 0x2b0   : > { %v1687_v46 = vmul.f32 0.35355338, %v1681_v45  ;;  %v4052_v45 = vld [vmem:[%s5048_s5 + $0x58] sm:$0xff]  }
 0x2b1   : > { %v3867_v47 = vpop.f32.mrf.mxu0 }
 0x2b2   : > { %v1688_v48 = vsel %vm1457_vm3, %v1687_v46, -inf  ;;  %v4054_v47 = vld [vmem:[%s5048_s5 + $0x18] sm:$0xff]  }
 0x2b3   : > { %1689 = vmax.xlane.f32.xlu1 %v1688_v48  ;;  %v1684_v50 = vpop.f32.mrf.mxu0  ;;  %v4055_v48 = vld [vmem:[%s5048_s5 + $0xb8] sm:$0xff]  }
 0x2b4   : > { %v4056_v50 = vld [vmem:[%s5048_s5 + $0x50] sm:$0xff]  }
 0x2b5   : > { %v3868_v51 = vpop.f32.mrf.mxu0 }
 0x2b6   : > { %v4057_v51 = vld [vmem:[%s5048_s5 + $0xf0] sm:$0xff]  }
 0x2b7   : > { %v1796_v52 = vpop.f32.mrf.mxu0 }
 0x2b8   : > { %v1802_v53 = vmul.f32 0.35355338, %v1796_v52  ;;  %v4058_v52 = vld [vmem:[%s5048_s5 + $0x10] sm:$0xff]  }
 0x2b9   : > { %v3879_v55 = vpop.f32.mrf.mxu0 }
 0x2ba   : > { %v1803_v58 = vsel %vm1457_vm3, %v1802_v53, -inf  ;;  %v4060_v55 = vld [vmem:[%s5048_s5 + $0x48] sm:$0xff]  }
 0x2bb   : > { %1804 = vmax.xlane.f32.xlu1 %v1803_v58  ;;  %v1799_v61 = vpop.f32.mrf.mxu0  ;;  %v4063_v58 = vld [vmem:[%s5048_s5 + $0xa8] sm:$0xff]  }
 0x2bc   : > { %v4065_v61 = vld [vmem:[%s5048_s5 + $0xe0] sm:$0xff]  }
 0x2bd   : > { %v3880_v0 = vpop.f32.mrf.mxu0 }
 0x2be   : > { %v4066_v0 = vld [vmem:[%s5048_s5] sm:$0xff]  }
 0x32c   : > { %v1460_v1 = vpop.xlane.xlu0 %1459 }
 0x32d   : > { %v1461_v3 = vsub.f32 %v1456_v37, %v1460_v1  ;;  %v4067_v1 = vld [vmem:[%s5048_s5 + $0xa0] sm:$0xff]  }
 0x32f   : > { %v1462_v7 = vmul.f32 1.442695, %v1461_v3  ;;  %v4070_v3 = vld [vmem:[%s5048_s5 + $0xd8] sm:$0xff]  }
 0x331   : > { %4134 = vpow2.f32 %v1462_v7  ;;  %v4071_v7 = vld [vmem:[%s5048_s5 + $0x98] sm:$0xff]  }
 0x334   : > { %v1575_v10 = vpop.xlane.xlu0 %1574 }
 0x335   : > { %v1576_v11 = vsub.f32 %v1572_v25, %v1575_v10  ;;  %v4047_v25 = vld [vmem:[%s5048_s5 + $0x30] sm:$0xff]  }
 0x336   : > { %3730 = vmatpush3.bf16.msra.mxu0 %v4047_v25  ;;  %v4072_v10 = vld [vmem:[%s5048_s5 + $0xd0] sm:$0xff]  }
 0x337   : > { %v1577_v12 = vmul.f32 1.442695, %v1576_v11  ;;  %3731 = vmatprep.subr.bf16.mxu0 %v4048_v4  ;;  %v4073_v11 = vld [vmem:[%s5048_s5 + $0x90] sm:$0xff]  }
 0x339   : > { %4136 = vpow2.f32 %v1577_v12  ;;  %v4074_v12 = vld [vmem:[%s5048_s5 + $0xc8] sm:$0xff]  }
 0x33a   : > { %3732 = vmatpush3.bf16.msra.mxu0 %v4049_v26 }
 0x33b   : > { %3733 = vmatprep.subr.bf16.mxu0 %v4050_v43 }
 0x33c   : > { %v1690_v15 = vpop.xlane.xlu1 %1689 }
 0x33d   : > { %v1691_v16 = vsub.f32 %v1687_v46, %v1690_v15  ;;  %v4053_v46 = vld [vmem:[%s5048_s5 + $0xf8] sm:$0xff]   ;;  %v4077_v15 = vld [vmem:[%s5048_s5 + $0x80] sm:$0xff]  }
 0x33e   : > { %v4135_v5 = vpop.eup %4134  ;;  %3734 = vmatpush3.bf16.msra.mxu0 %v4051_v44 }
 0x33f   : > { %v1692_v18 = vmul.f32 1.442695, %v1691_v16  ;;  %v1464_v19 = vsel %vm1457_vm3, %v4135_v5, 0.0  ;;  %v1467_v9 = vpack.c.bf16 %v4135_v5, %v4135_v5  ;;  %3735 = vmatprep.subr.bf16.mxu0 %v4052_v45 }
 0x340   : > { %1465 = vadd.xlane.f32.xlu0 %v1464_v19 }
 0x341   : > { %4138 = vpow2.f32 %v1692_v18  ;;  %3848 = vmatmul.mubr.msk.bf16.vlgmr.msra.gmra.mxu1 %vm1457_vm3, %v1467_v9 }
 0x342   : > { %3858 = vmatpush3.bf16.msra.mxu1 %v3568_v17  ;;  %3859 = vmatprep.mubr.msk.bf16.mxu1 %vm4269_vm2, %v4268_v60 }
 0x343   : > { %3869 = vmatprep.subr.bf16.mxu1 %v4268_v60  ;;  %3736 = vmatpush3.bf16.msra.mxu0 %v4054_v47 }
 0x344   : > { %v1805_v23 = vpop.xlane.xlu1 %1804  ;;  %3737 = vmatprep.subr.bf16.mxu0 %v4056_v50 }
 0x345   : > { %v1806_v24 = vsub.f32 %v1802_v53, %v1805_v23  ;;  %v4059_v53 = vld [vmem:[%s5048_s5 + $0xb0] sm:$0xff]  }
 0x346   : > { %v4137_v27 = vpop.eup %4136 }
 0x347   : > { %v1807_v29 = vmul.f32 1.442695, %v1806_v24  ;;  %v1579_v31 = vsel %vm1457_vm3, %v4137_v27, 0.0  ;;  %v1582_v32 = vpack.c.bf16 %v4137_v27, %v4137_v27  ;;  %3738 = vmatpush3.bf16.msra.mxu0 %v4058_v52 }
 0x348   : > { %1580 = vadd.xlane.f32.xlu1 %v1579_v31  ;;  %3739 = vmatprep.subr.bf16.mxu0 %v4060_v55 }
 0x349   : > { %4140 = vpow2.f32 %v1807_v29  ;;  %3860 = vmatmul.mubr.msk.bf16.vlgmr.msra.gmra.mxu1 %vm1457_vm3, %v1582_v32 }
 0x34a   : > { %3870 = vmatpush3.bf16.msra.mxu1 %v3571_v28  ;;  %3871 = vmatprep.mubr.msk.bf16.mxu1 %vm4269_vm2, %v4268_v60 }
 0x34b   : > { %3881 = vmatprep.subr.bf16.mxu1 %v4268_v60  ;;  %3740 = vmatpush3.bf16.msra.mxu0 %v4062_v57 }
 0x34c   : > { %3741 = vmatprep.subr.bf16.mxu0 %v4064_v59 }
 0x34e   : > { %v4139_v35 = vpop.eup %4138 }
 0x34f   : > { %v1694_v36 = vsel %vm1457_vm3, %v4139_v35, 0.0  ;;  %v1697_v21 = vpack.c.bf16 %v4139_v35, %v4139_v35  ;;  %3742 = vmatpush3.bf16.msra.mxu0 %v4066_v0 }
 0x350   : > { %1695 = vadd.xlane.f32.xlu0 %v1694_v36 }
 0x351   : > { %3872 = vmatmul.mubr.msk.bf16.vlgmr.msra.gmra.mxu1 %vm1457_vm3, %v1697_v21 }
 0x352   : > { %3882 = vmatpush3.bf16.msra.mxu1 %v3574_v20  ;;  %3883 = vmatprep.mubr.msk.bf16.mxu1 %vm4269_vm2, %v4268_v60 }
 0x353   : > { %3749 = vmatprep.subr.bf16.mxu1 %v4053_v46 }
 0x356   : > { %v4141_v37 = vpop.eup %4140 }
 0x357   : > { %v1809_v38 = vsel %vm1457_vm3, %v4141_v37, 0.0  ;;  %v1812_v39 = vpack.c.bf16 %v4141_v37, %v4141_v37 }
 0x358   : > { %1810 = vadd.xlane.f32.xlu1 %v1809_v38 }
 0x359   : > { %3884 = vmatmul.mubr.msk.bf16.vlgmr.msra.gmra.mxu1 %vm1457_vm3, %v1812_v39 }
 0x35a   : > { %3750 = vmatpush3.bf16.msra.mxu1 %v4055_v48 }
 0x35b   : > { %3751 = vmatprep.subr.bf16.mxu1 %v4057_v51 }
 0x35e   : > { %3752 = vmatpush3.bf16.msra.mxu1 %v4059_v53 }
 0x35f   : > { %3753 = vmatprep.subr.bf16.mxu1 %v4061_v56 }
 0x362   : > { %3754 = vmatpush3.bf16.msra.mxu1 %v4063_v58  ;;  %v3576_v58 = vld [vmem:[%s5045_s2 + $0xc] ss:$0 sm:$0xff] }
 0x363   : > { %3755 = vmatprep.subr.bf16.mxu1 %v4065_v61 }
 0x366   : > { %3756 = vmatpush3.bf16.msra.mxu1 %v4067_v1 }
 0x367   : > { %3757 = vmatprep.subr.bf16.mxu1 %v4070_v3  ;;  %v1183_v3 = vunpack.c.l.bf16 %v4589_v54  ;;  %v4085_v54 = vld [vmem:[%s5049_s6 + $0x2c] ss:$16 sps:$4 sm:$0xff]  }
 0x36a   : > { %3758 = vmatpush3.bf16.msra.mxu1 %v4071_v7 }
 0x36b   : > { %3759 = vmatprep.subr.bf16.mxu1 %v4072_v10 }
 0x36e   : > { %3760 = vmatpush3.bf16.msra.mxu1 %v4073_v11 }
 0x36f   : > { %3761 = vmatprep.subr.bf16.mxu1 %v4074_v12 }
 0x372   : > { %3762 = vmatpush3.bf16.msra.mxu1 %v4075_v13 }
 0x373   : > { %3763 = vmatprep.subr.bf16.mxu1 %v4076_v14 }
 0x376   : > { %3764 = vmatpush3.bf16.msra.mxu1 %v4077_v15 }
 0x377   : > { %2383 = vmatprep.subr.bf16.mxu1 %v4085_v54 }
 0x3c9   : > { %v1466_v16 = vpop.xlane.xlu0 %1465 }
 0x3ca   : > { %4142 = vrcp.f32 %v1466_v16 }
 0x3d1   : > { %v1581_v5 = vpop.xlane.xlu1 %1580 }
 0x3d2   : > { %4144 = vrcp.f32 %v1581_v5 }
 0x3d7   : > { %v4143_v17 = vpop.eup %4142 }
 0x3d9   : > { %v1696_v18 = vpop.xlane.xlu0 %1695 }
 0x3da   : > { %4146 = vrcp.f32 %v1696_v18  ;;  %v4080_v18 = vld [vmem:[%s5049_s6 + $0x20] ss:$16 sps:$4 sm:$0xff]  }
 0x3df   : > { %v4145_v27 = vpop.eup %4144 }
 0x3e1   : > { %v1811_v28 = vpop.xlane.xlu1 %1810 }
 0x3e2   : > { %4148 = vrcp.f32 %v1811_v28 }
 0x3e7   : > { %v4147_v20 = vpop.eup %4146 }
 0x3ef   : > { %v4149_v4 = vpop.eup %4148 }
 0x401   : > { %v1511_v19 = vpop.f32.mrf.mxu1 }
 0x402   : > { %v1518_v9 = vmul.f32 %v4143_v17, %v1511_v19  ;;  %v4082_v17 = vld [vmem:[%s5049_s6 + $0x24] ss:$16 sps:$4 sm:$0xff]   ;;  %v4083_v19 = vld [vmem:[%s5049_s6 + $0x28] ss:$16 sps:$4 sm:$0xff]  }
 0x403   : > { %v3849_v8 = vpop.f32.mrf.mxu1  ;;  %2342 = vmatprep.subr.bf16.mxu0 %v4082_v17 }
 0x404   : > { %v1519_v22 = vpack.c.bf16 %v1518_v9, %v1518_v9  ;;  %v4088_v9 = vld [vmem:[%s5049_s6 + $0x4] ss:$16 sps:$4 sm:$0xff]   ;;  %v4086_v8 = vld [vmem:[%s5049_s6] ss:$16 sps:$4 sm:$0xff]  }
 0x405   : > { %v1514_v23 = vpop.f32.mrf.mxu1 }
 0x406   : > { %1520 = vst [vmem:[#allocation4] sm:$0xf] %v1519_v22  ;;  %v4089_v22 = vld [vmem:[%s5049_s6 + $0x8] ss:$16 sps:$4 sm:$0xff]   ;;  %v4091_v23 = vld [vmem:[%s5049_s6 + $0xc] ss:$16 sps:$4 sm:$0xff]  }
 0x407   : > { %v3850_v24 = vpop.f32.mrf.mxu1 }
 0x409   : > { %v1626_v29 = vpop.f32.mrf.mxu1 }
 0x40a   : > { %v1633_v31 = vmul.f32 %v4145_v27, %v1626_v29 }
 0x40b   : > { %v3861_v32 = vpop.f32.mrf.mxu1 }
 0x40c   : > { %v1634_v33 = vpack.c.bf16 %v1633_v31, %v1633_v31  ;;  %v3613_v31 = vld [vmem:[%s5045_s2 + $0xd] ss:$0 sm:$0xff] }
 0x40d   : > { %v1629_v34 = vpop.f32.mrf.mxu1 }
 0x40e   : > { %1635 = vst [vmem:[#allocation4 + $0x4] sm:$0xf] %v1634_v33  ;;  %v3614_v33 = vld [vmem:[%s5045_s2 + $0xe] ss:$0 sm:$0xff] }
 0x40f   : > { %v3862_v35 = vpop.f32.mrf.mxu1 }
 0x410   : > { %v2413_v35 = vld [vmem:[#allocation3] sm:$0xf] }
 0x411   : > { %v1741_v36 = vpop.f32.mrf.mxu1 }
 0x412   : > { %v1748_v21 = vmul.f32 %v4147_v20, %v1741_v36  ;;  %v2414_v20 = vld [vmem:[#allocation3 + $0x20] sm:$0xf] }
 0x413   : > { %v3873_v37 = vpop.f32.mrf.mxu1 }
 0x414   : > { %v1749_v38 = vpack.c.bf16 %v1748_v21, %v1748_v21  ;;  %v3625_v21 = vcombine.low %v2413_v35, %v2414_v20 }
 0x415   : > { %v1744_v39 = vpop.f32.mrf.mxu1  ;;  %v1866_v40 = vld [vmem:[#allocation4] sm:$0xff] }
 0x416   : > { %1750 = vst [vmem:[#allocation4 + $0x8] sm:$0xf] %v1749_v38  ;;  %v3578_v41 = vcombine.high %v1866_v40, %v1866_v40  ;;  %v3577_v42 = vcombine.low %v1866_v40, %v1866_v40  ;;  %v2200_v38 = vld [vmem:[%s5045_s2 + $0xf] sm:$0xf]  ;;  %v2528_v40 = vld [vmem:[#allocation3 + $0x4] sm:$0xf] }
 0x417   : > { %v3874_v25 = vpop.f32.mrf.mxu1  ;;  %v2270_v39 = vrot.slane %v2200_v38, %v1261_v63 }
 0x418   : > { %2112 = vmatprep.mubr.bf16.mxu0 %v3578_v41  ;;  %v2529_v41 = vld [vmem:[#allocation3 + $0x24] sm:$0xf] }
 0x419   : > { %v1856_v26 = vpop.f32.mrf.mxu1  ;;  %2113 = vmatmul.mubr.bf16.vlgmr.msra.gmra.mxu0 %v3577_v42 }
 0x41a   : > { %v1863_v43 = vmul.f32 %v4149_v4, %v1856_v26  ;;  %2362 = vmatprep.mubr.bf16.mxu0 %v4267_v49  ;;  %2343 = vmatpush1.bf16.msra.mxu0 %v4080_v18 }
 0x41b   : > { %v3885_v44 = vpop.f32.mrf.mxu1  ;;  %2344 = vmatprep.subr.bf16.mxu0 %v4088_v9 }
 0x41c   : > { %v1864_v45 = vpack.c.bf16 %v1863_v43, %v1863_v43  ;;  %v3628_v44 = vcombine.low %v2528_v40, %v2529_v41  ;;  %v2531_v40 = vld [vmem:[#allocation3 + $0x34] sm:$0xf] }
 0x41d   : > { %v1859_v46 = vpop.f32.mrf.mxu1 }
 0x41e   : > { %1865 = vst [vmem:[#allocation4 + $0xc] sm:$0xf] %v1864_v45  ;;  %2345 = vmatpush1.bf16.msra.mxu0 %v4086_v8  ;;  %v2274_v46 = vrot.slane %v2200_v38, %v1265_v2 }
 0x41f   : > { %v3886_v47 = vpop.f32.mrf.mxu1  ;;  %3887 = vmatprep.subr.bf16.mxu0 %v4268_v60 }
 0x425   : > { %v1867_v48 = vld [vmem:[#allocation4 + $0x8] sm:$0xff] }
 0x426   : > { %v3580_v50 = vcombine.high %v1867_v48, %v1867_v48  ;;  %v3579_v51 = vcombine.low %v1867_v48, %v1867_v48 }
 0x428   : > { %2152 = vmatprep.mubr.bf16.mxu1 %v3580_v50 }
 0x429   : > { %2153 = vmatmul.mubr.bf16.vlgmr.msra.gmra.mxu1 %v3579_v51 }
 0x42a   : > { %2403 = vmatprep.mubr.bf16.mxu1 %v4267_v49  ;;  %2384 = vmatpush1.bf16.msra.mxu1 %v4083_v19 }
 0x42b   : > { %2385 = vmatprep.subr.bf16.mxu1 %v4091_v23 }
 0x42e   : > { %2386 = vmatpush1.bf16.msra.mxu1 %v4089_v22 }
 0x42f   : > { %3893 = vmatprep.subr.bf16.mxu1 %v4268_v60 }
 0x4d9   : > { %v3743_v52 = vpop.f32.mrf.mxu0 }
 0x4db   : > { %v3744_v53 = vpop.f32.mrf.mxu0 }
 0x4dc   : > { %v3745_v57 = vadd.f32 %v3744_v53, %v3743_v52  ;;  %v2643_v52 = vld [vmem:[#allocation3 + $0x8] sm:$0xf] }
 0x4dd   : > { %v3746_v55 = vpop.f32.mrf.mxu0  ;;  %v2644_v53 = vld [vmem:[#allocation3 + $0x28] sm:$0xf] }
 0x4de   : > { %v2115_v0 = vadd.f32 %v3745_v57, %v3576_v58  ;;  %v3631_v55 = vcombine.low %v2643_v52, %v2644_v53  ;;  %v2758_v58 = vld [vmem:[#allocation3 + $0xc] sm:$0xf] }
 0x4df   : > { %v3747_v56 = vpop.f32.mrf.mxu0 }
 0x4e0   : > { %v2278_v56 = vrot.slane %v2200_v38, %v1269_v6 }
 0x4e9   : > { %v3765_v59 = vpop.f32.mrf.mxu1 }
 0x4eb   : > { %v3766_v61 = vpop.f32.mrf.mxu1 }
 0x4ec   : > { %v3767_v1 = vadd.f32 %v3766_v61, %v3765_v59  ;;  %v2759_v59 = vld [vmem:[#allocation3 + $0x2c] sm:$0xf] }
 0x4ed   : > { %v3768_v7 = vpop.f32.mrf.mxu1  ;;  %v3634_v61 = vcombine.low %v2758_v58, %v2759_v59 }
 0x4ee   : > { %v2155_v10 = vadd.f32 %v3767_v1, %v2115_v0  ;;  %v2282_v1 = vrot.slane %v2200_v38, %v1273_v30 }
 0x4ef   : > { %v3769_v11 = vpop.f32.mrf.mxu1 }
 0x4f0   : > { %v2160_v12 = vadd.f32 %v2155_v10, %v1183_v3 }
 0x4f2   : > { %v2163_v49 = vsel %vm1319_vm1, %v2160_v12, 0.0 }
 0x4f3   : > { %2164 = vadd.xlane.f32.xlu0 %v2163_v49 }
 0x57c   : > { %v2165_v13 = vpop.xlane.xlu0 %2164 }
 0x57d   : > { %v2167_v14 = vmul.f32 0.03125, %v2165_v13 }
 0x57f   : > { %v2168_v15 = vsub.f32 %v2160_v12, %v2167_v14 }
 0x581   : > { %v2169_v16 = vmul.f32 %v2168_v15, %v2168_v15 }
 0x583   : > { %v2170_v5 = vsel %vm1319_vm1, %v2169_v16, 0.0 }
 0x584   : > { %2171 = vadd.xlane.f32.xlu1 %v2170_v5 }
 0x60d   : > { %v2172_v24 = vpop.xlane.xlu1 %2171 }
 0x60e   : > { %v2173_v27 = vmul.f32 0.03125, %v2172_v24 }
 0x610   : > { %v2174_v28 = vadd.f32 1e-05, %v2173_v27  ;;  %v2415_v27 = vld [vmem:[#allocation3 + $0x10] sm:$0xf] }
 0x612   : > { %4150 = vrsqrt.f32 %v2174_v28  ;;  %v2416_v28 = vld [vmem:[#allocation3 + $0x30] sm:$0xf] }
 0x61f   : > { %v4151_v29 = vpop.eup %4150 }
 0x620   : > { %v2176_v32 = vmul.f32 %v4151_v29, %v2168_v15 }
 0x622   : > { %v2183_v34 = vmul.f32 %v3613_v31, %v2176_v32  ;;  %v3626_v31 = vcombine.low %v2415_v27, %v2416_v28  ;;  %v4115_v27 = vld [vmem:[%s5051_s8 + $0xa0] sm:$0xff]   ;;  %v4118_v28 = vld [vmem:[%s5051_s8 + $0xd8] sm:$0xff]  }
 0x624   : > { %v4790_v36 = vadd.f32 %v3614_v33, %v2183_v34 }
 0x626   : > { %v2191_v37 = vpack.c.bf16 %v4790_v36, %v4790_v36 }
 0x628   : > { %3623 = vmatmul.mubr.msk.bf16.vlgmr.msra.gmra.mxu0 %vm1319_vm1, %v2191_v37  ;;  %3624 = vmatmul.mubr.msk.bf16.vlgmr.msra.gmra.mxu1 %vm1319_vm1, %v2191_v37 }
 0x629   : > { %3888 = vmatpush3.bf16.xpose.msra.mxu0 %v3625_v21  ;;  %3889 = vmatprep.mubr.msk.bf16.mxu0 %vm4269_vm2, %v4268_v60 }
 0x62a   : > { %3899 = vmatprep.subr.bf16.mxu0 %v4268_v60  ;;  %3895 = vmatprep.mubr.msk.bf16.mxu1 %vm4269_vm2, %v4268_v60 }
 0x62b   : > { %3894 = vmatpush3.bf16.msra.mxu1 %v3626_v31  ;;  %v4120_v31 = vld [vmem:[%s5051_s8 + $0xd0] sm:$0xff]  }
 0x62c   : > { %3905 = vmatprep.subr.bf16.mxu1 %v4268_v60 }
 0x6e8   : > { %v2364_v42 = vpop.f32.mrf.mxu0  ;;  %v2405_v25 = vpop.f32.mrf.mxu1 }
 0x6e9   : > { %v2365_v4 = vadd.f32 %v2364_v42, %v2270_v39  ;;  %v2406_v2 = vadd.f32 %v2405_v25, %v2278_v56  ;;  %v2530_v39 = vld [vmem:[#allocation3 + $0x14] sm:$0xf]  ;;  %v2761_v56 = vld [vmem:[#allocation3 + $0x3c] sm:$0xf] }
 0x6ea   : > { %v2366_v26 = vpop.f32.mrf.mxu0  ;;  %v2407_v43 = vpop.f32.mrf.mxu1 }
 0x6eb   : > { %v2412_v45 = vpack.c.bf16 %v2365_v4, %v2365_v4  ;;  %v2367_v63 = vadd.f32 %v2366_v26, %v2274_v46  ;;  %v2642_v0 = vpack.c.bf16 %v2406_v2, %v2406_v2  ;;  %v2408_v6 = vadd.f32 %v2407_v43, %v2282_v1  ;;  %v2646_v46 = vld [vmem:[#allocation3 + $0x38] sm:$0xf] }
 0x6ec   : > { %v2368_v47 = vpop.f32.mrf.mxu0  ;;  %v2409_v48 = vpop.f32.mrf.mxu1  ;;  %v3629_v4 = vcombine.low %v2530_v39, %v2531_v40 }
 0x6ed   : > { %3890 = vmatmul.mubr.bf16.vlgmr.msra.gmra.mxu0 %v2412_v45  ;;  %v2527_v57 = vpack.c.bf16 %v2367_v63, %v2367_v63  ;;  %v2757_v3 = vpack.c.bf16 %v2408_v6, %v2408_v6  ;;  %v2645_v45 = vld [vmem:[#allocation3 + $0x18] sm:$0xf] }
 0x6ee   : > { %3900 = vmatpush3.bf16.xpose.msra.mxu0 %v3628_v44  ;;  %v2369_v50 = vpop.f32.mrf.mxu0  ;;  %v2410_v51 = vpop.f32.mrf.mxu1  ;;  %3901 = vmatprep.mubr.msk.bf16.mxu0 %vm4269_vm2, %v4268_v60  ;;  %v4092_v6 = vld [vmem:[%s5051_s8 + $0x78] sm:$0xff]  }
 0x6ef   : > { %3911 = vmatprep.subr.bf16.mxu0 %v4268_v60  ;;  %v3632_v51 = vcombine.low %v2645_v45, %v2646_v46 }
 0x6f5   : > { %3902 = vmatmul.mubr.bf16.vlgmr.msra.gmra.mxu0 %v2527_v57 }
 0x6f6   : > { %3912 = vmatpush3.bf16.xpose.msra.mxu0 %v3631_v55  ;;  %3913 = vmatprep.mubr.msk.bf16.mxu0 %vm4269_vm2, %v4268_v60  ;;  %v2760_v55 = vld [vmem:[#allocation3 + $0x1c] sm:$0xf] }
 0x6f7   : > { %3923 = vmatprep.subr.bf16.mxu0 %v4268_v60  ;;  %v3635_v2 = vcombine.low %v2760_v55, %v2761_v56 }
 0x6fd   : > { %3914 = vmatmul.mubr.bf16.vlgmr.msra.gmra.mxu0 %v2642_v0 }
 0x6fe   : > { %3924 = vmatpush3.bf16.xpose.msra.mxu0 %v3634_v61  ;;  %3925 = vmatprep.mubr.msk.bf16.mxu0 %vm4269_vm2, %v4268_v60 }
 0x6ff   : > { %3787 = vmatprep.subr.bf16.mxu0 %v4092_v6 }
 0x705   : > { %3926 = vmatmul.mubr.bf16.vlgmr.msra.gmra.mxu0 %v2757_v3  ;;  %v4093_v3 = vld [vmem:[%s5051_s8 + $0x38] sm:$0xff]  }
 0x706   : > { %3788 = vmatpush3.bf16.msra.mxu0 %v4093_v3 }
 0x7ad   : > { %v2457_v7 = vpop.f32.mrf.mxu0 }
 0x7ae   : > { %v2463_v10 = vmul.f32 0.35355338, %v2457_v7  ;;  %v4094_v7 = vld [vmem:[%s5051_s8 + $0x70] sm:$0xff]  }
 0x7af   : > { %v3891_v11 = vpop.f32.mrf.mxu0  ;;  %3789 = vmatprep.subr.bf16.mxu0 %v4094_v7 }
 0x7b0   : > { %v2464_v12 = vsel %vm1457_vm3, %v2463_v10, -inf  ;;  %v4096_v11 = vld [vmem:[%s5051_s8 + $0x68] sm:$0xff]  }
 0x7b1   : > { %2465 = vmax.xlane.f32.xlu0 %v2464_v12  ;;  %v2460_v49 = vpop.f32.mrf.mxu0  ;;  %v4097_v12 = vld [vmem:[%s5051_s8 + $0x28] sm:$0xff]  }
 0x7b2   : > { %v4098_v49 = vld [vmem:[%s5051_s8 + $0x60] sm:$0xff]  }
 0x7b3   : > { %v3892_v13 = vpop.f32.mrf.mxu0 }
 0x7b4   : > { %v4099_v13 = vld [vmem:[%s5051_s8 + $0x20] sm:$0xff]  }
 0x7b5   : > { %v2572_v14 = vpop.f32.mrf.mxu0 }
 0x7b6   : > { %v2578_v15 = vmul.f32 0.35355338, %v2572_v14  ;;  %v4100_v14 = vld [vmem:[%s5051_s8 + $0x58] sm:$0xff]  }
 0x7b7   : > { %v3903_v62 = vpop.f32.mrf.mxu0 }
 0x7b8   : > { %v2579_v30 = vsel %vm1457_vm3, %v2578_v15, -inf  ;;  %v4102_v62 = vld [vmem:[%s5051_s8 + $0x18] sm:$0xff]  }
 0x7b9   : > { %2580 = vmax.xlane.f32.xlu1 %v2579_v30  ;;  %v2575_v16 = vpop.f32.mrf.mxu0  ;;  %v4103_v30 = vld [vmem:[%s5051_s8 + $0xb8] sm:$0xff]  }
 0x7ba   : > { %v4104_v16 = vld [vmem:[%s5051_s8 + $0x50] sm:$0xff]  }
 0x7bb   : > { %v3904_v5 = vpop.f32.mrf.mxu0 }
 0x7bc   : > { %v4105_v5 = vld [vmem:[%s5051_s8 + $0xf0] sm:$0xff]  }
 0x7bd   : > { %v2687_v17 = vpop.f32.mrf.mxu0 }
 0x7be   : > { %v2693_v54 = vmul.f32 0.35355338, %v2687_v17  ;;  %v4106_v17 = vld [vmem:[%s5051_s8 + $0x10] sm:$0xff]  }
 0x7bf   : > { %v3915_v18 = vpop.f32.mrf.mxu0 }
 0x7c0   : > { %v2694_v19 = vsel %vm1457_vm3, %v2693_v54, -inf  ;;  %v4108_v18 = vld [vmem:[%s5051_s8 + $0x48] sm:$0xff]  }
 0x7c1   : > { %2695 = vmax.xlane.f32.xlu0 %v2694_v19  ;;  %v2690_v9 = vpop.f32.mrf.mxu0  ;;  %v4109_v19 = vld [vmem:[%s5051_s8 + $0xe8] sm:$0xff]  }
 0x7c2   : > { %v4110_v9 = vld [vmem:[%s5051_s8 + $0x8] sm:$0xff]  }
 0x7c3   : > { %v3916_v8 = vpop.f32.mrf.mxu0 }
 0x7c4   : > { %v4111_v8 = vld [vmem:[%s5051_s8 + $0xa8] sm:$0xff]  }
 0x7c5   : > { %v2802_v22 = vpop.f32.mrf.mxu0 }
 0x7c6   : > { %v2808_v23 = vmul.f32 0.35355338, %v2802_v22  ;;  %v4112_v22 = vld [vmem:[%s5051_s8 + $0x40] sm:$0xff]  }
 0x7c7   : > { %v3927_v24 = vpop.f32.mrf.mxu0 }
 0x7c8   : > { %v2809_v29 = vsel %vm1457_vm3, %v2808_v23, -inf  ;;  %v4114_v24 = vld [vmem:[%s5051_s8] sm:$0xff]  }
 0x7c9   : > { %2810 = vmax.xlane.f32.xlu1 %v2809_v29  ;;  %v2805_v32 = vpop.f32.mrf.mxu0  ;;  %v4119_v29 = vld [vmem:[%s5051_s8 + $0x98] sm:$0xff]  }
 0x7ca   : > { %v4121_v32 = vld [vmem:[%s5051_s8 + $0x90] sm:$0xff]  }
 0x7cb   : > { %v3928_v33 = vpop.f32.mrf.mxu0 }
 0x7cc   : > { %v4122_v33 = vld [vmem:[%s5051_s8 + $0xc8] sm:$0xff]  }
 0x83a   : > { %v2466_v34 = vpop.xlane.xlu0 %2465 }
 0x83b   : > { %v2467_v35 = vsub.f32 %v2463_v10, %v2466_v34  ;;  %v4095_v10 = vld [vmem:[%s5051_s8 + $0x30] sm:$0xff]   ;;  %v4123_v34 = vld [vmem:[%s5051_s8 + $0x88] sm:$0xff]  }
 0x83c   : > { %3790 = vmatpush3.bf16.msra.mxu0 %v4095_v10 }
 0x83d   : > { %v2468_v20 = vmul.f32 1.442695, %v2467_v35  ;;  %3791 = vmatprep.subr.bf16.mxu0 %v4096_v11  ;;  %v4124_v35 = vld [vmem:[%s5051_s8 + $0xc0] sm:$0xff]  }
 0x83f   : > { %4152 = vpow2.f32 %v2468_v20  ;;  %v4125_v20 = vld [vmem:[%s5051_s8 + $0x80] sm:$0xff]  }
 0x840   : > { %3792 = vmatpush3.bf16.msra.mxu0 %v4097_v12 }
 0x841   : > { %3793 = vmatprep.subr.bf16.mxu0 %v4098_v49 }
 0x842   : > { %v2581_v21 = vpop.xlane.xlu1 %2580 }
 0x843   : > { %v2582_v37 = vsub.f32 %v2578_v15, %v2581_v21  ;;  %v4101_v15 = vld [vmem:[%s5051_s8 + $0xf8] sm:$0xff]  }
 0x844   : > { %3794 = vmatpush3.bf16.msra.mxu0 %v4099_v13 }
 0x845   : > { %v2583_v38 = vmul.f32 1.442695, %v2582_v37  ;;  %3795 = vmatprep.subr.bf16.mxu0 %v4100_v14 }
 0x847   : > { %4154 = vpow2.f32 %v2583_v38 }
 0x848   : > { %3796 = vmatpush3.bf16.msra.mxu0 %v4102_v62 }
 0x849   : > { %3797 = vmatprep.subr.bf16.mxu0 %v4104_v16 }
 0x84a   : > { %v2696_v41 = vpop.xlane.xlu0 %2695 }
 0x84b   : > { %v2697_v42 = vsub.f32 %v2693_v54, %v2696_v41  ;;  %v4107_v54 = vld [vmem:[%s5051_s8 + $0xb0] sm:$0xff]  }
 0x84c   : > { %v4153_v25 = vpop.eup %4152  ;;  %3798 = vmatpush3.bf16.msra.mxu0 %v4106_v17 }
 0x84d   : > { %v2698_v26 = vmul.f32 1.442695, %v2697_v42  ;;  %v2470_v43 = vsel %vm1457_vm3, %v4153_v25, 0.0  ;;  %v2473_v44 = vpack.c.bf16 %v4153_v25, %v4153_v25  ;;  %3799 = vmatprep.subr.bf16.mxu0 %v4108_v18 }
 0x84e   : > { %2471 = vadd.xlane.f32.xlu0 %v2470_v43 }
 0x84f   : > { %4156 = vpow2.f32 %v2698_v26  ;;  %3896 = vmatmul.mubr.msk.bf16.vlgmr.msra.gmra.mxu1 %vm1457_vm3, %v2473_v44 }
 0x850   : > { %3906 = vmatpush3.bf16.msra.mxu1 %v3629_v4  ;;  %3907 = vmatprep.mubr.msk.bf16.mxu1 %vm4269_vm2, %v4268_v60 }
 0x851   : > { %3917 = vmatprep.subr.bf16.mxu1 %v4268_v60  ;;  %3800 = vmatpush3.bf16.msra.mxu0 %v4110_v9 }
 0x852   : > { %v2811_v47 = vpop.xlane.xlu1 %2810  ;;  %3801 = vmatprep.subr.bf16.mxu0 %v4112_v22 }
 0x853   : > { %v2812_v48 = vsub.f32 %v2808_v23, %v2811_v47  ;;  %v4113_v23 = vld [vmem:[%s5051_s8 + $0xe0] sm:$0xff]  }
 0x854   : > { %v4155_v50 = vpop.eup %4154 }
 0x855   : > { %v2813_v63 = vmul.f32 1.442695, %v2812_v48  ;;  %v2585_v52 = vsel %vm1457_vm3, %v4155_v50, 0.0  ;;  %v2588_v53 = vpack.c.bf16 %v4155_v50, %v4155_v50  ;;  %3802 = vmatpush3.bf16.msra.mxu0 %v4114_v24 }
 0x856   : > { %2586 = vadd.xlane.f32.xlu1 %v2585_v52  ;;  %3935 = vmatprep.subr.bf16.mxu0 %v4268_v60 }
 0x857   : > { %4158 = vpow2.f32 %v2813_v63  ;;  %3908 = vmatmul.mubr.msk.bf16.vlgmr.msra.gmra.mxu1 %vm1457_vm3, %v2588_v53 }
 0x858   : > { %3918 = vmatpush3.bf16.msra.mxu1 %v3632_v51  ;;  %3919 = vmatprep.mubr.msk.bf16.mxu1 %vm4269_vm2, %v4268_v60 }
 0x859   : > { %3929 = vmatprep.subr.bf16.mxu1 %v4268_v60 }
 0x85c   : > { %v4157_v57 = vpop.eup %4156 }
 0x85d   : > { %v2700_v58 = vsel %vm1457_vm3, %v4157_v57, 0.0  ;;  %v2703_v59 = vpack.c.bf16 %v4157_v57, %v4157_v57 }
 0x85e   : > { %2701 = vadd.xlane.f32.xlu0 %v2700_v58 }
 0x85f   : > { %3920 = vmatmul.mubr.msk.bf16.vlgmr.msra.gmra.mxu1 %vm1457_vm3, %v2703_v59 }
 0x860   : > { %3930 = vmatpush3.bf16.msra.mxu1 %v3635_v2  ;;  %3931 = vmatprep.mubr.msk.bf16.mxu1 %vm4269_vm2, %v4268_v60 }
 0x861   : > { %3809 = vmatprep.subr.bf16.mxu1 %v4101_v15 }
 0x864   : > { %v4159_v61 = vpop.eup %4158 }
 0x865   : > { %v2815_v0 = vsel %vm1457_vm3, %v4159_v61, 0.0  ;;  %v2818_v1 = vpack.c.bf16 %v4159_v61, %v4159_v61 }
 0x866   : > { %2816 = vadd.xlane.f32.xlu1 %v2815_v0 }
 0x867   : > { %3932 = vmatmul.mubr.msk.bf16.vlgmr.msra.gmra.mxu1 %vm1457_vm3, %v2818_v1 }
 0x868   : > { %3810 = vmatpush3.bf16.msra.mxu1 %v4103_v30 }
 0x869   : > { %3811 = vmatprep.subr.bf16.mxu1 %v4105_v5  ;;  %v3637_v5 = vld [vmem:[%s5045_s2 + $0x1b] ss:$0 sm:$0xff] }
 0x86c   : > { %3812 = vmatpush3.bf16.msra.mxu1 %v4107_v54 }
 0x86d   : > { %3813 = vmatprep.subr.bf16.mxu1 %v4109_v19 }
 0x870   : > { %3814 = vmatpush3.bf16.msra.mxu1 %v4111_v8 }
 0x871   : > { %3815 = vmatprep.subr.bf16.mxu1 %v4113_v23 }
 0x874   : > { %3816 = vmatpush3.bf16.msra.mxu1 %v4115_v27 }
 0x875   : > { %3817 = vmatprep.subr.bf16.mxu1 %v4118_v28 }
 0x878   : > { %3818 = vmatpush3.bf16.msra.mxu1 %v4119_v29 }
 0x879   : > { %3819 = vmatprep.subr.bf16.mxu1 %v4120_v31 }
 0x87c   : > { %3820 = vmatpush3.bf16.msra.mxu1 %v4121_v32 }
 0x87d   : > { %3821 = vmatprep.subr.bf16.mxu1 %v4122_v33  ;;  %v4128_v33 = vld [vmem:[%s5052_s9 + $0x8] sm:$0xff]  }
 0x880   : > { %3822 = vmatpush3.bf16.msra.mxu1 %v4123_v34  ;;  %v4129_v34 = vld [vmem:[%s5052_s9] sm:$0xff]  }
 0x881   : > { %3823 = vmatprep.subr.bf16.mxu1 %v4124_v35  ;;  %v4131_v35 = vld [vmem:[%s5053_s10 + $0x10] sm:$0xff]  }
 0x884   : > { %3824 = vmatpush3.bf16.msra.mxu1 %v4125_v20 }
 0x885   : > { %3943 = vmatprep.subr.bf16.mxu1 %v4268_v60 }
 0x8d7   : > { %v2472_v21 = vpop.xlane.xlu0 %2471 }
 0x8d8   : > { %4160 = vrcp.f32 %v2472_v21 }
 0x8df   : > { %v2587_v37 = vpop.xlane.xlu1 %2586 }
 0x8e0   : > { %4162 = vrcp.f32 %v2587_v37 }
 0x8e5   : > { %v4161_v38 = vpop.eup %4160 }
 0x8e7   : > { %v2702_v39 = vpop.xlane.xlu0 %2701 }
 0x8e8   : > { %4164 = vrcp.f32 %v2702_v39  ;;  %v3674_v39 = vld [vmem:[%s5045_s2 + $0x1c] ss:$0 sm:$0xff] }
 0x8ed   : > { %v4163_v43 = vpop.eup %4162 }
 0x8ef   : > { %v2817_v44 = vpop.xlane.xlu1 %2816 }
 0x8f0   : > { %4166 = vrcp.f32 %v2817_v44  ;;  %v3676_v44 = vld [vmem:[%s5045_s2 + $0x1e] ss:$0 sm:$0xff] }
 0x8f5   : > { %v4165_v63 = vpop.eup %4164 }
 0x8fd   : > { %v4167_v0 = vpop.eup %4166 }
 0x90f   : > { %v2517_v40 = vpop.f32.mrf.mxu1 }
 0x910   : > { %v2524_v41 = vmul.f32 %v4161_v38, %v2517_v40 }
 0x911   : > { %v3897_v42 = vpop.f32.mrf.mxu1 }
 0x912   : > { %v2525_v25 = vpack.c.bf16 %v2524_v41, %v2524_v41  ;;  %v3675_v41 = vld [vmem:[%s5045_s2 + $0x1d] ss:$0 sm:$0xff] }
 0x913   : > { %v2520_v4 = vpop.f32.mrf.mxu1 }
 0x914   : > { %2526 = vst [vmem:[#allocation4] sm:$0xf] %v2525_v25 }
 0x915   : > { %v3898_v26 = vpop.f32.mrf.mxu1 }
 0x916   : > { %v4132_v26 = vld [vmem:[%s5053_s10 + $0x8] sm:$0xff]  }
 0x917   : > { %v2632_v45 = vpop.f32.mrf.mxu1 }
 0x918   : > { %v2639_v46 = vmul.f32 %v4163_v43, %v2632_v45  ;;  %v4133_v43 = vld [vmem:[%s5053_s10] sm:$0xff]  }
 0x919   : > { %v3909_v47 = vpop.f32.mrf.mxu1 }
 0x91a   : > { %v2640_v48 = vpack.c.bf16 %v2639_v46, %v2639_v46 }
 0x91b   : > { %v2635_v50 = vpop.f32.mrf.mxu1 }
 0x91c   : > { %2641 = vst [vmem:[#allocation4 + $0x4] sm:$0xf] %v2640_v48 }
 0x91d   : > { %v3910_v51 = vpop.f32.mrf.mxu1 }
 0x91f   : > { %v2747_v52 = vpop.f32.mrf.mxu1 }
 0x920   : > { %v2754_v53 = vmul.f32 %v4165_v63, %v2747_v52 }
 0x921   : > { %v3921_v55 = vpop.f32.mrf.mxu1 }
 0x922   : > { %v2755_v56 = vpack.c.bf16 %v2754_v53, %v2754_v53 }
 0x923   : > { %v2750_v57 = vpop.f32.mrf.mxu1  ;;  %v2872_v2 = vld [vmem:[#allocation4] sm:$0xff] }
 0x924   : > { %2756 = vst [vmem:[#allocation4 + $0x8] sm:$0xf] %v2755_v56  ;;  %v3638_v58 = vcombine.low %v2872_v2, %v2872_v2  ;;  %v3639_v59 = vcombine.high %v2872_v2, %v2872_v2 }
 0x925   : > { %v3922_v61 = vpop.f32.mrf.mxu1 }
 0x926   : > { %3118 = vmatprep.mubr.bf16.mxu0 %v3639_v59 }
 0x927   : > { %v2862_v1 = vpop.f32.mrf.mxu1  ;;  %3119 = vmatmul.mubr.bf16.vlgmr.msra.gmra.mxu0 %v3638_v58 }
 0x928   : > { %v2869_v6 = vmul.f32 %v4167_v0, %v2862_v1  ;;  %3939 = vmatprep.mubr.msk.bf16.mxu0 %vm4269_vm2, %v4268_v60  ;;  %3936 = vmatpush3.bf16.msra.mxu0 %v4128_v33 }
 0x929   : > { %v3933_v3 = vpop.f32.mrf.mxu1  ;;  %3937 = vmatprep.subr.bf16.mxu0 %v4268_v60 }
 0x92a   : > { %v2870_v7 = vpack.c.bf16 %v2869_v6, %v2869_v6 }
 0x92b   : > { %v2865_v10 = vpop.f32.mrf.mxu1 }
 0x92c   : > { %2871 = vst [vmem:[#allocation4 + $0xc] sm:$0xf] %v2870_v7  ;;  %3938 = vmatpush3.bf16.msra.mxu0 %v4129_v34 }
 0x92d   : > { %v3934_v11 = vpop.f32.mrf.mxu1 }
 0x933   : > { %v2873_v12 = vld [vmem:[#allocation4 + $0x8] sm:$0xff] }
 0x934   : > { %v3640_v49 = vcombine.low %v2873_v12, %v2873_v12  ;;  %v3641_v13 = vcombine.high %v2873_v12, %v2873_v12  ;;  %v3686_v12 = vld [vmem:[%s5045_s2 + $0x20] ss:$0 sm:$0xff] }
 0x936   : > { %3158 = vmatprep.mubr.bf16.mxu1 %v3641_v13  ;;  %v3687_v13 = vld [vmem:[%s5045_s2 + $0x21] ss:$0 sm:$0xff] }
 0x937   : > { %3159 = vmatmul.mubr.bf16.vlgmr.msra.gmra.mxu1 %v3640_v49 }
 0x938   : > { %3951 = vmatprep.mubr.msk.bf16.mxu1 %vm4269_vm2, %v4268_v60 }
 0x9e7   : > { %v3803_v14 = vpop.f32.mrf.mxu0 }
 0x9e9   : > { %v3804_v15 = vpop.f32.mrf.mxu0 }
 0x9ea   : > { %v3805_v16 = vadd.f32 %v3804_v15, %v3803_v14 }
 0x9eb   : > { %v3806_v62 = vpop.f32.mrf.mxu0 }
 0x9ec   : > { %v3121_v18 = vadd.f32 %v3805_v16, %v3637_v5 }
 0x9ed   : > { %v3807_v30 = vpop.f32.mrf.mxu0 }
 0x9f7   : > { %v3825_v17 = vpop.f32.mrf.mxu1 }
 0x9f9   : > { %v3826_v54 = vpop.f32.mrf.mxu1 }
 0x9fa   : > { %v3827_v19 = vadd.f32 %v3826_v54, %v3825_v17 }
 0x9fb   : > { %v3828_v9 = vpop.f32.mrf.mxu1 }
 0x9fc   : > { %v3161_v8 = vadd.f32 %v3827_v19, %v3121_v18 }
 0x9fd   : > { %v3829_v22 = vpop.f32.mrf.mxu1 }
 0x9fe   : > { %v3166_v23 = vadd.f32 %v3161_v8, %v4790_v36  ;;  %v4130_v36 = vld [vmem:[%s5053_s10 + $0x18] sm:$0xff]  }
 0x9ff   : > { %3944 = vmatpush3.bf16.msra.mxu1 %v4130_v36 }
 0xa00   : > { %v3169_v24 = vsel %vm1319_vm1, %v3166_v23, 0.0  ;;  %3945 = vmatprep.subr.bf16.mxu1 %v4268_v60 }
 0xa01   : > { %3170 = vadd.xlane.f32.xlu0 %v3169_v24 }
 0xa03   : > { %3946 = vmatpush3.bf16.msra.mxu1 %v4131_v35 }
 0xa04   : > { %3947 = vmatprep.subr.bf16.mxu1 %v4268_v60 }
 0xa07   : > { %3948 = vmatpush3.bf16.msra.mxu1 %v4132_v26 }
 0xa08   : > { %3949 = vmatprep.subr.bf16.mxu1 %v4268_v60  ;;  %v3680_v60 = vld [vmem:[%s5045_s2 + $0x1f] ss:$0 sm:$0xff] }
 0xa0b   : > { %3950 = vmatpush3.bf16.msra.mxu1 %v4133_v43 }
 0xa8a   : > { %v3171_v27 = vpop.xlane.xlu0 %3170 }
 0xa8b   : > { %v3172_v28 = vmul.f32 0.03125, %v3171_v27 }
 0xa8d   : > { %v3173_v29 = vsub.f32 %v3166_v23, %v3172_v28 }
 0xa8f   : > { %v3174_v31 = vmul.f32 %v3173_v29, %v3173_v29 }
 0xa91   : > { %v3175_v32 = vsel %vm1319_vm1, %v3174_v31, 0.0 }
 0xa92   : > { %3176 = vadd.xlane.f32.xlu1 %v3175_v32 }
 0xb1b   : > { %v3177_v20 = vpop.xlane.xlu1 %3176 }
 0xb1c   : > { %v3178_v21 = vmul.f32 0.03125, %v3177_v20 }
 0xb1e   : > { %v3179_v37 = vadd.f32 1e-05, %v3178_v21 }
 0xb20   : > { %4168 = vrsqrt.f32 %v3179_v37 }
 0xb2d   : > { %v4169_v38 = vpop.eup %4168 }
 0xb2e   : > { %v3181_v40 = vmul.f32 %v4169_v38, %v3173_v29 }
 0xb30   : > { %v3188_v42 = vmul.f32 %v3674_v39, %v3181_v40 }
 0xb32   : > { %v3195_v25 = vadd.f32 %v3675_v41, %v3188_v42 }
 0xb34   : > { %v3196_v4 = vpack.c.bf16 %v3195_v25, %v3195_v25 }
 0xb36   : > { %3940 = vmatmul.mubr.msk.bf16.vlgmr.msra.gmra.mxu0 %vm1319_vm1, %v3196_v4 }
 0xbf6   : > { %v3257_v45 = vpop.f32.mrf.mxu0 }
 0xbf7   : > { %v3258_v46 = vadd.f32 %v3676_v44, %v3257_v45 }
 0xbf8   : > { %v3941_v47 = vpop.f32.mrf.mxu0 }
 0xbf9   : > { %v3263_v48 = vmax.f32 %v3258_v46, 0.0 }
 0xbfa   : > { %v3260_v50 = vpop.f32.mrf.mxu0 }
 0xbfb   : > { %v3264_v51 = vpack.c.bf16 %v3263_v48, %v3263_v48 }
 0xbfc   : > { %v3942_v63 = vpop.f32.mrf.mxu0 }
 0xbfd   : > { %3952 = vmatmul.mubr.msk.bf16.vlgmr.msra.gmra.mxu1 %vm3304_vm4, %v3264_v51 }
 0xcbd   : > { %v3342_v52 = vpop.f32.mrf.mxu1 }
 0xcbe   : > { %v3343_v53 = vadd.f32 %v3680_v60, %v3342_v52 }
 0xcbf   : > { %v3953_v55 = vpop.f32.mrf.mxu1 }
 0xcc0   : > { %v3348_v56 = vadd.f32 %v3343_v53, %v3195_v25 }
 0xcc1   : > { %v3345_v57 = vpop.f32.mrf.mxu1 }
 0xcc2   : > { %v3351_v2 = vsel %vm1319_vm1, %v3348_v56, 0.0 }
 0xcc3   : > { %3352 = vadd.xlane.f32.xlu0 %v3351_v2  ;;  %v3954_v58 = vpop.f32.mrf.mxu1 }
 0xd4c   : > { %v3353_v59 = vpop.xlane.xlu0 %3352 }
 0xd4d   : > { %v3354_v61 = vmul.f32 0.03125, %v3353_v59 }
 0xd4f   : > { %v3355_v0 = vsub.f32 %v3348_v56, %v3354_v61 }
 0xd51   : > { %v3356_v1 = vmul.f32 %v3355_v0, %v3355_v0 }
 0xd53   : > { %v3357_v6 = vsel %vm1319_vm1, %v3356_v1, 0.0 }
 0xd54   : > { %3358 = vadd.xlane.f32.xlu1 %v3357_v6 }
 0xddd   : > { %v3359_v3 = vpop.xlane.xlu1 %3358 }
 0xdde   : > { %v3360_v7 = vmul.f32 0.03125, %v3359_v3 }
 0xde0   : > { %v3361_v10 = vadd.f32 1e-05, %v3360_v7 }
 0xde2   : > { %4170 = vrsqrt.f32 %v3361_v10 }
 0xdef   : > { %v4171_v11 = vpop.eup %4170 }
 0xdf0   : > { %v3363_v49 = vmul.f32 %v4171_v11, %v3355_v0 }
 0xdf2   : > { %v3370_v14 = vmul.f32 %v3686_v12, %v3363_v49 }
 0xdf4   : > { %v3377_v15 = vadd.f32 %v3687_v13, %v3370_v14 }
 0xdf6   : > { %v3378_v62 = vpack.c.bf16 %v3377_v15, %v3377_v15 }
 0xdf8   : > { %3380 = vst.msk [vmem:[%s5072_s14] sm:$0xf] %vm3379_vm5, %v3378_v62 }
 0xdf9   : > { %4185 = shalt.err (!%p4182_p7)
}
 0xdfa   : > { %s4186_s28 = scalar_lea.hbm %s3395_s25, 64  ;;  %s4190_s13 = scalar_lea.hbm %s5054_s11, 256 }
 0xdfb   : > { %p4187_p9 = scmp.ne.s32.totalorder %s3395_s25, %s4186_s28  ;;  %p4191_p12 = scmp.lt.s32.totalorder %s3395_s25, %s5054_s11 }
 0xdfc   : > { %p4192_p13 = scmp.lt.s32.totalorder %s4190_s13, %s4186_s28 }
 0xdfd   : > { %p4188_p10 = pnand %p4187_p9, %p4382_p3 }
 0xdfe   : > { %p4193_p0 = por %p4192_p13, %p4191_p12 }
 0xdff   : > { %p4189_p11 = pneg %p4188_p10 }
 0xe01   : > { %p4194_p1 = pnand %p4193_p0, %p4189_p11 }
 0xe03   : > { %4197 = shalt.err (!%p4194_p1)
}
 0xe04   : > { %3955 = dma.vmem_to_hbm [thread:$0]  (%p4382_p3), %s3398_s22, 64, %s3395_s25, %s3382_s20  }
 0xe05 PF: > { %p3961_p2 = scmp.ge.s32.totalorder %s4264_s24, 2  ;;  %s3409_s15 = sand.u32 1, %s4236_s17  }
 0xe06   : > { %s3410_s27 = scalar_lea.sflag [#allocation6], %s3409_s15 }
 0xe07   : > { %p3958_p4 = pnand %p3961_p2, %p4391_p8 }
 0xe09   : > { %p3959_p5 = pneg %p3958_p4 }
 0xe0b   : > { %4231 = dma.done.wait (%p3959_p5), %s3410_s27, 64  }
 0xe0c   : > { %4233 = vsyncadd (%p3959_p5), %s3410_s27, 4294967232  ;;  %s24_s24 = sadd.s32 1, %s4264_s24   ;;  %s5075_s29 = sld [smem:[#allocation8_spill]] }
 0xe0d   : > { %p21_p6 = scmp.ge.s32.totalorder %s24_s24, 6   ;;  %s5076_s19 = sld [smem:[#allocation14_spill]] }
 0xe0e   : > { %s5077_s20 = sld [smem:[#allocation9_spill]]  ;;  %s5081_s17 = smov %s4240_s18 }
 0xe0f   : > { %s5078_s21 = sld [smem:[#allocation10_spill]]  ;;  %23 = sbr.rel (!%p21_p6) target bundleno = 5 (0x5), region = 107 }
 0xe10   : > { %s5079_s22 = sld [smem:[#allocation11_spill]] }
 0xe11   : > { %s5080_s23 = sld [smem:[#allocation12_spill]] }
 0xe12   : > { %s5082_s18 = smov %s5075_s29 }
 0xe14   :  { %3415 = vsyncpa [#allocation6], 1 }
 0xe15   :  { %3417 = vsyncpa [#allocation6 + $0x1], 1 }

// kernel: tpu_custom_call.1
= control target key start
LH: loop header
LB: loop body
LE: loop exit
PB: predicated region body
PF: predicated region fallthrough
CT: control target
= control target key end

     0   :  { %16 = vsyncpa [#allocation6], 0  ;;  %s5043_s0 = inlined_call_operand.vmem [shape: bf16[2,16,32], index: 0, kind: input, shape index: {}]   ;;  %s5044_s1 = inlined_call_operand.vmem [shape: bf16[2,16,32], index: 1, kind: input, shape index: {}]   ;;  %s5045_s2 = inlined_call_operand.vmem [shape: f32[1,4352], index: 2, kind: input, shape index: {}]   ;;  %s5046_s3 = inlined_call_operand.vmem [shape: bf16[32,512], index: 3, kind: input, shape index: {}]   ;;  %s5047_s4 = inlined_call_operand.vmem [shape: bf16[32,1024], index: 4, kind: input, shape index: {}]   ;;  %s5048_s5 = inlined_call_operand.vmem [shape: bf16[512,32], index: 5, kind: input, shape index: {}]   ;;  %s5049_s6 = inlined_call_operand.vmem [shape: bf16[32,512], index: 6, kind: input, shape index: {}]   ;;  %s5050_s7 = inlined_call_operand.vmem [shape: bf16[32,1024], index: 7, kind: input, shape index: {}]   ;;  %s5051_s8 = inlined_call_operand.vmem [shape: bf16[512,32], index: 8, kind: input, shape index: {}]   ;;  %s5052_s9 = inlined_call_operand.vmem [shape: bf16[32,64], index: 9, kind: input, shape index: {}]   ;;  %s5053_s10 = inlined_call_operand.vmem [shape: bf16[64,32], index: 10, kind: input, shape index: {}]   ;;  %s5054_s11 = inlined_call_operand.hbm [shape: bf16[2,16,32], index: 11, kind: output, shape index: {}]  }
   0x1   :  { %18 = vsyncpa [#allocation6 + $0x1], 0  ;;  %s4331_s17 = smov 0   ;;  %s4333_s18 = smov 0  }
   0x2   :  { %s4335_s19 = smov 0   ;;  %s4337_s20 = smov 0  }
   0x3   :  { %s4339_s21 = smov 0   ;;  %s4341_s22 = smov 0  }
   0x4   :  { %s4343_s23 = smov 0   ;;  %s4345_s24 = smov 0  }
   0x5 LB: > { %5062 = sst [smem:[#allocation8_spill]] %s4244_s19  ;;  %s3483_s25 = sadd.s32 4294967295, %s4264_s24   ;;  %s4264_s24 = sphi %s4345_s24, %s24_s24   ;;  %s4260_s23 = sphi %s4343_s23, %s5080_s23   ;;  %s4256_s22 = sphi %s4341_s22, %s5079_s22   ;;  %s4252_s21 = sphi %s4339_s21, %s5078_s21   ;;  %s4248_s20 = sphi %s4337_s20, %s5077_s20   ;;  %s4244_s19 = sphi %s4335_s19, %s5076_s19   ;;  %s4240_s18 = sphi %s4333_s18, %s5082_s18   ;;  %s4236_s17 = sphi %s4331_s17, %s5081_s17  }
   0x6   : > { %5063 = sst [smem:[#allocation9_spill]] %s4256_s22  ;;  %s3484_s26 = sadd.s32 4294967294, %s4264_s24  }
   0x7   : > { %5064 = sst [smem:[#allocation10_spill]] %s4260_s23  ;;  %s33_s27 = sadd.s32 1, %s4256_s22 }
   0x8   : > { %p34_p0 = scmp.ge.s32.totalorder %s33_s27, 2  ;;  %s36_s28 = sadd.s32 1, %s4260_s23 }
   0x9   : > { %p296_p1 = scmp.ne.s32.totalorder %s4244_s19, %s4240_s18  ;;  %p297_p2 = scmp.eq.s32.totalorder %s3483_s25, 3 }
   0xa   : > { %s5084_s27 = smov (%p34_p0, %s33_s27), 0  ;;  %s5086_s28 = smov (!%p34_p0, %s36_s28), %s4260_s23 }
   0xb   : > { %5065 = sst [smem:[#allocation11_spill]] %s5084_s27  ;;  %s282_s29 = ssub.s32 %s4256_s22, %s5084_s27 }
   0xc   : > { %p4382_p3 = por %p297_p2, %p296_p1  ;;  %p38_p4 = scmp.ge.s32.totalorder %s5086_s28, 2 }
   0xd   : > { %p302_p5 = scmp.ne.s32.totalorder %s4240_s18, %s4236_s17  ;;  %p303_p6 = scmp.eq.s32.totalorder %s3484_s26, 3 }
   0xe   : > { %p3487_p7 = scmp.ge.s32.totalorder %s4264_s24, 1  ;;  %s5088_s28 = smov (%p38_p4, %s5086_s28), 0 }
   0xf   : > { %5067 = sst [smem:[#allocation12_spill]] %s5088_s28  ;;  %p4391_p8 = por %p303_p6, %p302_p5 }
  0x10   : > { %p364_p9 = scmp.lt.s32.totalorder %s4264_s24, 5  ;;  %s281_s13 = ssub.s32 %s4260_s23, %s5088_s28 }
  0x11   : > { %s5068_s12 = scalar_select %p4391_p8, 1, 0 }
  0x12   : > { %s286_s14 = sadd.s32 1, %s4244_s19  ;;  %s283_s15 = sor.u32 %s282_s29, %s281_s13 }
  0x13   : > { %5069 = sst [smem:[#allocation13_spill]] %s5068_s12  ;;  %p365_p10 = pnand %p3487_p7, %p364_p9 }
  0x14   : > { %p284_p11 = scmp.eq.s32.totalorder %s283_s15, 0  ;;  %s5060_s25 = sand.u32 (!%p365_p10), 1, %s4240_s18  }
  0x15   : > { %368 = sbr.rel (%p365_p10) target bundleno = 3589 (0xe05), region = 64  ;;  %p409_p12 = scmp.lt.s32.totalorder (!%p365_p10), %s4252_s21, 1 }
  0x16   : > { %s4400_s16 = scalar_select %p284_p11, %s4244_s19, %s286_s14  }
  0x17   : > { %s4406_s26 = sshll.u32 (!%p365_p10), %s5060_s25, 2  ;;  %p3493_p13 = scmp.ne.s32.totalorder (!%p365_p10), %s4248_s20, 0 }
  0x18   : > { %5070 = sst [smem:[#allocation14_spill]] %s4400_s16 }
  0x1a   : > { %s410_s27 = scalar_select %p409_p12, %s4252_s21, 1 }
  0x1b   : > { %423 = sbr.rel (%p3493_p13) target bundleno = 272 (0x110), region = 68 }
  0x1c   : > { %s3693_s22 = sshll.u32 %s410_s27, 3 }
  0x1d   : > { %s4412_s29 = scalar_lea.vmem %s5043_s0, %s3693_s22  ;;  %s4417_s15 = scalar_lea.vmem %s5044_s1, %s3693_s22 }
  0x20   : > { %v434_v0 = vld [vmem:[%s5047_s4 + $0x40] sm:$0xff]  ;;  %v435_v2 = vld [vmem:[%s5047_s4 + $0x48] sm:$0xff]  ;;  %v4266_v8 = vmov 0   ;;  %v436_v15 = vld [vmem:[%s5047_s4 + $0x50] sm:$0xff]  ;;  %vm569_vm0 = vcmask 261120  }
  0x21   : > { %v438_v1 = vld [vmem:[%s5047_s4 + $0x60] sm:$0xff]  ;;  %v439_v4 = vld [vmem:[%s5047_s4 + $0x68] sm:$0xff]  ;;  %605 = vmatprep.mubr.bf16.mxu0 %v4266_v8  ;;  %648 = vmatprep.mubr.bf16.mxu1 %v4266_v8  ;;  %v440_v17 = vld [vmem:[%s5047_s4 + $0x70] sm:$0xff] }
  0x22   : > { %v3504_v3 = vcombine.high %v434_v0, %v438_v1  ;;  %v3503_v5 = vcombine.low %v434_v0, %v438_v1  ;;  %v426_v6 = vld [vmem:[%s5047_s4] sm:$0xff]  ;;  %v3506_v9 = vcombine.high %v435_v2, %v439_v4  ;;  %v3505_v10 = vcombine.low %v435_v2, %v439_v4  ;;  %v427_v12 = vld [vmem:[%s5047_s4 + $0x8] sm:$0xff]  ;;  %v437_v18 = vld [vmem:[%s5047_s4 + $0x58] sm:$0xff] }
  0x23   : > { %v430_v7 = vld [vmem:[%s5047_s4 + $0x20] sm:$0xff]  ;;  %v431_v13 = vld [vmem:[%s5047_s4 + $0x28] sm:$0xff]  ;;  %v441_v19 = vld [vmem:[%s5047_s4 + $0x78] sm:$0xff]  ;;  %v3508_v21 = vcombine.high %v436_v15, %v440_v17  ;;  %v3507_v28 = vcombine.low %v436_v15, %v440_v17 }
  0x24   : > { %v3496_v11 = vcombine.high %v426_v6, %v430_v7  ;;  %585 = vmatprep.subr.bf16.mxu0 %v3504_v3  ;;  %v3498_v14 = vcombine.high %v427_v12, %v431_v13  ;;  %628 = vmatprep.subr.bf16.mxu1 %v3506_v9  ;;  %v3495_v16 = vcombine.low %v426_v6, %v430_v7  ;;  %v428_v23 = vld [vmem:[%s5047_s4 + $0x10] sm:$0xff]  ;;  %v4030_v25 = vld [vmem:[%s4412_s29] sm:$0xff]   ;;  %v429_v26 = vld [vmem:[%s5047_s4 + $0x18] sm:$0xff]  ;;  %v444_v3 = vlaneseq }
  0x25   : > { %586 = vmatpush1.bf16.msra.mxu0 %v3503_v5  ;;  %629 = vmatpush1.bf16.msra.mxu1 %v3505_v10  ;;  %v3497_v20 = vcombine.low %v427_v12, %v431_v13  ;;  %v3510_v22 = vcombine.high %v437_v18, %v441_v19  ;;  %v432_v24 = vld [vmem:[%s5047_s4 + $0x30] sm:$0xff]  ;;  %v433_v27 = vld [vmem:[%s5047_s4 + $0x38] sm:$0xff]  ;;  %v3509_v29 = vcombine.low %v437_v18, %v441_v19  ;;  %v811_v32 = vld [vmem:[%s5050_s7 + $0x40] sm:$0xff] }
  0x26   : > { %587 = vmatprep.subr.bf16.mxu0 %v3496_v11  ;;  %630 = vmatprep.subr.bf16.mxu1 %v3498_v14  ;;  %v3500_v30 = vcombine.high %v428_v23, %v432_v24  ;;  %v3502_v31 = vcombine.high %v429_v26, %v433_v27  ;;  %v815_v33 = vld [vmem:[%s5050_s7 + $0x60] sm:$0xff]  ;;  %v812_v34 = vld [vmem:[%s5050_s7 + $0x48] sm:$0xff]  ;;  %v3499_v36 = vcombine.low %v428_v23, %v432_v24  ;;  %v813_v48 = vld [vmem:[%s5050_s7 + $0x50] sm:$0xff]  ;;  %v4535_v4 = vshrl.u32 %v444_v3, 7 }
  0x27   : > { %v816_v35 = vld [vmem:[%s5050_s7 + $0x68] sm:$0xff]  ;;  %v3501_v37 = vcombine.low %v429_v26, %v433_v27  ;;  %v3533_v38 = vcombine.high %v811_v32, %v815_v33  ;;  %v803_v40 = vld [vmem:[%s5050_s7] sm:$0xff]  ;;  %v3532_v44 = vcombine.low %v811_v32, %v815_v33  ;;  %v817_v49 = vld [vmem:[%s5050_s7 + $0x70] sm:$0xff] }
  0x28   : > { %v3535_v39 = vcombine.high %v812_v34, %v816_v35  ;;  %v807_v41 = vld [vmem:[%s5050_s7 + $0x20] sm:$0xff]  ;;  %v804_v42 = vld [vmem:[%s5050_s7 + $0x8] sm:$0xff]  ;;  %v3534_v45 = vcombine.low %v812_v34, %v816_v35  ;;  %v814_v50 = vld [vmem:[%s5050_s7 + $0x58] sm:$0xff]  ;;  %v3537_v54 = vcombine.high %v813_v48, %v817_v49  ;;  %v3536_v61 = vcombine.low %v813_v48, %v817_v49 }
  0x29   : > { %588 = vmatpush1.bf16.msra.mxu0 %v3495_v16  ;;  %631 = vmatpush1.bf16.msra.mxu1 %v3497_v20  ;;  %v808_v43 = vld [vmem:[%s5050_s7 + $0x28] sm:$0xff]  ;;  %v3525_v46 = vcombine.high %v803_v40, %v807_v41  ;;  %v818_v51 = vld [vmem:[%s5050_s7 + $0x78] sm:$0xff]  ;;  %v3524_v52 = vcombine.low %v803_v40, %v807_v41  ;;  %v805_v56 = vld [vmem:[%s5050_s7 + $0x10] sm:$0xff]  ;;  %v446_v5 = vsub.s32 0, %v4535_v4  ;;  %v450_v6 = vsub.s32 1, %v4535_v4 }
  0x2a   : > { %671 = vmatprep.subr.bf16.mxu0 %v3508_v21  ;;  %714 = vmatprep.subr.bf16.mxu1 %v3510_v22  ;;  %v3527_v47 = vcombine.high %v804_v42, %v808_v43  ;;  %v3526_v53 = vcombine.low %v804_v42, %v808_v43  ;;  %v3539_v55 = vcombine.high %v814_v50, %v818_v51  ;;  %v809_v57 = vld [vmem:[%s5050_s7 + $0x30] sm:$0xff]  ;;  %v4031_v58 = vld [vmem:[%s4417_s15] sm:$0xff]   ;;  %v806_v59 = vld [vmem:[%s5050_s7 + $0x18] sm:$0xff]  ;;  %v454_v9 = vsub.s32 2, %v4535_v4 }
  0x2b   : > { %v810_v60 = vld [vmem:[%s5050_s7 + $0x38] sm:$0xff]  ;;  %v3538_v62 = vcombine.low %v814_v50, %v818_v51  ;;  %v3529_v63 = vcombine.high %v805_v56, %v809_v57  ;;  %v3528_v1 = vcombine.low %v805_v56, %v809_v57  ;;  %v442_v7 = vld [vmem:[%s5045_s2 + $0x4] sm:$0xff]  ;;  %v462_v20 = vsub.s32 4, %v4535_v4 }
  0x2c   : > { %3511 = vmatmul.mubr.msk.bf16.vlgmr.msra.gmra.mxu0 %vm569_vm0, %v4030_v25  ;;  %3512 = vmatmul.mubr.msk.bf16.vlgmr.msra.gmra.mxu1 %vm569_vm0, %v4030_v25  ;;  %v3531_v0 = vcombine.high %v806_v59, %v810_v60  ;;  %v3530_v2 = vcombine.low %v806_v59, %v810_v60  ;;  %v447_v10 = vrot.slane %v442_v7, %v446_v5  ;;  %v466_v21 = vsub.s32 5, %v4535_v4  ;;  %v819_v51 = vld [vmem:[%s5045_s2 + $0x13] sm:$0xff] }
  0x2d   : > { %672 = vmatpush1.bf16.msra.mxu0 %v3507_v28  ;;  %715 = vmatpush1.bf16.msra.mxu1 %v3509_v29  ;;  %v451_v11 = vrot.slane %v442_v7, %v450_v6  ;;  %v455_v13 = vrot.slane %v442_v7, %v454_v9  ;;  %v474_v26 = vsub.s32 7, %v4535_v4  ;;  %v463_v34 = vrot.slane %v442_v7, %v462_v20 }
  0x2e   : > { %673 = vmatprep.subr.bf16.mxu0 %v3500_v30  ;;  %716 = vmatprep.subr.bf16.mxu1 %v3502_v31  ;;  %v467_v35 = vrot.slane %v442_v7, %v466_v21  ;;  %v824_v59 = vrot.slane %v819_v51, %v446_v5  ;;  %v828_v60 = vrot.slane %v819_v51, %v450_v6 }
  0x2f   : > { %691 = vmatprep.mubr.bf16.mxu0 %v4266_v8  ;;  %734 = vmatprep.mubr.bf16.mxu1 %v4266_v8  ;;  %v475_v40 = vrot.slane %v442_v7, %v474_v26 }
  0x31   : > { %674 = vmatpush1.bf16.msra.mxu0 %v3499_v36  ;;  %717 = vmatpush1.bf16.msra.mxu1 %v3501_v37 }
  0x32   : > { %961 = vmatprep.subr.bf16.mxu0 %v3533_v38  ;;  %1004 = vmatprep.subr.bf16.mxu1 %v3535_v39 }
  0x34   : > { %3513 = vmatmul.mubr.msk.bf16.vlgmr.msra.gmra.mxu0 %vm569_vm0, %v4030_v25  ;;  %3514 = vmatmul.mubr.msk.bf16.vlgmr.msra.gmra.mxu1 %vm569_vm0, %v4030_v25  ;;  %v470_v25 = vsub.s32 6, %v4535_v4 }
  0x35   : > { %962 = vmatpush1.bf16.msra.mxu0 %v3532_v44  ;;  %1005 = vmatpush1.bf16.msra.mxu1 %v3534_v45 }
  0x36   : > { %963 = vmatprep.subr.bf16.mxu0 %v3525_v46  ;;  %1006 = vmatprep.subr.bf16.mxu1 %v3527_v47  ;;  %v471_v39 = vrot.slane %v442_v7, %v470_v25 }
  0x37   : > { %981 = vmatprep.mubr.bf16.mxu0 %v4266_v8  ;;  %1024 = vmatprep.mubr.bf16.mxu1 %v4266_v8 }
  0x39   : > { %964 = vmatpush1.bf16.msra.mxu0 %v3524_v52  ;;  %1007 = vmatpush1.bf16.msra.mxu1 %v3526_v53 }
  0x3a   : > { %1047 = vmatprep.subr.bf16.mxu0 %v3537_v54  ;;  %1090 = vmatprep.subr.bf16.mxu1 %v3539_v55 }
  0x3c   : > { %3540 = vmatmul.mubr.msk.bf16.vlgmr.msra.gmra.mxu0 %vm569_vm0, %v4031_v58  ;;  %3541 = vmatmul.mubr.msk.bf16.vlgmr.msra.gmra.mxu1 %vm569_vm0, %v4031_v58 }
  0x3d   : > { %1048 = vmatpush1.bf16.msra.mxu0 %v3536_v61  ;;  %1091 = vmatpush1.bf16.msra.mxu1 %v3538_v62 }
  0x3e   : > { %1049 = vmatprep.subr.bf16.mxu0 %v3529_v63  ;;  %1092 = vmatprep.subr.bf16.mxu1 %v3531_v0  ;;  %v832_v0 = vrot.slane %v819_v51, %v454_v9 }
  0x3f   : > { %1067 = vmatprep.mubr.bf16.mxu0 %v4266_v8  ;;  %1110 = vmatprep.mubr.bf16.mxu1 %v4266_v8  ;;  %v458_v8 = vsub.s32 3, %v4535_v4 }
  0x41   : > { %1050 = vmatpush1.bf16.msra.mxu0 %v3528_v1  ;;  %1093 = vmatpush1.bf16.msra.mxu1 %v3530_v2  ;;  %v459_v14 = vrot.slane %v442_v7, %v458_v8  ;;  %v836_v1 = vrot.slane %v819_v51, %v458_v8 }
  0x44   : > { %3542 = vmatmul.mubr.msk.bf16.vlgmr.msra.gmra.mxu0 %vm569_vm0, %v4031_v58  ;;  %3543 = vmatmul.mubr.msk.bf16.vlgmr.msra.gmra.mxu1 %vm569_vm0, %v4031_v58 }
  0xec   : > { %v607_v12 = vpop.f32.mrf.mxu0  ;;  %v650_v15 = vpop.f32.mrf.mxu1 }
  0xed   : > { %v608_v17 = vadd.f32 %v607_v12, %v447_v10  ;;  %v651_v22 = vadd.f32 %v650_v15, %v455_v13 }
  0xee   : > { %v609_v16 = vpop.f32.mrf.mxu0  ;;  %v652_v19 = vpop.f32.mrf.mxu1 }
  0xef   : > { %v610_v18 = vadd.f32 %v609_v16, %v451_v11  ;;  %v653_v23 = vadd.f32 %v652_v19, %v459_v14 }
  0xf0   : > { %v611_v24 = vpop.f32.mrf.mxu0  ;;  %v654_v28 = vpop.f32.mrf.mxu1 }
  0xf1   : > { %v3695_v27 = vpack.c.bf16 %v610_v18, %v608_v17  ;;  %v3696_v29 = vpack.c.bf16 %v653_v23, %v651_v22  ;;  %v612_v31 = vadd.f32 %v611_v24, %v447_v10  ;;  %v655_v36 = vadd.f32 %v654_v28, %v455_v13 }
  0xf2   : > { %v613_v30 = vpop.f32.mrf.mxu0  ;;  %v656_v33 = vpop.f32.mrf.mxu1  ;;  %v840_v22 = vrot.slane %v819_v51, %v462_v20  ;;  %v844_v23 = vrot.slane %v819_v51, %v466_v21 }
  0xf3   : > { %793 = vst [vmem:[#allocation2] sm:$0xff] %v3695_v27  ;;  %v614_v32 = vadd.f32 %v613_v30, %v451_v11  ;;  %794 = vst [vmem:[#allocation2 + $0x8] sm:$0xff] %v3696_v29  ;;  %v657_v37 = vadd.f32 %v656_v33, %v459_v14  ;;  %v848_v29 = vrot.slane %v819_v51, %v470_v25 }
  0xf4   : > { %v693_v38 = vpop.f32.mrf.mxu0  ;;  %v736_v42 = vpop.f32.mrf.mxu1  ;;  %v852_v30 = vrot.slane %v819_v51, %v474_v26 }
  0xf5   : > { %v3699_v41 = vpack.c.bf16 %v614_v32, %v612_v31  ;;  %v3700_v43 = vpack.c.bf16 %v657_v37, %v655_v36  ;;  %v694_v45 = vadd.f32 %v693_v38, %v463_v34  ;;  %v737_v48 = vadd.f32 %v736_v42, %v471_v39 }
  0xf6   : > { %v695_v44 = vpop.f32.mrf.mxu0  ;;  %v738_v47 = vpop.f32.mrf.mxu1 }
  0xf7   : > { %797 = vst [vmem:[#allocation2 + $0x20] sm:$0xff] %v3699_v41  ;;  %v696_v46 = vadd.f32 %v695_v44, %v467_v35  ;;  %798 = vst [vmem:[#allocation2 + $0x28] sm:$0xff] %v3700_v43  ;;  %v739_v49 = vadd.f32 %v738_v47, %v475_v40 }
  0xf8   : > { %v697_v50 = vpop.f32.mrf.mxu0  ;;  %v740_v53 = vpop.f32.mrf.mxu1 }
  0xf9   : > { %v3697_v52 = vpack.c.bf16 %v696_v46, %v694_v45  ;;  %v3698_v54 = vpack.c.bf16 %v739_v49, %v737_v48  ;;  %v698_v56 = vadd.f32 %v697_v50, %v463_v34  ;;  %v741_v61 = vadd.f32 %v740_v53, %v471_v39 }
  0xfa   : > { %v699_v55 = vpop.f32.mrf.mxu0  ;;  %v742_v58 = vpop.f32.mrf.mxu1 }
  0xfb   : > { %795 = vst [vmem:[#allocation2 + $0x10] sm:$0xff] %v3697_v52  ;;  %v700_v57 = vadd.f32 %v699_v55, %v467_v35  ;;  %796 = vst [vmem:[#allocation2 + $0x18] sm:$0xff] %v3698_v54  ;;  %v743_v62 = vadd.f32 %v742_v58, %v475_v40 }
  0xfc   : > { %v983_v63 = vpop.f32.mrf.mxu0  ;;  %v1026_v3 = vpop.f32.mrf.mxu1 }
  0xfd   : > { %v3701_v2 = vpack.c.bf16 %v700_v57, %v698_v56  ;;  %v3702_v7 = vpack.c.bf16 %v743_v62, %v741_v61  ;;  %v984_v11 = vadd.f32 %v983_v63, %v824_v59  ;;  %v1027_v14 = vadd.f32 %v1026_v3, %v832_v0 }
  0xfe   : > { %v985_v10 = vpop.f32.mrf.mxu0  ;;  %v1028_v13 = vpop.f32.mrf.mxu1 }
  0xff   : > { %799 = vst [vmem:[#allocation2 + $0x30] sm:$0xff] %v3701_v2  ;;  %v986_v12 = vadd.f32 %v985_v10, %v828_v60  ;;  %800 = vst [vmem:[#allocation2 + $0x38] sm:$0xff] %v3702_v7  ;;  %v1029_v15 = vadd.f32 %v1028_v13, %v836_v1 }
 0x100   : > { %v987_v16 = vpop.f32.mrf.mxu0  ;;  %v1030_v6 = vpop.f32.mrf.mxu1 }
 0x101   : > { %v3703_v5 = vpack.c.bf16 %v986_v12, %v984_v11  ;;  %v3704_v17 = vpack.c.bf16 %v1029_v15, %v1027_v14  ;;  %v988_v19 = vadd.f32 %v987_v16, %v824_v59  ;;  %v1031_v24 = vadd.f32 %v1030_v6, %v832_v0 }
 0x102   : > { %v989_v18 = vpop.f32.mrf.mxu0  ;;  %v1032_v8 = vpop.f32.mrf.mxu1 }
 0x103   : > { %1169 = vst [vmem:[#allocation3] sm:$0xff] %v3703_v5  ;;  %v990_v9 = vadd.f32 %v989_v18, %v828_v60  ;;  %1170 = vst [vmem:[#allocation3 + $0x8] sm:$0xff] %v3704_v17  ;;  %v1033_v27 = vadd.f32 %v1032_v8, %v836_v1 }
 0x104   : > { %v1069_v28 = vpop.f32.mrf.mxu0  ;;  %v1112_v32 = vpop.f32.mrf.mxu1 }
 0x105   : > { %v3707_v31 = vpack.c.bf16 %v990_v9, %v988_v19  ;;  %v3708_v33 = vpack.c.bf16 %v1033_v27, %v1031_v24  ;;  %v1070_v35 = vadd.f32 %v1069_v28, %v840_v22  ;;  %v1113_v21 = vadd.f32 %v1112_v32, %v848_v29 }
 0x106   : > { %v1071_v34 = vpop.f32.mrf.mxu0  ;;  %v1114_v36 = vpop.f32.mrf.mxu1 }
 0x107   : > { %1173 = vst [vmem:[#allocation3 + $0x20] sm:$0xff] %v3707_v31  ;;  %v1072_v20 = vadd.f32 %v1071_v34, %v844_v23  ;;  %1174 = vst [vmem:[#allocation3 + $0x28] sm:$0xff] %v3708_v33  ;;  %v1115_v37 = vadd.f32 %v1114_v36, %v852_v30 }
 0x108   : > { %v1073_v38 = vpop.f32.mrf.mxu0  ;;  %v1116_v40 = vpop.f32.mrf.mxu1 }
 0x109   : > { %v3705_v39 = vpack.c.bf16 %v1072_v20, %v1070_v35  ;;  %v3706_v41 = vpack.c.bf16 %v1115_v37, %v1113_v21  ;;  %v1074_v25 = vadd.f32 %v1073_v38, %v840_v22  ;;  %v1117_v43 = vadd.f32 %v1116_v40, %v848_v29 }
 0x10a   : > { %v1075_v42 = vpop.f32.mrf.mxu0  ;;  %v1118_v26 = vpop.f32.mrf.mxu1 }
 0x10b   : > { %1171 = vst [vmem:[#allocation3 + $0x10] sm:$0xff] %v3705_v39  ;;  %v1076_v4 = vadd.f32 %v1075_v42, %v844_v23  ;;  %1172 = vst [vmem:[#allocation3 + $0x18] sm:$0xff] %v3706_v41  ;;  %v1119_v44 = vadd.f32 %v1118_v26, %v852_v30 }
 0x10d   : > { %v3709_v45 = vpack.c.bf16 %v1076_v4, %v1074_v25  ;;  %v3710_v46 = vpack.c.bf16 %v1119_v44, %v1117_v43 }
 0x10f   : > { %1175 = vst [vmem:[#allocation3 + $0x30] sm:$0xff] %v3709_v45  ;;  %1176 = vst [vmem:[#allocation3 + $0x38] sm:$0xff] %v3710_v46 }
 0x110 PF: > { %v4032_v47 = vld [vmem:[%s5046_s3 + $0x24] ss:$16 sps:$4 sm:$0xff]   ;;  %s3552_s14 = sshll.u32 %s4248_s20, 3  ;;  %v4034_v48 = vld [vmem:[%s5046_s3 + $0x20] ss:$16 sps:$4 sm:$0xff]   ;;  %v4267_v49 = vmov 0   ;;  %v1259_v61 = vlaneseq }
 0x111   : > { %1355 = vmatprep.mubr.bf16.mxu0 %v4267_v49  ;;  %s1178_s12 = sshra.s32 %s3552_s14, 3  ;;  %1396 = vmatprep.mubr.bf16.mxu1 %v4267_v49  ;;  %v4035_v50 = vld [vmem:[%s5046_s3 + $0x4] ss:$16 sps:$4 sm:$0xff]   ;;  %v4037_v51 = vld [vmem:[%s5046_s3] ss:$16 sps:$4 sm:$0xff]   ;;  %vm1319_vm1 = vcmask 261120  }
 0x112   : > { %1335 = vmatprep.subr.bf16.mxu0 %v4032_v47  ;;  %s3553_s16 = sshll.u32 %s1178_s12, 2  ;;  %v4038_v52 = vld [vmem:[%s5046_s3 + $0x2c] ss:$16 sps:$4 sm:$0xff]   ;;  %v4040_v53 = vld [vmem:[%s5046_s3 + $0x28] ss:$16 sps:$4 sm:$0xff]   ;;  %v4268_v60 = vmov 0.0  }
 0x113   : > { %1336 = vmatpush1.bf16.msra.mxu0 %v4034_v48  ;;  %s1181_s13 = scalar_lea.vmem %s4412_s29, %s3553_s16  ;;  %1376 = vmatprep.subr.bf16.mxu1 %v4038_v52  ;;  %v4041_v55 = vld [vmem:[%s5046_s3 + $0xc] ss:$16 sps:$4 sm:$0xff]   ;;  %v1406_v56 = vld [vmem:[#allocation2] sm:$0xf]  ;;  %v4043_v57 = vld [vmem:[%s5046_s3 + $0x8] ss:$16 sps:$4 sm:$0xff]  }
 0x114   : > { %1337 = vmatprep.subr.bf16.mxu0 %v4035_v50  ;;  %v4589_v54 = vld [vmem:[%s1181_s13] sm:$0xf]  ;;  %1377 = vmatpush1.bf16.msra.mxu1 %v4040_v53  ;;  %vm4269_vm2 = vmmov 0   ;;  %v4608_v62 = vshrl.u32 %v1259_v61, 7  ;;  %v1522_v3 = vld [vmem:[#allocation2 + $0x4] sm:$0xf] }
 0x115   : > { %v1407_v58 = vld [vmem:[#allocation2 + $0x20] sm:$0xf]  ;;  %1378 = vmatprep.subr.bf16.mxu1 %v4041_v55  ;;  %v1523_v7 = vld [vmem:[#allocation2 + $0x24] sm:$0xf]  ;;  %v1637_v9 = vld [vmem:[#allocation2 + $0x8] sm:$0xf] }
 0x116   : > { %v3564_v59 = vcombine.low %v1406_v56, %v1407_v58  ;;  %v1261_v63 = vsub.s32 0, %v4608_v62  ;;  %v1192_v0 = vld [vmem:[%s5045_s2] sm:$0xf]  ;;  %v1265_v2 = vsub.s32 1, %v4608_v62  ;;  %v3567_v13 = vcombine.low %v1522_v3, %v1523_v7  ;;  %v1638_v8 = vld [vmem:[#allocation2 + $0x28] sm:$0xf] }
 0x117   : > { %1338 = vmatpush1.bf16.msra.mxu0 %v4037_v51  ;;  %v1269_v6 = vsub.s32 2, %v4608_v62  ;;  %v3570_v27 = vcombine.low %v1637_v9, %v1638_v8  ;;  %v1273_v30 = vsub.s32 3, %v4608_v62  ;;  %v1752_v31 = vld [vmem:[#allocation2 + $0xc] sm:$0xf]  ;;  %vm1457_vm3 = vcmask 130048   ;;  %s3689_s27 = sshll.u32 %s4252_s21, 1 }
 0x118   : > { %3839 = vmatprep.subr.bf16.mxu0 %v4268_v60  ;;  %1379 = vmatpush1.bf16.msra.mxu1 %v4043_v57  ;;  %v1262_v1 = vrot.slane %v1192_v0, %v1261_v63  ;;  %v1266_v15 = vrot.slane %v1192_v0, %v1265_v2  ;;  %v1753_v32 = vld [vmem:[#allocation2 + $0x2c] sm:$0xf]  ;;  %v1408_v56 = vld [vmem:[#allocation2 + $0x10] sm:$0xf]  ;;  %v1639_v8 = vld [vmem:[#allocation2 + $0x18] sm:$0xf]  ;;  %s3393_s12 = sadd.s32 %s4248_s20, %s3689_s27 }
 0x119   : > { %3845 = vmatprep.subr.bf16.mxu1 %v4268_v60  ;;  %v1270_v23 = vrot.slane %v1192_v0, %v1269_v6  ;;  %v3573_v34 = vcombine.low %v1752_v31, %v1753_v32  ;;  %v1274_v35 = vrot.slane %v1192_v0, %v1273_v30  ;;  %v1409_v57 = vld [vmem:[#allocation2 + $0x30] sm:$0xf]  ;;  %vm3304_vm4 = vcmask 523264   ;;  %s3690_s16 = sshll.u32 %s3393_s12, 6  ;;  %s5071_s13 = scalar_lea.vmem [#allocation5], %s4406_s26 }
 0x11a   : > { %3562 = vmatmul.mubr.msk.bf16.vlgmr.msra.gmra.mxu0 %vm1319_vm1, %v4589_v54  ;;  %s3397_s22 = sshll.u32 %s5071_s13, 4  ;;  %vm3379_vm5 = vcmask 257024   ;;  %s3395_s25 = scalar_lea.hbm %s5054_s11, %s3690_s16  ;;  %s3398_s22 = int_to_ptr.vmem [resolvable:$true] %s3397_s22 }
 0x11b   : > { %3840 = vmatpush3.bf16.xpose.msra.mxu0 %v3564_v59  ;;  %3563 = vmatmul.mubr.msk.bf16.vlgmr.msra.gmra.mxu1 %vm1319_vm1, %v4589_v54  ;;  %v3565_v59 = vcombine.low %v1408_v56, %v1409_v57  ;;  %v4061_v56 = vld [vmem:[%s5048_s5 + $0xe8] sm:$0xff]   ;;  %s5072_s14 = smov %s5071_s13  ;;  %s5073_s15 = sand.u32 1, %s4240_s18  }
 0x11c   : > { %3851 = vmatprep.subr.bf16.mxu0 %v4268_v60  ;;  %3841 = vmatprep.mubr.msk.bf16.mxu0 %vm4269_vm2, %v4268_v60  ;;  %v4062_v57 = vld [vmem:[%s5048_s5 + $0x8] sm:$0xff]   ;;  %s3382_s20 = scalar_lea.sflag [#allocation6], %s5073_s15  ;;  %s4172_s27 = scalar_lea.vmem %s3398_s22, 64 }
 0x11d   : > { %3847 = vmatprep.mubr.msk.bf16.mxu1 %vm4269_vm2, %v4268_v60  ;;  %3846 = vmatpush3.bf16.msra.mxu1 %v3565_v59  ;;  %v4064_v59 = vld [vmem:[%s5048_s5 + $0x40] sm:$0xff]   ;;  %p4173_p0 = scmp.ne.s32.totalorder %s3398_s22, %s4172_s27  ;;  %s4270_s29 = smov [#allocation5]  }
 0x11e   : > { %3857 = vmatprep.subr.bf16.mxu1 %v4268_v60  ;;  %s4176_s12 = sshll.u32 %s4270_s29, 4  ;;  %s4177_s12 = int_to_ptr.vmem [resolvable:$false] %s4176_s12 }
 0x11f   : > { %p4174_p1 = pnand %p4173_p0, %p4382_p3  ;;  %s4178_s23 = scalar_lea.vmem %s4177_s12, 128 }
 0x120   : > { %p4179_p4 = scmp.lt.s32.totalorder %s3398_s22, %s4177_s12  ;;  %p4180_p5 = scmp.lt.s32.totalorder %s4178_s23, %s4172_s27 }
 0x121   : > { %p4175_p2 = pneg %p4174_p1 }
 0x122   : > { %p4181_p6 = por %p4180_p5, %p4179_p4 }
 0x124   : > { %p4182_p7 = pnand %p4181_p6, %p4175_p2 }
 0x1da   : > { %v1357_v10 = vpop.f32.mrf.mxu0 }
 0x1db   : > { %v1358_v11 = vadd.f32 %v1357_v10, %v1262_v1  ;;  %v1398_v16 = vpop.f32.mrf.mxu1 }
 0x1dc   : > { %v1359_v12 = vpop.f32.mrf.mxu0  ;;  %v1399_v29 = vadd.f32 %v1398_v16, %v1270_v23 }
 0x1dd   : > { %v1405_v14 = vpack.c.bf16 %v1358_v11, %v1358_v11  ;;  %v1400_v17 = vpop.f32.mrf.mxu1  ;;  %v1360_v19 = vadd.f32 %v1359_v12, %v1266_v15 }
 0x1de   : > { %v1361_v5 = vpop.f32.mrf.mxu0  ;;  %v1636_v33 = vpack.c.bf16 %v1399_v29, %v1399_v29  ;;  %v1401_v20 = vadd.f32 %v1400_v17, %v1274_v35 }
 0x1df   : > { %3842 = vmatmul.mubr.bf16.vlgmr.msra.gmra.mxu0 %v1405_v14  ;;  %v1402_v22 = vpop.f32.mrf.mxu1  ;;  %v1521_v28 = vpack.c.bf16 %v1360_v19, %v1360_v19  ;;  %v1525_v14 = vld [vmem:[#allocation2 + $0x34] sm:$0xf] }
 0x1e0   : > { %3852 = vmatpush3.bf16.xpose.msra.mxu0 %v3567_v13  ;;  %v1362_v18 = vpop.f32.mrf.mxu0  ;;  %3853 = vmatprep.mubr.msk.bf16.mxu0 %vm4269_vm2, %v4268_v60  ;;  %v1751_v36 = vpack.c.bf16 %v1401_v20, %v1401_v20  ;;  %v1524_v13 = vld [vmem:[#allocation2 + $0x14] sm:$0xf]  ;;  %v1640_v22 = vld [vmem:[#allocation2 + $0x38] sm:$0xf] }
 0x1e1   : > { %3863 = vmatprep.subr.bf16.mxu0 %v4268_v60  ;;  %v1403_v24 = vpop.f32.mrf.mxu1  ;;  %v3568_v17 = vcombine.low %v1524_v13, %v1525_v14  ;;  %v4075_v13 = vld [vmem:[%s5048_s5 + $0x88] sm:$0xff]   ;;  %v4076_v14 = vld [vmem:[%s5048_s5 + $0xc0] sm:$0xff]  }
 0x1e7   : > { %3854 = vmatmul.mubr.bf16.vlgmr.msra.gmra.mxu0 %v1521_v28  ;;  %v3571_v28 = vcombine.low %v1639_v8, %v1640_v22 }
 0x1e8   : > { %3864 = vmatpush3.bf16.xpose.msra.mxu0 %v3570_v27  ;;  %3865 = vmatprep.mubr.msk.bf16.mxu0 %vm4269_vm2, %v4268_v60 }
 0x1e9   : > { %3875 = vmatprep.subr.bf16.mxu0 %v4268_v60 }
 0x1ef   : > { %3866 = vmatmul.mubr.bf16.vlgmr.msra.gmra.mxu0 %v1636_v33  ;;  %v1754_v33 = vld [vmem:[#allocation2 + $0x1c] sm:$0xf] }
 0x1f0   : > { %3876 = vmatpush3.bf16.xpose.msra.mxu0 %v3573_v34  ;;  %3877 = vmatprep.mubr.msk.bf16.mxu0 %vm4269_vm2, %v4268_v60  ;;  %v1755_v34 = vld [vmem:[#allocation2 + $0x3c] sm:$0xf] }
 0x1f1   : > { %v3574_v20 = vcombine.low %v1754_v33, %v1755_v34 }
 0x1f7   : > { %3878 = vmatmul.mubr.bf16.vlgmr.msra.gmra.mxu0 %v1751_v36 }
 0x29f   : > { %v1450_v21 = vpop.f32.mrf.mxu0 }
 0x2a0   : > { %v1456_v37 = vmul.f32 0.35355338, %v1450_v21 }
 0x2a1   : > { %v3843_v38 = vpop.f32.mrf.mxu0 }
 0x2a2   : > { %v1458_v39 = vsel %vm1457_vm3, %v1456_v37, -inf }
 0x2a3   : > { %1459 = vmax.xlane.f32.xlu0 %v1458_v39  ;;  %v1453_v40 = vpop.f32.mrf.mxu0 }
 0x2a4   : > { %v4044_v40 = vld [vmem:[%s5048_s5 + $0x78] sm:$0xff]  }
 0x2a5   : > { %v3844_v41 = vpop.f32.mrf.mxu0  ;;  %3727 = vmatprep.subr.bf16.mxu0 %v4044_v40 }
 0x2a6   : > { %v4045_v41 = vld [vmem:[%s5048_s5 + $0x38] sm:$0xff]  }
 0x2a7   : > { %v1566_v42 = vpop.f32.mrf.mxu0  ;;  %3728 = vmatpush3.bf16.msra.mxu0 %v4045_v41 }
 0x2a8   : > { %v1572_v25 = vmul.f32 0.35355338, %v1566_v42  ;;  %v4046_v42 = vld [vmem:[%s5048_s5 + $0x70] sm:$0xff]  }
 0x2a9   : > { %v3855_v4 = vpop.f32.mrf.mxu0  ;;  %3729 = vmatprep.subr.bf16.mxu0 %v4046_v42 }
 0x2aa   : > { %v1573_v26 = vsel %vm1457_vm3, %v1572_v25, -inf  ;;  %v4048_v4 = vld [vmem:[%s5048_s5 + $0x68] sm:$0xff]  }
 0x2ab   : > { %1574 = vmax.xlane.f32.xlu0 %v1573_v26  ;;  %v1569_v43 = vpop.f32.mrf.mxu0  ;;  %v4049_v26 = vld [vmem:[%s5048_s5 + $0x28] sm:$0xff]  }
 0x2ac   : > { %v4050_v43 = vld [vmem:[%s5048_s5 + $0x60] sm:$0xff]  }
 0x2ad   : > { %v3856_v44 = vpop.f32.mrf.mxu0 }
 0x2ae   : > { %v4051_v44 = vld [vmem:[%s5048_s5 + $0x20] sm:$0xff]  }
 0x2af   : > { %v1681_v45 = vpop.f32.mrf.mxu0 }
 0x2b0   : > { %v1687_v46 = vmul.f32 0.35355338, %v1681_v45  ;;  %v4052_v45 = vld [vmem:[%s5048_s5 + $0x58] sm:$0xff]  }
 0x2b1   : > { %v3867_v47 = vpop.f32.mrf.mxu0 }
 0x2b2   : > { %v1688_v48 = vsel %vm1457_vm3, %v1687_v46, -inf  ;;  %v4054_v47 = vld [vmem:[%s5048_s5 + $0x18] sm:$0xff]  }
 0x2b3   : > { %1689 = vmax.xlane.f32.xlu1 %v1688_v48  ;;  %v1684_v50 = vpop.f32.mrf.mxu0  ;;  %v4055_v48 = vld [vmem:[%s5048_s5 + $0xb8] sm:$0xff]  }
 0x2b4   : > { %v4056_v50 = vld [vmem:[%s5048_s5 + $0x50] sm:$0xff]  }
 0x2b5   : > { %v3868_v51 = vpop.f32.mrf.mxu0 }
 0x2b6   : > { %v4057_v51 = vld [vmem:[%s5048_s5 + $0xf0] sm:$0xff]  }
 0x2b7   : > { %v1796_v52 = vpop.f32.mrf.mxu0 }
 0x2b8   : > { %v1802_v53 = vmul.f32 0.35355338, %v1796_v52  ;;  %v4058_v52 = vld [vmem:[%s5048_s5 + $0x10] sm:$0xff]  }
 0x2b9   : > { %v3879_v55 = vpop.f32.mrf.mxu0 }
 0x2ba   : > { %v1803_v58 = vsel %vm1457_vm3, %v1802_v53, -inf  ;;  %v4060_v55 = vld [vmem:[%s5048_s5 + $0x48] sm:$0xff]  }
 0x2bb   : > { %1804 = vmax.xlane.f32.xlu1 %v1803_v58  ;;  %v1799_v61 = vpop.f32.mrf.mxu0  ;;  %v4063_v58 = vld [vmem:[%s5048_s5 + $0xa8] sm:$0xff]  }
 0x2bc   : > { %v4065_v61 = vld [vmem:[%s5048_s5 + $0xe0] sm:$0xff]  }
 0x2bd   : > { %v3880_v0 = vpop.f32.mrf.mxu0 }
 0x2be   : > { %v4066_v0 = vld [vmem:[%s5048_s5] sm:$0xff]  }
 0x32c   : > { %v1460_v1 = vpop.xlane.xlu0 %1459 }
 0x32d   : > { %v1461_v3 = vsub.f32 %v1456_v37, %v1460_v1  ;;  %v4067_v1 = vld [vmem:[%s5048_s5 + $0xa0] sm:$0xff]  }
 0x32f   : > { %v1462_v7 = vmul.f32 1.442695, %v1461_v3  ;;  %v4070_v3 = vld [vmem:[%s5048_s5 + $0xd8] sm:$0xff]  }
 0x331   : > { %4134 = vpow2.f32 %v1462_v7  ;;  %v4071_v7 = vld [vmem:[%s5048_s5 + $0x98] sm:$0xff]  }
 0x334   : > { %v1575_v10 = vpop.xlane.xlu0 %1574 }
 0x335   : > { %v1576_v11 = vsub.f32 %v1572_v25, %v1575_v10  ;;  %v4047_v25 = vld [vmem:[%s5048_s5 + $0x30] sm:$0xff]  }
 0x336   : > { %3730 = vmatpush3.bf16.msra.mxu0 %v4047_v25  ;;  %v4072_v10 = vld [vmem:[%s5048_s5 + $0xd0] sm:$0xff]  }
 0x337   : > { %v1577_v12 = vmul.f32 1.442695, %v1576_v11  ;;  %3731 = vmatprep.subr.bf16.mxu0 %v4048_v4  ;;  %v4073_v11 = vld [vmem:[%s5048_s5 + $0x90] sm:$0xff]  }
 0x339   : > { %4136 = vpow2.f32 %v1577_v12  ;;  %v4074_v12 = vld [vmem:[%s5048_s5 + $0xc8] sm:$0xff]  }
 0x33a   : > { %3732 = vmatpush3.bf16.msra.mxu0 %v4049_v26 }
 0x33b   : > { %3733 = vmatprep.subr.bf16.mxu0 %v4050_v43 }
 0x33c   : > { %v1690_v15 = vpop.xlane.xlu1 %1689 }
 0x33d   : > { %v1691_v16 = vsub.f32 %v1687_v46, %v1690_v15  ;;  %v4053_v46 = vld [vmem:[%s5048_s5 + $0xf8] sm:$0xff]   ;;  %v4077_v15 = vld [vmem:[%s5048_s5 + $0x80] sm:$0xff]  }
 0x33e   : > { %v4135_v5 = vpop.eup %4134  ;;  %3734 = vmatpush3.bf16.msra.mxu0 %v4051_v44 }
 0x33f   : > { %v1692_v18 = vmul.f32 1.442695, %v1691_v16  ;;  %v1464_v19 = vsel %vm1457_vm3, %v4135_v5, 0.0  ;;  %v1467_v9 = vpack.c.bf16 %v4135_v5, %v4135_v5  ;;  %3735 = vmatprep.subr.bf16.mxu0 %v4052_v45 }
 0x340   : > { %1465 = vadd.xlane.f32.xlu0 %v1464_v19 }
 0x341   : > { %4138 = vpow2.f32 %v1692_v18  ;;  %3848 = vmatmul.mubr.msk.bf16.vlgmr.msra.gmra.mxu1 %vm1457_vm3, %v1467_v9 }
 0x342   : > { %3858 = vmatpush3.bf16.msra.mxu1 %v3568_v17  ;;  %3859 = vmatprep.mubr.msk.bf16.mxu1 %vm4269_vm2, %v4268_v60 }
 0x343   : > { %3869 = vmatprep.subr.bf16.mxu1 %v4268_v60  ;;  %3736 = vmatpush3.bf16.msra.mxu0 %v4054_v47 }
 0x344   : > { %v1805_v23 = vpop.xlane.xlu1 %1804  ;;  %3737 = vmatprep.subr.bf16.mxu0 %v4056_v50 }
 0x345   : > { %v1806_v24 = vsub.f32 %v1802_v53, %v1805_v23  ;;  %v4059_v53 = vld [vmem:[%s5048_s5 + $0xb0] sm:$0xff]  }
 0x346   : > { %v4137_v27 = vpop.eup %4136 }
 0x347   : > { %v1807_v29 = vmul.f32 1.442695, %v1806_v24  ;;  %v1579_v31 = vsel %vm1457_vm3, %v4137_v27, 0.0  ;;  %v1582_v32 = vpack.c.bf16 %v4137_v27, %v4137_v27  ;;  %3738 = vmatpush3.bf16.msra.mxu0 %v4058_v52 }
 0x348   : > { %1580 = vadd.xlane.f32.xlu1 %v1579_v31  ;;  %3739 = vmatprep.subr.bf16.mxu0 %v4060_v55 }
 0x349   : > { %4140 = vpow2.f32 %v1807_v29  ;;  %3860 = vmatmul.mubr.msk.bf16.vlgmr.msra.gmra.mxu1 %vm1457_vm3, %v1582_v32 }
 0x34a   : > { %3870 = vmatpush3.bf16.msra.mxu1 %v3571_v28  ;;  %3871 = vmatprep.mubr.msk.bf16.mxu1 %vm4269_vm2, %v4268_v60 }
 0x34b   : > { %3881 = vmatprep.subr.bf16.mxu1 %v4268_v60  ;;  %3740 = vmatpush3.bf16.msra.mxu0 %v4062_v57 }
 0x34c   : > { %3741 = vmatprep.subr.bf16.mxu0 %v4064_v59 }
 0x34e   : > { %v4139_v35 = vpop.eup %4138 }
 0x34f   : > { %v1694_v36 = vsel %vm1457_vm3, %v4139_v35, 0.0  ;;  %v1697_v21 = vpack.c.bf16 %v4139_v35, %v4139_v35  ;;  %3742 = vmatpush3.bf16.msra.mxu0 %v4066_v0 }
 0x350   : > { %1695 = vadd.xlane.f32.xlu0 %v1694_v36 }
 0x351   : > { %3872 = vmatmul.mubr.msk.bf16.vlgmr.msra.gmra.mxu1 %vm1457_vm3, %v1697_v21 }
 0x352   : > { %3882 = vmatpush3.bf16.msra.mxu1 %v3574_v20  ;;  %3883 = vmatprep.mubr.msk.bf16.mxu1 %vm4269_vm2, %v4268_v60 }
 0x353   : > { %3749 = vmatprep.subr.bf16.mxu1 %v4053_v46 }
 0x356   : > { %v4141_v37 = vpop.eup %4140 }
 0x357   : > { %v1809_v38 = vsel %vm1457_vm3, %v4141_v37, 0.0  ;;  %v1812_v39 = vpack.c.bf16 %v4141_v37, %v4141_v37 }
 0x358   : > { %1810 = vadd.xlane.f32.xlu1 %v1809_v38 }
 0x359   : > { %3884 = vmatmul.mubr.msk.bf16.vlgmr.msra.gmra.mxu1 %vm1457_vm3, %v1812_v39 }
 0x35a   : > { %3750 = vmatpush3.bf16.msra.mxu1 %v4055_v48 }
 0x35b   : > { %3751 = vmatprep.subr.bf16.mxu1 %v4057_v51 }
 0x35e   : > { %3752 = vmatpush3.bf16.msra.mxu1 %v4059_v53 }
 0x35f   : > { %3753 = vmatprep.subr.bf16.mxu1 %v4061_v56 }
 0x362   : > { %3754 = vmatpush3.bf16.msra.mxu1 %v4063_v58  ;;  %v3576_v58 = vld [vmem:[%s5045_s2 + $0xc] ss:$0 sm:$0xff] }
 0x363   : > { %3755 = vmatprep.subr.bf16.mxu1 %v4065_v61 }
 0x366   : > { %3756 = vmatpush3.bf16.msra.mxu1 %v4067_v1 }
 0x367   : > { %3757 = vmatprep.subr.bf16.mxu1 %v4070_v3  ;;  %v1183_v3 = vunpack.c.l.bf16 %v4589_v54  ;;  %v4085_v54 = vld [vmem:[%s5049_s6 + $0x2c] ss:$16 sps:$4 sm:$0xff]  }
 0x36a   : > { %3758 = vmatpush3.bf16.msra.mxu1 %v4071_v7 }
 0x36b   : > { %3759 = vmatprep.subr.bf16.mxu1 %v4072_v10 }
 0x36e   : > { %3760 = vmatpush3.bf16.msra.mxu1 %v4073_v11 }
 0x36f   : > { %3761 = vmatprep.subr.bf16.mxu1 %v4074_v12 }
 0x372   : > { %3762 = vmatpush3.bf16.msra.mxu1 %v4075_v13 }
 0x373   : > { %3763 = vmatprep.subr.bf16.mxu1 %v4076_v14 }
 0x376   : > { %3764 = vmatpush3.bf16.msra.mxu1 %v4077_v15 }
 0x377   : > { %2383 = vmatprep.subr.bf16.mxu1 %v4085_v54 }
 0x3c9   : > { %v1466_v16 = vpop.xlane.xlu0 %1465 }
 0x3ca   : > { %4142 = vrcp.f32 %v1466_v16 }
 0x3d1   : > { %v1581_v5 = vpop.xlane.xlu1 %1580 }
 0x3d2   : > { %4144 = vrcp.f32 %v1581_v5 }
 0x3d7   : > { %v4143_v17 = vpop.eup %4142 }
 0x3d9   : > { %v1696_v18 = vpop.xlane.xlu0 %1695 }
 0x3da   : > { %4146 = vrcp.f32 %v1696_v18  ;;  %v4080_v18 = vld [vmem:[%s5049_s6 + $0x20] ss:$16 sps:$4 sm:$0xff]  }
 0x3df   : > { %v4145_v27 = vpop.eup %4144 }
 0x3e1   : > { %v1811_v28 = vpop.xlane.xlu1 %1810 }
 0x3e2   : > { %4148 = vrcp.f32 %v1811_v28 }
 0x3e7   : > { %v4147_v20 = vpop.eup %4146 }
 0x3ef   : > { %v4149_v4 = vpop.eup %4148 }
 0x401   : > { %v1511_v19 = vpop.f32.mrf.mxu1 }
 0x402   : > { %v1518_v9 = vmul.f32 %v4143_v17, %v1511_v19  ;;  %v4082_v17 = vld [vmem:[%s5049_s6 + $0x24] ss:$16 sps:$4 sm:$0xff]   ;;  %v4083_v19 = vld [vmem:[%s5049_s6 + $0x28] ss:$16 sps:$4 sm:$0xff]  }
 0x403   : > { %v3849_v8 = vpop.f32.mrf.mxu1  ;;  %2342 = vmatprep.subr.bf16.mxu0 %v4082_v17 }
 0x404   : > { %v1519_v22 = vpack.c.bf16 %v1518_v9, %v1518_v9  ;;  %v4088_v9 = vld [vmem:[%s5049_s6 + $0x4] ss:$16 sps:$4 sm:$0xff]   ;;  %v4086_v8 = vld [vmem:[%s5049_s6] ss:$16 sps:$4 sm:$0xff]  }
 0x405   : > { %v1514_v23 = vpop.f32.mrf.mxu1 }
 0x406   : > { %1520 = vst [vmem:[#allocation4] sm:$0xf] %v1519_v22  ;;  %v4089_v22 = vld [vmem:[%s5049_s6 + $0x8] ss:$16 sps:$4 sm:$0xff]   ;;  %v4091_v23 = vld [vmem:[%s5049_s6 + $0xc] ss:$16 sps:$4 sm:$0xff]  }
 0x407   : > { %v3850_v24 = vpop.f32.mrf.mxu1 }
 0x409   : > { %v1626_v29 = vpop.f32.mrf.mxu1 }
 0x40a   : > { %v1633_v31 = vmul.f32 %v4145_v27, %v1626_v29 }
 0x40b   : > { %v3861_v32 = vpop.f32.mrf.mxu1 }
 0x40c   : > { %v1634_v33 = vpack.c.bf16 %v1633_v31, %v1633_v31  ;;  %v3613_v31 = vld [vmem:[%s5045_s2 + $0xd] ss:$0 sm:$0xff] }
 0x40d   : > { %v1629_v34 = vpop.f32.mrf.mxu1 }
 0x40e   : > { %1635 = vst [vmem:[#allocation4 + $0x4] sm:$0xf] %v1634_v33  ;;  %v3614_v33 = vld [vmem:[%s5045_s2 + $0xe] ss:$0 sm:$0xff] }
 0x40f   : > { %v3862_v35 = vpop.f32.mrf.mxu1 }
 0x410   : > { %v2413_v35 = vld [vmem:[#allocation3] sm:$0xf] }
 0x411   : > { %v1741_v36 = vpop.f32.mrf.mxu1 }
 0x412   : > { %v1748_v21 = vmul.f32 %v4147_v20, %v1741_v36  ;;  %v2414_v20 = vld [vmem:[#allocation3 + $0x20] sm:$0xf] }
 0x413   : > { %v3873_v37 = vpop.f32.mrf.mxu1 }
 0x414   : > { %v1749_v38 = vpack.c.bf16 %v1748_v21, %v1748_v21  ;;  %v3625_v21 = vcombine.low %v2413_v35, %v2414_v20 }
 0x415   : > { %v1744_v39 = vpop.f32.mrf.mxu1  ;;  %v1866_v40 = vld [vmem:[#allocation4] sm:$0xff] }
 0x416   : > { %1750 = vst [vmem:[#allocation4 + $0x8] sm:$0xf] %v1749_v38  ;;  %v3578_v41 = vcombine.high %v1866_v40, %v1866_v40  ;;  %v3577_v42 = vcombine.low %v1866_v40, %v1866_v40  ;;  %v2200_v38 = vld [vmem:[%s5045_s2 + $0xf] sm:$0xf]  ;;  %v2528_v40 = vld [vmem:[#allocation3 + $0x4] sm:$0xf] }
 0x417   : > { %v3874_v25 = vpop.f32.mrf.mxu1  ;;  %v2270_v39 = vrot.slane %v2200_v38, %v1261_v63 }
 0x418   : > { %2112 = vmatprep.mubr.bf16.mxu0 %v3578_v41  ;;  %v2529_v41 = vld [vmem:[#allocation3 + $0x24] sm:$0xf] }
 0x419   : > { %v1856_v26 = vpop.f32.mrf.mxu1  ;;  %2113 = vmatmul.mubr.bf16.vlgmr.msra.gmra.mxu0 %v3577_v42 }
 0x41a   : > { %v1863_v43 = vmul.f32 %v4149_v4, %v1856_v26  ;;  %2362 = vmatprep.mubr.bf16.mxu0 %v4267_v49  ;;  %2343 = vmatpush1.bf16.msra.mxu0 %v4080_v18 }
 0x41b   : > { %v3885_v44 = vpop.f32.mrf.mxu1  ;;  %2344 = vmatprep.subr.bf16.mxu0 %v4088_v9 }
 0x41c   : > { %v1864_v45 = vpack.c.bf16 %v1863_v43, %v1863_v43  ;;  %v3628_v44 = vcombine.low %v2528_v40, %v2529_v41  ;;  %v2531_v40 = vld [vmem:[#allocation3 + $0x34] sm:$0xf] }
 0x41d   : > { %v1859_v46 = vpop.f32.mrf.mxu1 }
 0x41e   : > { %1865 = vst [vmem:[#allocation4 + $0xc] sm:$0xf] %v1864_v45  ;;  %2345 = vmatpush1.bf16.msra.mxu0 %v4086_v8  ;;  %v2274_v46 = vrot.slane %v2200_v38, %v1265_v2 }
 0x41f   : > { %v3886_v47 = vpop.f32.mrf.mxu1  ;;  %3887 = vmatprep.subr.bf16.mxu0 %v4268_v60 }
 0x425   : > { %v1867_v48 = vld [vmem:[#allocation4 + $0x8] sm:$0xff] }
 0x426   : > { %v3580_v50 = vcombine.high %v1867_v48, %v1867_v48  ;;  %v3579_v51 = vcombine.low %v1867_v48, %v1867_v48 }
 0x428   : > { %2152 = vmatprep.mubr.bf16.mxu1 %v3580_v50 }
 0x429   : > { %2153 = vmatmul.mubr.bf16.vlgmr.msra.gmra.mxu1 %v3579_v51 }
 0x42a   : > { %2403 = vmatprep.mubr.bf16.mxu1 %v4267_v49  ;;  %2384 = vmatpush1.bf16.msra.mxu1 %v4083_v19 }
 0x42b   : > { %2385 = vmatprep.subr.bf16.mxu1 %v4091_v23 }
 0x42e   : > { %2386 = vmatpush1.bf16.msra.mxu1 %v4089_v22 }
 0x42f   : > { %3893 = vmatprep.subr.bf16.mxu1 %v4268_v60 }
 0x4d9   : > { %v3743_v52 = vpop.f32.mrf.mxu0 }
 0x4db   : > { %v3744_v53 = vpop.f32.mrf.mxu0 }
 0x4dc   : > { %v3745_v57 = vadd.f32 %v3744_v53, %v3743_v52  ;;  %v2643_v52 = vld [vmem:[#allocation3 + $0x8] sm:$0xf] }
 0x4dd   : > { %v3746_v55 = vpop.f32.mrf.mxu0  ;;  %v2644_v53 = vld [vmem:[#allocation3 + $0x28] sm:$0xf] }
 0x4de   : > { %v2115_v0 = vadd.f32 %v3745_v57, %v3576_v58  ;;  %v3631_v55 = vcombine.low %v2643_v52, %v2644_v53  ;;  %v2758_v58 = vld [vmem:[#allocation3 + $0xc] sm:$0xf] }
 0x4df   : > { %v3747_v56 = vpop.f32.mrf.mxu0 }
 0x4e0   : > { %v2278_v56 = vrot.slane %v2200_v38, %v1269_v6 }
 0x4e9   : > { %v3765_v59 = vpop.f32.mrf.mxu1 }
 0x4eb   : > { %v3766_v61 = vpop.f32.mrf.mxu1 }
 0x4ec   : > { %v3767_v1 = vadd.f32 %v3766_v61, %v3765_v59  ;;  %v2759_v59 = vld [vmem:[#allocation3 + $0x2c] sm:$0xf] }
 0x4ed   : > { %v3768_v7 = vpop.f32.mrf.mxu1  ;;  %v3634_v61 = vcombine.low %v2758_v58, %v2759_v59 }
 0x4ee   : > { %v2155_v10 = vadd.f32 %v3767_v1, %v2115_v0  ;;  %v2282_v1 = vrot.slane %v2200_v38, %v1273_v30 }
 0x4ef   : > { %v3769_v11 = vpop.f32.mrf.mxu1 }
 0x4f0   : > { %v2160_v12 = vadd.f32 %v2155_v10, %v1183_v3 }
 0x4f2   : > { %v2163_v49 = vsel %vm1319_vm1, %v2160_v12, 0.0 }
 0x4f3   : > { %2164 = vadd.xlane.f32.xlu0 %v2163_v49 }
 0x57c   : > { %v2165_v13 = vpop.xlane.xlu0 %2164 }
 0x57d   : > { %v2167_v14 = vmul.f32 0.03125, %v2165_v13 }
 0x57f   : > { %v2168_v15 = vsub.f32 %v2160_v12, %v2167_v14 }
 0x581   : > { %v2169_v16 = vmul.f32 %v2168_v15, %v2168_v15 }
 0x583   : > { %v2170_v5 = vsel %vm1319_vm1, %v2169_v16, 0.0 }
 0x584   : > { %2171 = vadd.xlane.f32.xlu1 %v2170_v5 }
 0x60d   : > { %v2172_v24 = vpop.xlane.xlu1 %2171 }
 0x60e   : > { %v2173_v27 = vmul.f32 0.03125, %v2172_v24 }
 0x610   : > { %v2174_v28 = vadd.f32 1e-05, %v2173_v27  ;;  %v2415_v27 = vld [vmem:[#allocation3 + $0x10] sm:$0xf] }
 0x612   : > { %4150 = vrsqrt.f32 %v2174_v28  ;;  %v2416_v28 = vld [vmem:[#allocation3 + $0x30] sm:$0xf] }
 0x61f   : > { %v4151_v29 = vpop.eup %4150 }
 0x620   : > { %v2176_v32 = vmul.f32 %v4151_v29, %v2168_v15 }
 0x622   : > { %v2183_v34 = vmul.f32 %v3613_v31, %v2176_v32  ;;  %v3626_v31 = vcombine.low %v2415_v27, %v2416_v28  ;;  %v4115_v27 = vld [vmem:[%s5051_s8 + $0xa0] sm:$0xff]   ;;  %v4118_v28 = vld [vmem:[%s5051_s8 + $0xd8] sm:$0xff]  }
 0x624   : > { %v4790_v36 = vadd.f32 %v3614_v33, %v2183_v34 }
 0x626   : > { %v2191_v37 = vpack.c.bf16 %v4790_v36, %v4790_v36 }
 0x628   : > { %3623 = vmatmul.mubr.msk.bf16.vlgmr.msra.gmra.mxu0 %vm1319_vm1, %v2191_v37  ;;  %3624 = vmatmul.mubr.msk.bf16.vlgmr.msra.gmra.mxu1 %vm1319_vm1, %v2191_v37 }
 0x629   : > { %3888 = vmatpush3.bf16.xpose.msra.mxu0 %v3625_v21  ;;  %3889 = vmatprep.mubr.msk.bf16.mxu0 %vm4269_vm2, %v4268_v60 }
 0x62a   : > { %3899 = vmatprep.subr.bf16.mxu0 %v4268_v60  ;;  %3895 = vmatprep.mubr.msk.bf16.mxu1 %vm4269_vm2, %v4268_v60 }
 0x62b   : > { %3894 = vmatpush3.bf16.msra.mxu1 %v3626_v31  ;;  %v4120_v31 = vld [vmem:[%s5051_s8 + $0xd0] sm:$0xff]  }
 0x62c   : > { %3905 = vmatprep.subr.bf16.mxu1 %v4268_v60 }
 0x6e8   : > { %v2364_v42 = vpop.f32.mrf.mxu0  ;;  %v2405_v25 = vpop.f32.mrf.mxu1 }
 0x6e9   : > { %v2365_v4 = vadd.f32 %v2364_v42, %v2270_v39  ;;  %v2406_v2 = vadd.f32 %v2405_v25, %v2278_v56  ;;  %v2530_v39 = vld [vmem:[#allocation3 + $0x14] sm:$0xf]  ;;  %v2761_v56 = vld [vmem:[#allocation3 + $0x3c] sm:$0xf] }
 0x6ea   : > { %v2366_v26 = vpop.f32.mrf.mxu0  ;;  %v2407_v43 = vpop.f32.mrf.mxu1 }
 0x6eb   : > { %v2412_v45 = vpack.c.bf16 %v2365_v4, %v2365_v4  ;;  %v2367_v63 = vadd.f32 %v2366_v26, %v2274_v46  ;;  %v2642_v0 = vpack.c.bf16 %v2406_v2, %v2406_v2  ;;  %v2408_v6 = vadd.f32 %v2407_v43, %v2282_v1  ;;  %v2646_v46 = vld [vmem:[#allocation3 + $0x38] sm:$0xf] }
 0x6ec   : > { %v2368_v47 = vpop.f32.mrf.mxu0  ;;  %v2409_v48 = vpop.f32.mrf.mxu1  ;;  %v3629_v4 = vcombine.low %v2530_v39, %v2531_v40 }
 0x6ed   : > { %3890 = vmatmul.mubr.bf16.vlgmr.msra.gmra.mxu0 %v2412_v45  ;;  %v2527_v57 = vpack.c.bf16 %v2367_v63, %v2367_v63  ;;  %v2757_v3 = vpack.c.bf16 %v2408_v6, %v2408_v6  ;;  %v2645_v45 = vld [vmem:[#allocation3 + $0x18] sm:$0xf] }
 0x6ee   : > { %3900 = vmatpush3.bf16.xpose.msra.mxu0 %v3628_v44  ;;  %v2369_v50 = vpop.f32.mrf.mxu0  ;;  %v2410_v51 = vpop.f32.mrf.mxu1  ;;  %3901 = vmatprep.mubr.msk.bf16.mxu0 %vm4269_vm2, %v4268_v60  ;;  %v4092_v6 = vld [vmem:[%s5051_s8 + $0x78] sm:$0xff]  }
 0x6ef   : > { %3911 = vmatprep.subr.bf16.mxu0 %v4268_v60  ;;  %v3632_v51 = vcombine.low %v2645_v45, %v2646_v46 }
 0x6f5   : > { %3902 = vmatmul.mubr.bf16.vlgmr.msra.gmra.mxu0 %v2527_v57 }
 0x6f6   : > { %3912 = vmatpush3.bf16.xpose.msra.mxu0 %v3631_v55  ;;  %3913 = vmatprep.mubr.msk.bf16.mxu0 %vm4269_vm2, %v4268_v60  ;;  %v2760_v55 = vld [vmem:[#allocation3 + $0x1c] sm:$0xf] }
 0x6f7   : > { %3923 = vmatprep.subr.bf16.mxu0 %v4268_v60  ;;  %v3635_v2 = vcombine.low %v2760_v55, %v2761_v56 }
 0x6fd   : > { %3914 = vmatmul.mubr.bf16.vlgmr.msra.gmra.mxu0 %v2642_v0 }
 0x6fe   : > { %3924 = vmatpush3.bf16.xpose.msra.mxu0 %v3634_v61  ;;  %3925 = vmatprep.mubr.msk.bf16.mxu0 %vm4269_vm2, %v4268_v60 }
 0x6ff   : > { %3787 = vmatprep.subr.bf16.mxu0 %v4092_v6 }
 0x705   : > { %3926 = vmatmul.mubr.bf16.vlgmr.msra.gmra.mxu0 %v2757_v3  ;;  %v4093_v3 = vld [vmem:[%s5051_s8 + $0x38] sm:$0xff]  }
 0x706   : > { %3788 = vmatpush3.bf16.msra.mxu0 %v4093_v3 }
 0x7ad   : > { %v2457_v7 = vpop.f32.mrf.mxu0 }
 0x7ae   : > { %v2463_v10 = vmul.f32 0.35355338, %v2457_v7  ;;  %v4094_v7 = vld [vmem:[%s5051_s8 + $0x70] sm:$0xff]  }
 0x7af   : > { %v3891_v11 = vpop.f32.mrf.mxu0  ;;  %3789 = vmatprep.subr.bf16.mxu0 %v4094_v7 }
 0x7b0   : > { %v2464_v12 = vsel %vm1457_vm3, %v2463_v10, -inf  ;;  %v4096_v11 = vld [vmem:[%s5051_s8 + $0x68] sm:$0xff]  }
 0x7b1   : > { %2465 = vmax.xlane.f32.xlu0 %v2464_v12  ;;  %v2460_v49 = vpop.f32.mrf.mxu0  ;;  %v4097_v12 = vld [vmem:[%s5051_s8 + $0x28] sm:$0xff]  }
 0x7b2   : > { %v4098_v49 = vld [vmem:[%s5051_s8 + $0x60] sm:$0xff]  }
 0x7b3   : > { %v3892_v13 = vpop.f32.mrf.mxu0 }
 0x7b4   : > { %v4099_v13 = vld [vmem:[%s5051_s8 + $0x20] sm:$0xff]  }
 0x7b5   : > { %v2572_v14 = vpop.f32.mrf.mxu0 }
 0x7b6   : > { %v2578_v15 = vmul.f32 0.35355338, %v2572_v14  ;;  %v4100_v14 = vld [vmem:[%s5051_s8 + $0x58] sm:$0xff]  }
 0x7b7   : > { %v3903_v62 = vpop.f32.mrf.mxu0 }
 0x7b8   : > { %v2579_v30 = vsel %vm1457_vm3, %v2578_v15, -inf  ;;  %v4102_v62 = vld [vmem:[%s5051_s8 + $0x18] sm:$0xff]  }
 0x7b9   : > { %2580 = vmax.xlane.f32.xlu1 %v2579_v30  ;;  %v2575_v16 = vpop.f32.mrf.mxu0  ;;  %v4103_v30 = vld [vmem:[%s5051_s8 + $0xb8] sm:$0xff]  }
 0x7ba   : > { %v4104_v16 = vld [vmem:[%s5051_s8 + $0x50] sm:$0xff]  }
 0x7bb   : > { %v3904_v5 = vpop.f32.mrf.mxu0 }
 0x7bc   : > { %v4105_v5 = vld [vmem:[%s5051_s8 + $0xf0] sm:$0xff]  }
 0x7bd   : > { %v2687_v17 = vpop.f32.mrf.mxu0 }
 0x7be   : > { %v2693_v54 = vmul.f32 0.35355338, %v2687_v17  ;;  %v4106_v17 = vld [vmem:[%s5051_s8 + $0x10] sm:$0xff]  }
 0x7bf   : > { %v3915_v18 = vpop.f32.mrf.mxu0 }
 0x7c0   : > { %v2694_v19 = vsel %vm1457_vm3, %v2693_v54, -inf  ;;  %v4108_v18 = vld [vmem:[%s5051_s8 + $0x48] sm:$0xff]  }
 0x7c1   : > { %2695 = vmax.xlane.f32.xlu0 %v2694_v19  ;;  %v2690_v9 = vpop.f32.mrf.mxu0  ;;  %v4109_v19 = vld [vmem:[%s5051_s8 + $0xe8] sm:$0xff]  }
 0x7c2   : > { %v4110_v9 = vld [vmem:[%s5051_s8 + $0x8] sm:$0xff]  }
 0x7c3   : > { %v3916_v8 = vpop.f32.mrf.mxu0 }
 0x7c4   : > { %v4111_v8 = vld [vmem:[%s5051_s8 + $0xa8] sm:$0xff]  }
 0x7c5   : > { %v2802_v22 = vpop.f32.mrf.mxu0 }
 0x7c6   : > { %v2808_v23 = vmul.f32 0.35355338, %v2802_v22  ;;  %v4112_v22 = vld [vmem:[%s5051_s8 + $0x40] sm:$0xff]  }
 0x7c7   : > { %v3927_v24 = vpop.f32.mrf.mxu0 }
 0x7c8   : > { %v2809_v29 = vsel %vm1457_vm3, %v2808_v23, -inf  ;;  %v4114_v24 = vld [vmem:[%s5051_s8] sm:$0xff]  }
 0x7c9   : > { %2810 = vmax.xlane.f32.xlu1 %v2809_v29  ;;  %v2805_v32 = vpop.f32.mrf.mxu0  ;;  %v4119_v29 = vld [vmem:[%s5051_s8 + $0x98] sm:$0xff]  }
 0x7ca   : > { %v4121_v32 = vld [vmem:[%s5051_s8 + $0x90] sm:$0xff]  }
 0x7cb   : > { %v3928_v33 = vpop.f32.mrf.mxu0 }
 0x7cc   : > { %v4122_v33 = vld [vmem:[%s5051_s8 + $0xc8] sm:$0xff]  }
 0x83a   : > { %v2466_v34 = vpop.xlane.xlu0 %2465 }
 0x83b   : > { %v2467_v35 = vsub.f32 %v2463_v10, %v2466_v34  ;;  %v4095_v10 = vld [vmem:[%s5051_s8 + $0x30] sm:$0xff]   ;;  %v4123_v34 = vld [vmem:[%s5051_s8 + $0x88] sm:$0xff]  }
 0x83c   : > { %3790 = vmatpush3.bf16.msra.mxu0 %v4095_v10 }
 0x83d   : > { %v2468_v20 = vmul.f32 1.442695, %v2467_v35  ;;  %3791 = vmatprep.subr.bf16.mxu0 %v4096_v11  ;;  %v4124_v35 = vld [vmem:[%s5051_s8 + $0xc0] sm:$0xff]  }
 0x83f   : > { %4152 = vpow2.f32 %v2468_v20  ;;  %v4125_v20 = vld [vmem:[%s5051_s8 + $0x80] sm:$0xff]  }
 0x840   : > { %3792 = vmatpush3.bf16.msra.mxu0 %v4097_v12 }
 0x841   : > { %3793 = vmatprep.subr.bf16.mxu0 %v4098_v49 }
 0x842   : > { %v2581_v21 = vpop.xlane.xlu1 %2580 }
 0x843   : > { %v2582_v37 = vsub.f32 %v2578_v15, %v2581_v21  ;;  %v4101_v15 = vld [vmem:[%s5051_s8 + $0xf8] sm:$0xff]  }
 0x844   : > { %3794 = vmatpush3.bf16.msra.mxu0 %v4099_v13 }
 0x845   : > { %v2583_v38 = vmul.f32 1.442695, %v2582_v37  ;;  %3795 = vmatprep.subr.bf16.mxu0 %v4100_v14 }
 0x847   : > { %4154 = vpow2.f32 %v2583_v38 }
 0x848   : > { %3796 = vmatpush3.bf16.msra.mxu0 %v4102_v62 }
 0x849   : > { %3797 = vmatprep.subr.bf16.mxu0 %v4104_v16 }
 0x84a   : > { %v2696_v41 = vpop.xlane.xlu0 %2695 }
 0x84b   : > { %v2697_v42 = vsub.f32 %v2693_v54, %v2696_v41  ;;  %v4107_v54 = vld [vmem:[%s5051_s8 + $0xb0] sm:$0xff]  }
 0x84c   : > { %v4153_v25 = vpop.eup %4152  ;;  %3798 = vmatpush3.bf16.msra.mxu0 %v4106_v17 }
 0x84d   : > { %v2698_v26 = vmul.f32 1.442695, %v2697_v42  ;;  %v2470_v43 = vsel %vm1457_vm3, %v4153_v25, 0.0  ;;  %v2473_v44 = vpack.c.bf16 %v4153_v25, %v4153_v25  ;;  %3799 = vmatprep.subr.bf16.mxu0 %v4108_v18 }
 0x84e   : > { %2471 = vadd.xlane.f32.xlu0 %v2470_v43 }
 0x84f   : > { %4156 = vpow2.f32 %v2698_v26  ;;  %3896 = vmatmul.mubr.msk.bf16.vlgmr.msra.gmra.mxu1 %vm1457_vm3, %v2473_v44 }
 0x850   : > { %3906 = vmatpush3.bf16.msra.mxu1 %v3629_v4  ;;  %3907 = vmatprep.mubr.msk.bf16.mxu1 %vm4269_vm2, %v4268_v60 }
 0x851   : > { %3917 = vmatprep.subr.bf16.mxu1 %v4268_v60  ;;  %3800 = vmatpush3.bf16.msra.mxu0 %v4110_v9 }
 0x852   : > { %v2811_v47 = vpop.xlane.xlu1 %2810  ;;  %3801 = vmatprep.subr.bf16.mxu0 %v4112_v22 }
 0x853   : > { %v2812_v48 = vsub.f32 %v2808_v23, %v2811_v47  ;;  %v4113_v23 = vld [vmem:[%s5051_s8 + $0xe0] sm:$0xff]  }
 0x854   : > { %v4155_v50 = vpop.eup %4154 }
 0x855   : > { %v2813_v63 = vmul.f32 1.442695, %v2812_v48  ;;  %v2585_v52 = vsel %vm1457_vm3, %v4155_v50, 0.0  ;;  %v2588_v53 = vpack.c.bf16 %v4155_v50, %v4155_v50  ;;  %3802 = vmatpush3.bf16.msra.mxu0 %v4114_v24 }
 0x856   : > { %2586 = vadd.xlane.f32.xlu1 %v2585_v52  ;;  %3935 = vmatprep.subr.bf16.mxu0 %v4268_v60 }
 0x857   : > { %4158 = vpow2.f32 %v2813_v63  ;;  %3908 = vmatmul.mubr.msk.bf16.vlgmr.msra.gmra.mxu1 %vm1457_vm3, %v2588_v53 }
 0x858   : > { %3918 = vmatpush3.bf16.msra.mxu1 %v3632_v51  ;;  %3919 = vmatprep.mubr.msk.bf16.mxu1 %vm4269_vm2, %v4268_v60 }
 0x859   : > { %3929 = vmatprep.subr.bf16.mxu1 %v4268_v60 }
 0x85c   : > { %v4157_v57 = vpop.eup %4156 }
 0x85d   : > { %v2700_v58 = vsel %vm1457_vm3, %v4157_v57, 0.0  ;;  %v2703_v59 = vpack.c.bf16 %v4157_v57, %v4157_v57 }
 0x85e   : > { %2701 = vadd.xlane.f32.xlu0 %v2700_v58 }
 0x85f   : > { %3920 = vmatmul.mubr.msk.bf16.vlgmr.msra.gmra.mxu1 %vm1457_vm3, %v2703_v59 }
 0x860   : > { %3930 = vmatpush3.bf16.msra.mxu1 %v3635_v2  ;;  %3931 = vmatprep.mubr.msk.bf16.mxu1 %vm4269_vm2, %v4268_v60 }
 0x861   : > { %3809 = vmatprep.subr.bf16.mxu1 %v4101_v15 }
 0x864   : > { %v4159_v61 = vpop.eup %4158 }
 0x865   : > { %v2815_v0 = vsel %vm1457_vm3, %v4159_v61, 0.0  ;;  %v2818_v1 = vpack.c.bf16 %v4159_v61, %v4159_v61 }
 0x866   : > { %2816 = vadd.xlane.f32.xlu1 %v2815_v0 }
 0x867   : > { %3932 = vmatmul.mubr.msk.bf16.vlgmr.msra.gmra.mxu1 %vm1457_vm3, %v2818_v1 }
 0x868   : > { %3810 = vmatpush3.bf16.msra.mxu1 %v4103_v30 }
 0x869   : > { %3811 = vmatprep.subr.bf16.mxu1 %v4105_v5  ;;  %v3637_v5 = vld [vmem:[%s5045_s2 + $0x1b] ss:$0 sm:$0xff] }
 0x86c   : > { %3812 = vmatpush3.bf16.msra.mxu1 %v4107_v54 }
 0x86d   : > { %3813 = vmatprep.subr.bf16.mxu1 %v4109_v19 }
 0x870   : > { %3814 = vmatpush3.bf16.msra.mxu1 %v4111_v8 }
 0x871   : > { %3815 = vmatprep.subr.bf16.mxu1 %v4113_v23 }
 0x874   : > { %3816 = vmatpush3.bf16.msra.mxu1 %v4115_v27 }
 0x875   : > { %3817 = vmatprep.subr.bf16.mxu1 %v4118_v28 }
 0x878   : > { %3818 = vmatpush3.bf16.msra.mxu1 %v4119_v29 }
 0x879   : > { %3819 = vmatprep.subr.bf16.mxu1 %v4120_v31 }
 0x87c   : > { %3820 = vmatpush3.bf16.msra.mxu1 %v4121_v32 }
 0x87d   : > { %3821 = vmatprep.subr.bf16.mxu1 %v4122_v33  ;;  %v4128_v33 = vld [vmem:[%s5052_s9 + $0x8] sm:$0xff]  }
 0x880   : > { %3822 = vmatpush3.bf16.msra.mxu1 %v4123_v34  ;;  %v4129_v34 = vld [vmem:[%s5052_s9] sm:$0xff]  }
 0x881   : > { %3823 = vmatprep.subr.bf16.mxu1 %v4124_v35  ;;  %v4131_v35 = vld [vmem:[%s5053_s10 + $0x10] sm:$0xff]  }
 0x884   : > { %3824 = vmatpush3.bf16.msra.mxu1 %v4125_v20 }
 0x885   : > { %3943 = vmatprep.subr.bf16.mxu1 %v4268_v60 }
 0x8d7   : > { %v2472_v21 = vpop.xlane.xlu0 %2471 }
 0x8d8   : > { %4160 = vrcp.f32 %v2472_v21 }
 0x8df   : > { %v2587_v37 = vpop.xlane.xlu1 %2586 }
 0x8e0   : > { %4162 = vrcp.f32 %v2587_v37 }
 0x8e5   : > { %v4161_v38 = vpop.eup %4160 }
 0x8e7   : > { %v2702_v39 = vpop.xlane.xlu0 %2701 }
 0x8e8   : > { %4164 = vrcp.f32 %v2702_v39  ;;  %v3674_v39 = vld [vmem:[%s5045_s2 + $0x1c] ss:$0 sm:$0xff] }
 0x8ed   : > { %v4163_v43 = vpop.eup %4162 }
 0x8ef   : > { %v2817_v44 = vpop.xlane.xlu1 %2816 }
 0x8f0   : > { %4166 = vrcp.f32 %v2817_v44  ;;  %v3676_v44 = vld [vmem:[%s5045_s2 + $0x1e] ss:$0 sm:$0xff] }
 0x8f5   : > { %v4165_v63 = vpop.eup %4164 }
 0x8fd   : > { %v4167_v0 = vpop.eup %4166 }
 0x90f   : > { %v2517_v40 = vpop.f32.mrf.mxu1 }
 0x910   : > { %v2524_v41 = vmul.f32 %v4161_v38, %v2517_v40 }
 0x911   : > { %v3897_v42 = vpop.f32.mrf.mxu1 }
 0x912   : > { %v2525_v25 = vpack.c.bf16 %v2524_v41, %v2524_v41  ;;  %v3675_v41 = vld [vmem:[%s5045_s2 + $0x1d] ss:$0 sm:$0xff] }
 0x913   : > { %v2520_v4 = vpop.f32.mrf.mxu1 }
 0x914   : > { %2526 = vst [vmem:[#allocation4] sm:$0xf] %v2525_v25 }
 0x915   : > { %v3898_v26 = vpop.f32.mrf.mxu1 }
 0x916   : > { %v4132_v26 = vld [vmem:[%s5053_s10 + $0x8] sm:$0xff]  }
 0x917   : > { %v2632_v45 = vpop.f32.mrf.mxu1 }
 0x918   : > { %v2639_v46 = vmul.f32 %v4163_v43, %v2632_v45  ;;  %v4133_v43 = vld [vmem:[%s5053_s10] sm:$0xff]  }
 0x919   : > { %v3909_v47 = vpop.f32.mrf.mxu1 }
 0x91a   : > { %v2640_v48 = vpack.c.bf16 %v2639_v46, %v2639_v46 }
 0x91b   : > { %v2635_v50 = vpop.f32.mrf.mxu1 }
 0x91c   : > { %2641 = vst [vmem:[#allocation4 + $0x4] sm:$0xf] %v2640_v48 }
 0x91d   : > { %v3910_v51 = vpop.f32.mrf.mxu1 }
 0x91f   : > { %v2747_v52 = vpop.f32.mrf.mxu1 }
 0x920   : > { %v2754_v53 = vmul.f32 %v4165_v63, %v2747_v52 }
 0x921   : > { %v3921_v55 = vpop.f32.mrf.mxu1 }
 0x922   : > { %v2755_v56 = vpack.c.bf16 %v2754_v53, %v2754_v53 }
 0x923   : > { %v2750_v57 = vpop.f32.mrf.mxu1  ;;  %v2872_v2 = vld [vmem:[#allocation4] sm:$0xff] }
 0x924   : > { %2756 = vst [vmem:[#allocation4 + $0x8] sm:$0xf] %v2755_v56  ;;  %v3638_v58 = vcombine.low %v2872_v2, %v2872_v2  ;;  %v3639_v59 = vcombine.high %v2872_v2, %v2872_v2 }
 0x925   : > { %v3922_v61 = vpop.f32.mrf.mxu1 }
 0x926   : > { %3118 = vmatprep.mubr.bf16.mxu0 %v3639_v59 }
 0x927   : > { %v2862_v1 = vpop.f32.mrf.mxu1  ;;  %3119 = vmatmul.mubr.bf16.vlgmr.msra.gmra.mxu0 %v3638_v58 }
 0x928   : > { %v2869_v6 = vmul.f32 %v4167_v0, %v2862_v1  ;;  %3939 = vmatprep.mubr.msk.bf16.mxu0 %vm4269_vm2, %v4268_v60  ;;  %3936 = vmatpush3.bf16.msra.mxu0 %v4128_v33 }
 0x929   : > { %v3933_v3 = vpop.f32.mrf.mxu1  ;;  %3937 = vmatprep.subr.bf16.mxu0 %v4268_v60 }
 0x92a   : > { %v2870_v7 = vpack.c.bf16 %v2869_v6, %v2869_v6 }
 0x92b   : > { %v2865_v10 = vpop.f32.mrf.mxu1 }
 0x92c   : > { %2871 = vst [vmem:[#allocation4 + $0xc] sm:$0xf] %v2870_v7  ;;  %3938 = vmatpush3.bf16.msra.mxu0 %v4129_v34 }
 0x92d   : > { %v3934_v11 = vpop.f32.mrf.mxu1 }
 0x933   : > { %v2873_v12 = vld [vmem:[#allocation4 + $0x8] sm:$0xff] }
 0x934   : > { %v3640_v49 = vcombine.low %v2873_v12, %v2873_v12  ;;  %v3641_v13 = vcombine.high %v2873_v12, %v2873_v12  ;;  %v3686_v12 = vld [vmem:[%s5045_s2 + $0x20] ss:$0 sm:$0xff] }
 0x936   : > { %3158 = vmatprep.mubr.bf16.mxu1 %v3641_v13  ;;  %v3687_v13 = vld [vmem:[%s5045_s2 + $0x21] ss:$0 sm:$0xff] }
 0x937   : > { %3159 = vmatmul.mubr.bf16.vlgmr.msra.gmra.mxu1 %v3640_v49 }
 0x938   : > { %3951 = vmatprep.mubr.msk.bf16.mxu1 %vm4269_vm2, %v4268_v60 }
 0x9e7   : > { %v3803_v14 = vpop.f32.mrf.mxu0 }
 0x9e9   : > { %v3804_v15 = vpop.f32.mrf.mxu0 }
 0x9ea   : > { %v3805_v16 = vadd.f32 %v3804_v15, %v3803_v14 }
 0x9eb   : > { %v3806_v62 = vpop.f32.mrf.mxu0 }
 0x9ec   : > { %v3121_v18 = vadd.f32 %v3805_v16, %v3637_v5 }
 0x9ed   : > { %v3807_v30 = vpop.f32.mrf.mxu0 }
 0x9f7   : > { %v3825_v17 = vpop.f32.mrf.mxu1 }
 0x9f9   : > { %v3826_v54 = vpop.f32.mrf.mxu1 }
 0x9fa   : > { %v3827_v19 = vadd.f32 %v3826_v54, %v3825_v17 }
 0x9fb   : > { %v3828_v9 = vpop.f32.mrf.mxu1 }
 0x9fc   : > { %v3161_v8 = vadd.f32 %v3827_v19, %v3121_v18 }
 0x9fd   : > { %v3829_v22 = vpop.f32.mrf.mxu1 }
 0x9fe   : > { %v3166_v23 = vadd.f32 %v3161_v8, %v4790_v36  ;;  %v4130_v36 = vld [vmem:[%s5053_s10 + $0x18] sm:$0xff]  }
 0x9ff   : > { %3944 = vmatpush3.bf16.msra.mxu1 %v4130_v36 }
 0xa00   : > { %v3169_v24 = vsel %vm1319_vm1, %v3166_v23, 0.0  ;;  %3945 = vmatprep.subr.bf16.mxu1 %v4268_v60 }
 0xa01   : > { %3170 = vadd.xlane.f32.xlu0 %v3169_v24 }
 0xa03   : > { %3946 = vmatpush3.bf16.msra.mxu1 %v4131_v35 }
 0xa04   : > { %3947 = vmatprep.subr.bf16.mxu1 %v4268_v60 }
 0xa07   : > { %3948 = vmatpush3.bf16.msra.mxu1 %v4132_v26 }
 0xa08   : > { %3949 = vmatprep.subr.bf16.mxu1 %v4268_v60  ;;  %v3680_v60 = vld [vmem:[%s5045_s2 + $0x1f] ss:$0 sm:$0xff] }
 0xa0b   : > { %3950 = vmatpush3.bf16.msra.mxu1 %v4133_v43 }
 0xa8a   : > { %v3171_v27 = vpop.xlane.xlu0 %3170 }
 0xa8b   : > { %v3172_v28 = vmul.f32 0.03125, %v3171_v27 }
 0xa8d   : > { %v3173_v29 = vsub.f32 %v3166_v23, %v3172_v28 }
 0xa8f   : > { %v3174_v31 = vmul.f32 %v3173_v29, %v3173_v29 }
 0xa91   : > { %v3175_v32 = vsel %vm1319_vm1, %v3174_v31, 0.0 }
 0xa92   : > { %3176 = vadd.xlane.f32.xlu1 %v3175_v32 }
 0xb1b   : > { %v3177_v20 = vpop.xlane.xlu1 %3176 }
 0xb1c   : > { %v3178_v21 = vmul.f32 0.03125, %v3177_v20 }
 0xb1e   : > { %v3179_v37 = vadd.f32 1e-05, %v3178_v21 }
 0xb20   : > { %4168 = vrsqrt.f32 %v3179_v37 }
 0xb2d   : > { %v4169_v38 = vpop.eup %4168 }
 0xb2e   : > { %v3181_v40 = vmul.f32 %v4169_v38, %v3173_v29 }
 0xb30   : > { %v3188_v42 = vmul.f32 %v3674_v39, %v3181_v40 }
 0xb32   : > { %v3195_v25 = vadd.f32 %v3675_v41, %v3188_v42 }
 0xb34   : > { %v3196_v4 = vpack.c.bf16 %v3195_v25, %v3195_v25 }
 0xb36   : > { %3940 = vmatmul.mubr.msk.bf16.vlgmr.msra.gmra.mxu0 %vm1319_vm1, %v3196_v4 }
 0xbf6   : > { %v3257_v45 = vpop.f32.mrf.mxu0 }
 0xbf7   : > { %v3258_v46 = vadd.f32 %v3676_v44, %v3257_v45 }
 0xbf8   : > { %v3941_v47 = vpop.f32.mrf.mxu0 }
 0xbf9   : > { %v3263_v48 = vmax.f32 %v3258_v46, 0.0 }
 0xbfa   : > { %v3260_v50 = vpop.f32.mrf.mxu0 }
 0xbfb   : > { %v3264_v51 = vpack.c.bf16 %v3263_v48, %v3263_v48 }
 0xbfc   : > { %v3942_v63 = vpop.f32.mrf.mxu0 }
 0xbfd   : > { %3952 = vmatmul.mubr.msk.bf16.vlgmr.msra.gmra.mxu1 %vm3304_vm4, %v3264_v51 }
 0xcbd   : > { %v3342_v52 = vpop.f32.mrf.mxu1 }
 0xcbe   : > { %v3343_v53 = vadd.f32 %v3680_v60, %v3342_v52 }
 0xcbf   : > { %v3953_v55 = vpop.f32.mrf.mxu1 }
 0xcc0   : > { %v3348_v56 = vadd.f32 %v3343_v53, %v3195_v25 }
 0xcc1   : > { %v3345_v57 = vpop.f32.mrf.mxu1 }
 0xcc2   : > { %v3351_v2 = vsel %vm1319_vm1, %v3348_v56, 0.0 }
 0xcc3   : > { %3352 = vadd.xlane.f32.xlu0 %v3351_v2  ;;  %v3954_v58 = vpop.f32.mrf.mxu1 }
 0xd4c   : > { %v3353_v59 = vpop.xlane.xlu0 %3352 }
 0xd4d   : > { %v3354_v61 = vmul.f32 0.03125, %v3353_v59 }
 0xd4f   : > { %v3355_v0 = vsub.f32 %v3348_v56, %v3354_v61 }
 0xd51   : > { %v3356_v1 = vmul.f32 %v3355_v0, %v3355_v0 }
 0xd53   : > { %v3357_v6 = vsel %vm1319_vm1, %v3356_v1, 0.0 }
 0xd54   : > { %3358 = vadd.xlane.f32.xlu1 %v3357_v6 }
 0xddd   : > { %v3359_v3 = vpop.xlane.xlu1 %3358 }
 0xdde   : > { %v3360_v7 = vmul.f32 0.03125, %v3359_v3 }
 0xde0   : > { %v3361_v10 = vadd.f32 1e-05, %v3360_v7 }
 0xde2   : > { %4170 = vrsqrt.f32 %v3361_v10 }
 0xdef   : > { %v4171_v11 = vpop.eup %4170 }
 0xdf0   : > { %v3363_v49 = vmul.f32 %v4171_v11, %v3355_v0 }
 0xdf2   : > { %v3370_v14 = vmul.f32 %v3686_v12, %v3363_v49 }
 0xdf4   : > { %v3377_v15 = vadd.f32 %v3687_v13, %v3370_v14 }
 0xdf6   : > { %v3378_v62 = vpack.c.bf16 %v3377_v15, %v3377_v15 }
 0xdf8   : > { %3380 = vst.msk [vmem:[%s5072_s14] sm:$0xf] %vm3379_vm5, %v3378_v62 }
 0xdf9   : > { %4185 = shalt.err (!%p4182_p7)
}
 0xdfa   : > { %s4186_s28 = scalar_lea.hbm %s3395_s25, 64  ;;  %s4190_s13 = scalar_lea.hbm %s5054_s11, 256 }
 0xdfb   : > { %p4187_p9 = scmp.ne.s32.totalorder %s3395_s25, %s4186_s28  ;;  %p4191_p12 = scmp.lt.s32.totalorder %s3395_s25, %s5054_s11 }
 0xdfc   : > { %p4192_p13 = scmp.lt.s32.totalorder %s4190_s13, %s4186_s28 }
 0xdfd   : > { %p4188_p10 = pnand %p4187_p9, %p4382_p3 }
 0xdfe   : > { %p4193_p0 = por %p4192_p13, %p4191_p12 }
 0xdff   : > { %p4189_p11 = pneg %p4188_p10 }
 0xe01   : > { %p4194_p1 = pnand %p4193_p0, %p4189_p11 }
 0xe03   : > { %4197 = shalt.err (!%p4194_p1)
}
 0xe04   : > { %3955 = dma.vmem_to_hbm [thread:$0]  (%p4382_p3), %s3398_s22, 64, %s3395_s25, %s3382_s20  }
 0xe05 PF: > { %p3961_p2 = scmp.ge.s32.totalorder %s4264_s24, 2  ;;  %s3409_s15 = sand.u32 1, %s4236_s17  }
 0xe06   : > { %s3410_s27 = scalar_lea.sflag [#allocation6], %s3409_s15 }
 0xe07   : > { %p3958_p4 = pnand %p3961_p2, %p4391_p8 }
 0xe09   : > { %p3959_p5 = pneg %p3958_p4 }
 0xe0b   : > { %4231 = dma.done.wait (%p3959_p5), %s3410_s27, 64  }
 0xe0c   : > { %4233 = vsyncadd (%p3959_p5), %s3410_s27, 4294967232  ;;  %s24_s24 = sadd.s32 1, %s4264_s24   ;;  %s5075_s29 = sld [smem:[#allocation8_spill]] }
 0xe0d   : > { %p21_p6 = scmp.ge.s32.totalorder %s24_s24, 6   ;;  %s5076_s19 = sld [smem:[#allocation14_spill]] }
 0xe0e   : > { %s5077_s20 = sld [smem:[#allocation9_spill]]  ;;  %s5081_s17 = smov %s4240_s18 }
 0xe0f   : > { %s5078_s21 = sld [smem:[#allocation10_spill]]  ;;  %23 = sbr.rel (!%p21_p6) target bundleno = 5 (0x5), region = 107 }
 0xe10   : > { %s5079_s22 = sld [smem:[#allocation11_spill]] }
 0xe11   : > { %s5080_s23 = sld [smem:[#allocation12_spill]] }
 0xe12   : > { %s5082_s18 = smov %s5075_s29 }
 0xe14   :  { %3415 = vsyncpa [#allocation6], 1 }
 0xe15   :  { %3417 = vsyncpa [#allocation6 + $0x1], 1 }

</bundles_post_ra>
